<compile_context>
chip_gen: v7x
topology: tpu7x:2x2x1
jax: 0.10.0
libtpu: 0.0.40
codegen_flags: <defaults>
</compile_context>

<pallas_src>
import numpy as np
import jax
import jax.numpy as jnp
from jax.experimental import pallas as pl
from jax.experimental.pallas import tpu as pltpu

NUM_HEADS = 16
H = W = 14           # spatial size fixed by the module (7x7 grid of 2x2 patches)
PH = PW = 7
_MAX_LANE_STRIDE = 128        # lane-aligned slot per 2x2-patch member in sel_max

_BLOCK_BUDGET = 8 << 20       # target bytes per x block (per buffer)
_MIN_BLOCK = 256 << 10        # do not shrink blocks below this just to add steps
_VMEM_FLOOR = 32 << 20
_VMEM_CEIL = 56 << 20         # < v7x 64 MiB physical VMEM; fine on v5e/v6e


def _bilinear_matrix(out_size: int, in_size: int) -> np.ndarray:
    """Row-stochastic 1-D matrix implementing F.interpolate(mode='bilinear',
    align_corners=False) (half-pixel centers, edge clamp)."""
    m = np.zeros((out_size, in_size), dtype=np.float32)
    scale = in_size / out_size
    for o in range(out_size):
        src = max((o + 0.5) * scale - 0.5, 0.0)
        i0 = min(int(np.floor(src)), in_size - 1)
        lam = src - i0
        i1 = min(i0 + 1, in_size - 1)
        m[o, i0] += 1.0 - lam
        m[o, i1] += lam
    return m


def _upsample_matrix() -> np.ndarray:
    m = _bilinear_matrix(H, PH)                        # (14, 7)
    return np.kron(m, m).T.astype(np.float32)          # (49, 196)


def _selection_matrices():
    """sel_sum: (196, 49) sums the 4 members of each 2x2 patch.
    sel_max : (196, 4*128) one-hot picks, member k in lanes [k*128, k*128+49)."""
    sel_sum = np.zeros((H * W, PH * PW), dtype=np.float32)
    sel_max = np.zeros((H * W, 4 * _MAX_LANE_STRIDE), dtype=np.float32)
    for k, off in enumerate((0, 1, W, W + 1)):
        for i in range(PH):
            for j in range(PW):
                r = 2 * i * W + 2 * j + off
                c = i * PW + j
                sel_sum[r, c] += 1.0
                sel_max[r, k * _MAX_LANE_STRIDE + c] = 1.0
    return sel_sum, sel_max


_SEL_SUM_NP, _SEL_MAX_NP = _selection_matrices()
_WT_NP = _upsample_matrix()


def la_kernel(x_ref, selm_ref, selx_ref, wt_ref, pvec_ref, scal_ref, out_ref):
    # x_ref    : (bt, nh, c_per, 196)  activations (VMEM, I/O dtype)
    # selm_ref : (196, 49)             summed one-hot 2x2-patch selection
    # selx_ref : (196, 512)            per-member one-hot picks in 128-lane slots
    # wt_ref   : (49, 196)             bilinear 7x7 -> 14x14 upsample matrix
    # pvec_ref : (nh, 3)               columns = [f1.weight, f2.weight, f2.bias]
    # scal_ref : SMEM (4,)             [f1.bias, v.w[mean], v.w[max], v.bias]
    bt, nh, c_per, spat = x_ref.shape
    npatch = wt_ref.shape[0]
    stride = selx_ref.shape[1] // 4
    n = bt * nh

    # All math in f32 regardless of the I/O dtype (bf16-safe).
    xf = x_ref[...].astype(jnp.float32)
    xs = jnp.sum(xf, axis=2).reshape(n, spat)       # channel sums  (n, 196)
    xm = jnp.max(xf, axis=2).reshape(n, spat)       # channel maxes (n, 196)

    # 2x2-patch mean: one summed one-hot matmul (MXU) + a scalar scale.
    means = jnp.dot(xs, selm_ref[...], preferred_element_type=jnp.float32)
    means = means * (1.0 / (4.0 * c_per))           # (n, 49)

    # 2x2-patch max: one packed one-hot matmul, then a 4-way elementwise max
    # over the 128-lane-aligned slots (no relayout).
    pk = jnp.dot(xm, selx_ref[...], preferred_element_type=jnp.float32)
    maxs = jnp.maximum(
        jnp.maximum(pk[:, 0:npatch], pk[:, stride:stride + npatch]),
        jnp.maximum(pk[:, 2 * stride:2 * stride + npatch],
                    pk[:, 3 * stride:3 * stride + npatch]))

    means = means.reshape(bt, nh, npatch)
    maxs = maxs.reshape(bt, nh, npatch)

    pv = pvec_ref[...]                              # (nh, 3)
    w1 = pv[:, 0:1].reshape(1, nh, 1)               # f1.weight  (nh -> 1)
    w2 = pv[:, 1:2].reshape(1, nh, 1)               # f2.weight  (1 -> nh)
    b2 = pv[:, 2:3].reshape(1, nh, 1)               # f2.bias
    b1 = scal_ref[0]
    wv_mean = scal_ref[1]
    wv_max = scal_ref[2]
    bv = scal_ref[3]

    def f1_relu_f2(s):                              # s: (bt, nh, 49)
        h = jnp.sum(s * w1, axis=1, keepdims=True) + b1   # 1x1 conv nh -> 1
        h = jnp.maximum(h, 0.0)                           # ReLU
        return h * w2 + b2                                # 1x1 conv 1 -> nh

    fus7 = wv_mean * f1_relu_f2(means) + wv_max * f1_relu_f2(maxs) + bv

    # bilinear 7x7 -> 14x14 upsample: one (n, 49) x (49, 196) MXU matmul.
    fus14 = jnp.dot(fus7.reshape(n, npatch), wt_ref[...],
                    preferred_element_type=jnp.float32)   # (n, 196)

    # numerically robust sigmoid via tanh (EUP); fused residual x*(1+sigmoid).
    sig = 0.5 * (jnp.tanh(0.5 * fus14) + 1.0)
    gate = (1.0 + sig).reshape(bt, nh, 1, spat)
    out_ref[...] = (x_ref[...].astype(jnp.float32) * gate).astype(out_ref.dtype)


def _pad2_bytes(rows, cols, itemsize=4):
    return (-(-rows // 8) * 8) * (-(-cols // 128) * 128) * itemsize


def _pick_bt(B, nh, c_per, spat, itemsize):
    lanes = -(-spat // 128) * 128
    subl = -(-c_per // 8) * 8
    per_elem = nh * subl * lanes * itemsize
    divisors = [d for d in range(1, B + 1) if B % d == 0]
    fits = [d for d in divisors if d * per_elem <= _BLOCK_BUDGET] or [1]
    bt = max(fits)
    # Prefer >= 4 balanced grid steps when that still leaves >= _MIN_BLOCK
    # blocks (keeps both v7x TensorCores fed + the DMA pipeline rolling); on
    # single-TC v5e/v6e fewer, bigger steps are fine, so never force a split
    # that would make blocks tiny.
    if B // bt < 4:
        pref = [d for d in fits if B // d >= 4 and d * per_elem >= _MIN_BLOCK]
        if not pref:
            pref = [d for d in fits if B // d >= 2 and d * per_elem >= _MIN_BLOCK]
        if pref:
            bt = max(pref)
    return bt, per_elem


def _la_forward_impl(x, params):
    f1_w, f1_b, f2_w, f2_b, v_w, v_b = params
    B, C, h, w = x.shape
    if (h, w) != (H, W) or C % NUM_HEADS != 0:
        raise ValueError("LA expects (B, 16*k, 14, 14) inputs")
    nh = NUM_HEADS
    c_per = C // nh
    spat = h * w
    npatch = PH * PW

    x4 = x.reshape(B, nh, c_per, spat)               # free reshape of NCHW

    sel_sum = jnp.asarray(_SEL_SUM_NP)               # (196, 49)
    sel_max = jnp.asarray(_SEL_MAX_NP)               # (196, 512)
    wt = jnp.asarray(_WT_NP)                         # (49, 196)
    pvec = jnp.stack(
        [f1_w.reshape(nh), f2_w.reshape(nh), f2_b.reshape(nh)], axis=1
    ).astype(jnp.float32)                            # (nh, 3)
    scal = jnp.stack(
        [f1_b[0], v_w[0, 0, 0, 0], v_w[0, 1, 0, 0], v_b[0]]).astype(jnp.float32)

    itemsize = np.dtype(x.dtype).itemsize
    bt, per_elem = _pick_bt(B, nh, c_per, spat, itemsize)
    block_bytes = bt * per_elem

    # 2x in + 2x out blocks + double-buffered constants + headroom for the
    # in-kernel f32 temporaries / compiler scratch.
    const_bytes = (_pad2_bytes(spat, npatch)
                   + _pad2_bytes(spat, 4 * _MAX_LANE_STRIDE)
                   + _pad2_bytes(npatch, spat)
                   + _pad2_bytes(nh, 3))
    vmem_limit = int(min(_VMEM_CEIL,
                         max(_VMEM_FLOOR,
                             5 * block_bytes + 2 * const_bytes + (8 << 20))))

    out4 = pl.pallas_call(
        la_kernel,
        out_shape=jax.ShapeDtypeStruct((B, nh, c_per, spat), x.dtype),
        grid=(B // bt,),
        in_specs=[
            pl.BlockSpec((bt, nh, c_per, spat), lambda i: (i, 0, 0, 0)),
            pl.BlockSpec((spat, npatch), lambda i: (0, 0)),
            pl.BlockSpec((spat, 4 * _MAX_LANE_STRIDE), lambda i: (0, 0)),
            pl.BlockSpec((npatch, spat), lambda i: (0, 0)),
            pl.BlockSpec((nh, 3), lambda i: (0, 0)),
            pl.BlockSpec(memory_space=pltpu.MemorySpace.SMEM),
        ],
        out_specs=pl.BlockSpec((bt, nh, c_per, spat), lambda i: (i, 0, 0, 0)),
        compiler_params=pltpu.CompilerParams(
            dimension_semantics=("parallel",),
            vmem_limit_bytes=vmem_limit),
    )(x4, sel_sum, sel_max, wt, pvec, scal)

    # free reshape back to NCHW
    return out4.reshape(B, C, h, w)


la_forward = jax.jit(_la_forward_impl)


def la_reference(x, params):
    """Pure-JAX reference mirroring PyTorch LA.forward.  The bilinear upsample
    uses jax.image.resize (half-pixel, align_corners=False semantics), i.e. it
    does NOT reuse the kernel's precomputed matrix -> independent check."""
    f1_w, f1_b, f2_w, f2_b, v_w, v_b = params
    B, C, h, w = x.shape
    nh = NUM_HEADS
    c_per = C // nh
    xr = x.reshape(B, nh, c_per, PH, 2, PW, 2)
    xp = xr.transpose(0, 1, 3, 5, 2, 4, 6).reshape(B, nh, PH, PW, c_per * 4)
    means = xp.mean(-1)                              # (B, nh, 7, 7)
    maxs = xp.max(-1)

    w1 = f1_w.reshape(1, nh, 1, 1)
    w2 = f2_w.reshape(1, nh, 1, 1)
    b2 = f2_b.reshape(1, nh, 1, 1)

    def se(s):
        hh = jnp.maximum(jnp.sum(s * w1, axis=1, keepdims=True) + f1_b[0], 0.0)
        return hh * w2 + b2

    fus = v_w[0, 0, 0, 0] * se(means) + v_w[0, 1, 0, 0] * se(maxs) + v_b[0]
    fus14 = jax.image.resize(fus, (B, nh, H, W), method="bilinear")
    sig = jax.nn.sigmoid(fus14)
    x5 = x.reshape(B, nh, c_per, H, W)
    out = x5 * sig[:, :, None, :, :] + x5
    return out.reshape(B, C, h, w)


if __name__ == "__main__":
    key = jax.random.PRNGKey(0)
    kx, k1, k2, k3, k4, k5, k6 = jax.random.split(key, 7)
    # Spatial size is fixed at 14x14 by the module; channels must be a multiple
    # of num_heads=16.  B=8, C=128 -> c_per=8 keeps sublane tiles dense and the
    # tiling heuristic yields 4 balanced grid steps.
    B, C = 8, 128
    x = jax.random.normal(kx, (B, C, H, W), jnp.float32)
    params = (
        jax.random.normal(k1, (1, NUM_HEADS, 1, 1), jnp.float32) * 0.2,  # f1.weight
        jax.random.normal(k2, (1,), jnp.float32) * 0.1,                  # f1.bias
        jax.random.normal(k3, (NUM_HEADS, 1, 1, 1), jnp.float32) * 0.2,  # f2.weight
        jax.random.normal(k4, (NUM_HEADS,), jnp.float32) * 0.1,          # f2.bias
        jax.random.normal(k5, (1, 2, 1, 1), jnp.float32) * 0.2,          # v.weight
        jax.random.normal(k6, (1,), jnp.float32) * 0.1,                  # v.bias
    )

    out = jax.block_until_ready(la_forward(x, params))
    ref = jax.block_until_ready(la_reference(x, params))
    assert out.shape == x.shape
    max_err = float(jnp.max(jnp.abs(out - ref)))
    assert jnp.allclose(out, ref, atol=1e-4, rtol=1e-4), max_err
    print("KERNEL_OK")
</pallas_src>

<mosaic_0001>
module attributes {stable_mosaic.version = 11 : i64} {
  func.func @la_kernel(%arg0: i32, %arg1: memref<2x16x8x196xf32, #tpu.memory_space<vmem>>, %arg2: memref<196x49xf32, #tpu.memory_space<vmem>>, %arg3: memref<196x512xf32, #tpu.memory_space<vmem>>, %arg4: memref<49x196xf32, #tpu.memory_space<vmem>>, %arg5: memref<16x3xf32, #tpu.memory_space<vmem>>, %arg6: memref<4xf32, #tpu.memory_space<smem>>, %arg7: memref<2x16x8x196xf32, #tpu.memory_space<vmem>>) attributes {dimension_semantics = [#tpu.dimension_semantics<parallel>], iteration_bounds = array<i64: 4>, scalar_prefetch = 0 : i64, scratch_operands = 0 : i64, tpu.core_type = #tpu.core_type<tc>, window_params = [{transform_indices = @transform_0, window_bounds = array<i64: 2, 16, 8, 196>}, {pipeline_mode = #tpu.pipeline_mode<synchronous>, transform_indices = @transform_1, window_bounds = array<i64: 196, 49>}, {pipeline_mode = #tpu.pipeline_mode<synchronous>, transform_indices = @transform_2, window_bounds = array<i64: 196, 512>}, {pipeline_mode = #tpu.pipeline_mode<synchronous>, transform_indices = @transform_3, window_bounds = array<i64: 49, 196>}, {pipeline_mode = #tpu.pipeline_mode<synchronous>, transform_indices = @transform_4, window_bounds = array<i64: 16, 3>}, {transform_indices = @transform_5, window_bounds = array<i64: 4>}, {transform_indices = @transform_6, window_bounds = array<i64: 2, 16, 8, 196>}]} {
    %c0 = arith.constant 0 : index
    %c0_0 = arith.constant 0 : index
    %c0_1 = arith.constant 0 : index
    %c0_2 = arith.constant 0 : index
    %0 = vector.load %arg1[%c0, %c0_0, %c0_1, %c0_2] : memref<2x16x8x196xf32, #tpu.memory_space<vmem>>, vector<2x16x8x196xf32>
    %cst = arith.constant dense<0.000000e+00> : vector<2x16x196xf32>
    %1 = vector.multi_reduction <add>, %0, %cst [2] : vector<2x16x8x196xf32> to vector<2x16x196xf32>
    %2 = vector.shape_cast %1 : vector<2x16x196xf32> to vector<32x196xf32>
    %cst_3 = arith.constant dense<0xFF800000> : vector<2x16x196xf32>
    %3 = vector.multi_reduction <maximumf>, %0, %cst_3 [2] : vector<2x16x8x196xf32> to vector<2x16x196xf32>
    %4 = vector.shape_cast %3 : vector<2x16x196xf32> to vector<32x196xf32>
    %c0_4 = arith.constant 0 : index
    %c0_5 = arith.constant 0 : index
    %5 = vector.load %arg2[%c0_4, %c0_5] : memref<196x49xf32, #tpu.memory_space<vmem>>, vector<196x49xf32>
    %cst_6 = arith.constant dense<0.000000e+00> : vector<32x49xf32>
    %6 = tpu.matmul %2, %5, %cst_6 {dimension_numbers = #tpu.dot_dimension_numbers<[1], [0], [0], [1], [0, 0, 1, 1], [], []>} : vector<32x196xf32>, vector<196x49xf32>, vector<32x49xf32> -> vector<32x49xf32>
    %cst_7 = arith.constant 3.125000e-02 : f32
    %7 = vector.broadcast %cst_7 : f32 to vector<32x49xf32>
    %8 = arith.mulf %6, %7 : vector<32x49xf32>
    %c0_8 = arith.constant 0 : index
    %c0_9 = arith.constant 0 : index
    %9 = vector.load %arg3[%c0_8, %c0_9] : memref<196x512xf32, #tpu.memory_space<vmem>>, vector<196x512xf32>
    %cst_10 = arith.constant dense<0.000000e+00> : vector<32x512xf32>
    %10 = tpu.matmul %4, %9, %cst_10 {dimension_numbers = #tpu.dot_dimension_numbers<[1], [0], [0], [1], [0, 0, 1, 1], [], []>} : vector<32x196xf32>, vector<196x512xf32>, vector<32x512xf32> -> vector<32x512xf32>
    %11 = vector.extract_strided_slice %10 {offsets = [0, 0], sizes = [32, 49], strides = [1, 1]} : vector<32x512xf32> to vector<32x49xf32>
    %12 = vector.extract_strided_slice %10 {offsets = [0, 128], sizes = [32, 49], strides = [1, 1]} : vector<32x512xf32> to vector<32x49xf32>
    %13 = arith.maximumf %11, %12 : vector<32x49xf32>
    %14 = vector.extract_strided_slice %10 {offsets = [0, 256], sizes = [32, 49], strides = [1, 1]} : vector<32x512xf32> to vector<32x49xf32>
    %15 = vector.extract_strided_slice %10 {offsets = [0, 384], sizes = [32, 49], strides = [1, 1]} : vector<32x512xf32> to vector<32x49xf32>
    %16 = arith.maximumf %14, %15 : vector<32x49xf32>
    %17 = arith.maximumf %13, %16 : vector<32x49xf32>
    %18 = vector.shape_cast %8 : vector<32x49xf32> to vector<2x16x49xf32>
    %19 = vector.shape_cast %17 : vector<32x49xf32> to vector<2x16x49xf32>
    %c0_11 = arith.constant 0 : index
    %c0_12 = arith.constant 0 : index
    %20 = vector.load %arg5[%c0_11, %c0_12] : memref<16x3xf32, #tpu.memory_space<vmem>>, vector<16x3xf32>
    %21 = vector.extract_strided_slice %20 {offsets = [0, 0], sizes = [16, 1], strides = [1, 1]} : vector<16x3xf32> to vector<16x1xf32>
    %22 = vector.shape_cast %21 : vector<16x1xf32> to vector<1x16x1xf32>
    %23 = vector.extract_strided_slice %20 {offsets = [0, 1], sizes = [16, 1], strides = [1, 1]} : vector<16x3xf32> to vector<16x1xf32>
    %24 = vector.shape_cast %23 : vector<16x1xf32> to vector<1x16x1xf32>
    %25 = vector.extract_strided_slice %20 {offsets = [0, 2], sizes = [16, 1], strides = [1, 1]} : vector<16x3xf32> to vector<16x1xf32>
    %26 = vector.shape_cast %25 : vector<16x1xf32> to vector<1x16x1xf32>
    %c0_13 = arith.constant 0 : index
    %27 = memref.load %arg6[%c0_13] : memref<4xf32, #tpu.memory_space<smem>>
    %c1 = arith.constant 1 : index
    %28 = memref.load %arg6[%c1] : memref<4xf32, #tpu.memory_space<smem>>
    %c2 = arith.constant 2 : index
    %29 = memref.load %arg6[%c2] : memref<4xf32, #tpu.memory_space<smem>>
    %c3 = arith.constant 3 : index
    %30 = memref.load %arg6[%c3] : memref<4xf32, #tpu.memory_space<smem>>
    %31 = vector.broadcast %22 : vector<1x16x1xf32> to vector<2x16x49xf32>
    %32 = arith.mulf %18, %31 : vector<2x16x49xf32>
    %cst_14 = arith.constant dense<0.000000e+00> : vector<2x49xf32>
    %33 = vector.multi_reduction <add>, %32, %cst_14 [1] : vector<2x16x49xf32> to vector<2x49xf32>
    %34 = vector.shape_cast %33 : vector<2x49xf32> to vector<2x1x49xf32>
    %35 = vector.broadcast %27 : f32 to vector<2x1x49xf32>
    %36 = arith.addf %34, %35 : vector<2x1x49xf32>
    %cst_15 = arith.constant 0.000000e+00 : f32
    %37 = vector.broadcast %cst_15 : f32 to vector<2x1x49xf32>
    %38 = arith.maximumf %36, %37 : vector<2x1x49xf32>
    %39 = vector.broadcast %38 : vector<2x1x49xf32> to vector<2x16x49xf32>
    %40 = vector.broadcast %24 : vector<1x16x1xf32> to vector<2x16x49xf32>
    %41 = arith.mulf %39, %40 : vector<2x16x49xf32>
    %42 = vector.broadcast %26 : vector<1x16x1xf32> to vector<2x16x49xf32>
    %43 = arith.addf %41, %42 : vector<2x16x49xf32>
    %44 = vector.broadcast %28 : f32 to vector<2x16x49xf32>
    %45 = arith.mulf %44, %43 : vector<2x16x49xf32>
    %46 = vector.broadcast %22 : vector<1x16x1xf32> to vector<2x16x49xf32>
    %47 = arith.mulf %19, %46 : vector<2x16x49xf32>
    %cst_16 = arith.constant dense<0.000000e+00> : vector<2x49xf32>
    %48 = vector.multi_reduction <add>, %47, %cst_16 [1] : vector<2x16x49xf32> to vector<2x49xf32>
    %49 = vector.shape_cast %48 : vector<2x49xf32> to vector<2x1x49xf32>
    %50 = vector.broadcast %27 : f32 to vector<2x1x49xf32>
    %51 = arith.addf %49, %50 : vector<2x1x49xf32>
    %cst_17 = arith.constant 0.000000e+00 : f32
    %52 = vector.broadcast %cst_17 : f32 to vector<2x1x49xf32>
    %53 = arith.maximumf %51, %52 : vector<2x1x49xf32>
    %54 = vector.broadcast %53 : vector<2x1x49xf32> to vector<2x16x49xf32>
    %55 = vector.broadcast %24 : vector<1x16x1xf32> to vector<2x16x49xf32>
    %56 = arith.mulf %54, %55 : vector<2x16x49xf32>
    %57 = vector.broadcast %26 : vector<1x16x1xf32> to vector<2x16x49xf32>
    %58 = arith.addf %56, %57 : vector<2x16x49xf32>
    %59 = vector.broadcast %29 : f32 to vector<2x16x49xf32>
    %60 = arith.mulf %59, %58 : vector<2x16x49xf32>
    %61 = arith.addf %45, %60 : vector<2x16x49xf32>
    %62 = vector.broadcast %30 : f32 to vector<2x16x49xf32>
    %63 = arith.addf %61, %62 : vector<2x16x49xf32>
    %64 = vector.shape_cast %63 : vector<2x16x49xf32> to vector<32x49xf32>
    %c0_18 = arith.constant 0 : index
    %c0_19 = arith.constant 0 : index
    %65 = vector.load %arg4[%c0_18, %c0_19] : memref<49x196xf32, #tpu.memory_space<vmem>>, vector<49x196xf32>
    %cst_20 = arith.constant dense<0.000000e+00> : vector<32x196xf32>
    %66 = tpu.matmul %64, %65, %cst_20 {dimension_numbers = #tpu.dot_dimension_numbers<[1], [0], [0], [1], [0, 0, 1, 1], [], []>} : vector<32x49xf32>, vector<49x196xf32>, vector<32x196xf32> -> vector<32x196xf32>
    %cst_21 = arith.constant 5.000000e-01 : f32
    %67 = vector.broadcast %cst_21 : f32 to vector<32x196xf32>
    %68 = arith.mulf %67, %66 : vector<32x196xf32>
    %69 = math.tanh %68 : vector<32x196xf32>
    %cst_22 = arith.constant 1.000000e+00 : f32
    %70 = vector.broadcast %cst_22 : f32 to vector<32x196xf32>
    %71 = arith.addf %69, %70 : vector<32x196xf32>
    %cst_23 = arith.constant 5.000000e-01 : f32
    %72 = vector.broadcast %cst_23 : f32 to vector<32x196xf32>
    %73 = arith.mulf %72, %71 : vector<32x196xf32>
    %cst_24 = arith.constant 1.000000e+00 : f32
    %74 = vector.broadcast %cst_24 : f32 to vector<32x196xf32>
    %75 = arith.addf %74, %73 : vector<32x196xf32>
    %76 = vector.shape_cast %75 : vector<32x196xf32> to vector<2x16x1x196xf32>
    %c0_25 = arith.constant 0 : index
    %c0_26 = arith.constant 0 : index
    %c0_27 = arith.constant 0 : index
    %c0_28 = arith.constant 0 : index
    %77 = vector.load %arg1[%c0_25, %c0_26, %c0_27, %c0_28] : memref<2x16x8x196xf32, #tpu.memory_space<vmem>>, vector<2x16x8x196xf32>
    %78 = vector.broadcast %76 : vector<2x16x1x196xf32> to vector<2x16x8x196xf32>
    %79 = arith.mulf %77, %78 : vector<2x16x8x196xf32>
    %c0_29 = arith.constant 0 : index
    %c0_30 = arith.constant 0 : index
    %c0_31 = arith.constant 0 : index
    %c0_32 = arith.constant 0 : index
    %80 = vector.load %arg7[%c0_29, %c0_30, %c0_31, %c0_32] : memref<2x16x8x196xf32, #tpu.memory_space<vmem>>, vector<2x16x8x196xf32>
    tpu.vector_store %arg7[%c0_29, %c0_30, %c0_31, %c0_32], %79 {strides = array<i32>} : memref<2x16x8x196xf32, #tpu.memory_space<vmem>>, vector<2x16x8x196xf32>,
    return
  }
  func.func @transform_0(%arg0: i32) -> (i32, i32, i32, i32) {
    %c0_i32 = arith.constant 0 : i32
    %c0_i32_0 = arith.constant 0 : i32
    %c0_i32_1 = arith.constant 0 : i32
    %c0_i32_2 = arith.constant 0 : i32
    return %arg0, %c0_i32, %c0_i32_0, %c0_i32_1 : i32, i32, i32, i32
  }
  func.func @transform_1(%arg0: i32) -> (i32, i32) {
    %c0_i32 = arith.constant 0 : i32
    %c0_i32_0 = arith.constant 0 : i32
    %c0_i32_1 = arith.constant 0 : i32
    return %c0_i32, %c0_i32_0 : i32, i32
  }
  func.func @transform_2(%arg0: i32) -> (i32, i32) {
    %c0_i32 = arith.constant 0 : i32
    %c0_i32_0 = arith.constant 0 : i32
    %c0_i32_1 = arith.constant 0 : i32
    return %c0_i32, %c0_i32_0 : i32, i32
  }
  func.func @transform_3(%arg0: i32) -> (i32, i32) {
    %c0_i32 = arith.constant 0 : i32
    %c0_i32_0 = arith.constant 0 : i32
    %c0_i32_1 = arith.constant 0 : i32
    return %c0_i32, %c0_i32_0 : i32, i32
  }
  func.func @transform_4(%arg0: i32) -> (i32, i32) {
    %c0_i32 = arith.constant 0 : i32
    %c0_i32_0 = arith.constant 0 : i32
    %c0_i32_1 = arith.constant 0 : i32
    return %c0_i32, %c0_i32_0 : i32, i32
  }
  func.func @transform_5(%arg0: i32) -> i32 {
    %c0_i32 = arith.constant 0 : i32
    %c0_i32_0 = arith.constant 0 : i32
    return %c0_i32 : i32
  }
  func.func @transform_6(%arg0: i32) -> (i32, i32, i32, i32) {
    %c0_i32 = arith.constant 0 : i32
    %c0_i32_0 = arith.constant 0 : i32
    %c0_i32_1 = arith.constant 0 : i32
    %c0_i32_2 = arith.constant 0 : i32
    return %arg0, %c0_i32, %c0_i32_0, %c0_i32_1 : i32, i32, i32, i32
  }
}

</mosaic_0001>

<bundles_post_ra>
// kernel: _la_forward_impl.1
= control target key start
LH: loop header
LB: loop body
LE: loop exit
PB: predicated region body
PF: predicated region fallthrough
CT: control target
= control target key end

     0   :  { %11 = vsyncpa [#allocation3], 0  ;;  %s3300_s21 = smov 0   ;;  %s4989_s0 = inlined_call_operand.vmem [shape: f32[8,16,8,196], index: 0, kind: input, shape index: {}]   ;;  %s4990_s1 = inlined_call_operand.vmem [shape: f32[196,49], index: 1, kind: input, shape index: {}]   ;;  %s4991_s2 = inlined_call_operand.vmem [shape: f32[196,512], index: 2, kind: input, shape index: {}]   ;;  %s4992_s3 = inlined_call_operand.vmem [shape: f32[49,196], index: 3, kind: input, shape index: {}]   ;;  %s4993_s4 = inlined_call_operand.vmem [shape: f32[16,3], index: 4, kind: input, shape index: {}]   ;;  %s4994_s5 = inlined_call_operand.vmem [shape: f32[4], index: 5, kind: input, shape index: {}]   ;;  %s4995_s6 = inlined_call_operand.vmem [shape: f32[8,16,8,196], index: 6, kind: output, shape index: {}]  }
   0x1 LB: > { %s2871_s22 = sadd.s32 4294967295, %s3256_s21   ;;  %p2873_p0 = scmp.ge.s32.totalorder %s3256_s21, 1  ;;  %s3256_s21 = sphi %s3300_s21, %s17_s21  }
   0x2   : > { %p179_p1 = scmp.lt.s32.totalorder %s3256_s21, 5  ;;  %s204_s25 = sshll.u32 %s4994_s5, 4  ;;  %s205_s25 = int_to_ptr.vmem [resolvable:$true] %s204_s25 }
   0x3   : > { %p3317_p3 = scmp.eq.s32.totalorder %s2871_s22, 0  ;;  %s3231_s28 = scalar_lea.vmem %s205_s25, 16 }
   0x4   : > { %p3311_p2 = pnand %p2873_p0, %p179_p1  ;;  %p3232_p6 = scmp.ne.s32.totalorder %s205_s25, %s3231_s28 }
   0x5   : > { %p3239_p10 = scmp.lt.s32.totalorder %s205_s25, %s205_s25  ;;  %p3240_p11 = scmp.lt.s32.totalorder %s3231_s28, %s3231_s28 }
   0x6   : > { %p3062_p4 = pneg %p3311_p2 }
   0x7   : > { %p3241_p12 = por %p3240_p11, %p3239_p10 }
   0x8   : > { %p3063_p5 = pnand %p3317_p3, %p3062_p4 }
   0xa   : > { %p3233_p7 = pneg %p3063_p5 }
   0xc   : > { %p3234_p8 = pnand %p3233_p7, %p3232_p6 }
   0xe   : > { %p3235_p9 = pneg %p3234_p8 }
  0x10   : > { %p3242_p13 = pnand %p3241_p12, %p3235_p9 }
  0x12   : > { %3245 = shalt.err (!%p3242_p13)
}
  0x13   : > { %s3258_s29 = smov [#allocation2]   ;;  %227 = sbr.rel (%p3311_p2) target bundleno = 809 (0x329), region = 44 }
  0x14   : > { %3065 = dma.vmem_to_smem (!%p3063_p5), %s205_s25, 16, %s3258_s29, [#allocation3]  }
  0x1a   : > { %3251 = dma.done.wait (%p3317_p3), [#allocation3], 16  }
  0x1b   : > { %3253 = vsyncadd (%p3317_p3), [#allocation3], 4294967280 }
  0x1c   : > { %233 = sfence }
  0x1d   : > { %v1171_v0 = vld [vmem:[%s4990_s1] sm:$0xff]  ;;  %v1172_v1 = vld [vmem:[%s4990_s1 + $0x8] sm:$0xff]  ;;  %v1173_v2 = vld [vmem:[%s4990_s1 + $0x10] sm:$0xff]  ;;  %v3259_v3 = vmov 0.0|0.0   ;;  %s2878_s14 = sshll.u32 %s2871_s22, 1  ;;  %vm344_vm0 = vcmask 556032  }
  0x1e   : > { %2914 = vmatprep.subr.bf16.mxu0 %v3259_v3  ;;  %v2915_v4 = vpack.c.bf16 %v1172_v1, %v1171_v0  ;;  %v1174_v5 = vld [vmem:[%s4990_s1 + $0x18] sm:$0xff]  ;;  %v1175_v6 = vld [vmem:[%s4990_s1 + $0x20] sm:$0xff]  ;;  %v1176_v7 = vld [vmem:[%s4990_s1 + $0x28] sm:$0xff]  ;;  %p261_p0 = scmp.lt.s32.totalorder %s2878_s14, 7  ;;  %vm1260_vm1 = vcmask 1041409   ;;  %vm1262_vm2 = vcmask 1042434  }
  0x1f   : > { %v3355_v8 = vld [vmem:[%s4990_s1 + $0x30] sm:$0xff]  ;;  %v3360_v9 = vld [vmem:[%s4990_s1 + $0x38] sm:$0xff]  ;;  %v3365_v10 = vld [vmem:[%s4990_s1 + $0x40] sm:$0xff]  ;;  %v2918_v11 = vpack.c.bf16 %v1174_v5, %v1173_v2  ;;  %v2921_v24 = vpack.c.bf16 %v1176_v7, %v1175_v6  ;;  %vm1264_vm3 = vcmask 1043459   ;;  %vm1266_vm4 = vcmask 1044484   ;;  %s1864_s7 = sld [smem:[#allocation2]] }
  0x20   : > { %2916 = vmatpush1.bf16.msra.mxu0 %v2915_v4  ;;  %v3370_v12 = vld [vmem:[%s4990_s1 + $0x48] sm:$0xff]  ;;  %v3375_v13 = vld [vmem:[%s4990_s1 + $0x50] sm:$0xff]  ;;  %v3380_v14 = vld [vmem:[%s4990_s1 + $0x58] sm:$0xff]  ;;  %s5086_s14 = smov (!%p261_p0, %s2878_s14), 7  ;;  %v2924_v25 = vpack.c.bf16 %v3360_v9, %v3355_v8  ;;  %vm1268_vm5 = vcmask 1045509   ;;  %vm1270_vm6 = vcmask 1046534  }
  0x21   : > { %2917 = vmatprep.subr.bf16.mxu0 %v3259_v3  ;;  %v3386_v15 = vld [vmem:[%s4990_s1 + $0x60] sm:$0xff]  ;;  %v3391_v16 = vld [vmem:[%s4990_s1 + $0x68] sm:$0xff]  ;;  %v3396_v17 = vld [vmem:[%s4990_s1 + $0x70] sm:$0xff]  ;;  %s2912_s28 = sshll.u32 %s5086_s14, 8  ;;  %v2927_v26 = vpack.c.bf16 %v3370_v12, %v3365_v10  ;;  %v2930_v27 = vpack.c.bf16 %v3380_v14, %v3375_v13  ;;  %vm1272_vm7 = vcmask 1047559   ;;  %vm1335_vm8 = vcmask 1043456  }
  0x22   : > { %v3403_v18 = vld [vmem:[%s4990_s1 + $0x78] sm:$0xff]  ;;  %v3408_v19 = vld [vmem:[%s4990_s1 + $0x80] sm:$0xff]  ;;  %v3413_v20 = vld [vmem:[%s4990_s1 + $0x88] sm:$0xff]  ;;  %s3457_s13 = scalar_lea.vmem %s4989_s0, %s2912_s28  ;;  %v2933_v31 = vpack.c.bf16 %v3391_v16, %v3386_v15  ;;  %vm2009_vm9 = vcmask 1040384   ;;  %vm1882_vm10 = vcmask 400384   ;;  %s2901_s8 = sld [smem:[#allocation2 + $0x1]] }
  0x23   : > { %v3418_v21 = vld [vmem:[%s4990_s1 + $0x90] sm:$0xff]  ;;  %v3423_v22 = vld [vmem:[%s4990_s1 + $0x98] sm:$0xff]  ;;  %v3428_v23 = vld [vmem:[%s4990_s1 + $0xa0] sm:$0xff]  ;;  %v2936_v32 = vpack.c.bf16 %v3403_v18, %v3396_v17  ;;  %v2939_v33 = vpack.c.bf16 %v3413_v20, %v3408_v19  ;;  %s2902_s9 = sld [smem:[#allocation2 + $0x2]]  ;;  %s2903_s10 = sld [smem:[#allocation2 + $0x3]] }
  0x24   : > { %2919 = vmatpush1.bf16.msra.mxu0 %v2918_v11  ;;  %v3440_v28 = vld [vmem:[%s4990_s1 + $0xa8] sm:$0xff]  ;;  %v3445_v29 = vld [vmem:[%s4990_s1 + $0xb0] sm:$0xff]  ;;  %v3450_v30 = vld [vmem:[%s4990_s1 + $0xb8] sm:$0xff]  ;;  %v2942_v34 = vpack.c.bf16 %v3423_v22, %v3418_v21  ;;  %s4732_s15 = scalar_lea.vmem %s4995_s6, %s2912_s28 }
  0x25   : > { %2920 = vmatprep.subr.bf16.mxu0 %v3259_v3  ;;  %v275_v35 = vld [vmem:[%s3457_s13 + $0x8] sm:$0xff]  ;;  %v277_v36 = vld [vmem:[%s3457_s13 + $0x18] sm:$0xff]  ;;  %v2945_v37 = vpack.c.bf16 %v3440_v28, %v3428_v23  ;;  %v2948_v44 = vpack.c.bf16 %v3450_v30, %v3445_v29  ;;  %v1428_v17 = vld [vmem:[%s4991_s2] sm:$0xff] }
  0x26   : > { %v279_v38 = vld [vmem:[%s3457_s13 + $0x28] sm:$0xff]  ;;  %v281_v39 = vld [vmem:[%s3457_s13 + $0x38] sm:$0xff]  ;;  %v345_v41 = vsel %vm344_vm0, %v275_v35, 0.0  ;;  %v358_v42 = vsel %vm344_vm0, %v277_v36, 0.0  ;;  %v3478_v43 = vsel %vm344_vm0, %v275_v35, -inf }
  0x27   : > { %v283_v40 = vld [vmem:[%s3457_s13 + $0x48] sm:$0xff]  ;;  %v285_v45 = vld [vmem:[%s3457_s13 + $0x58] sm:$0xff]  ;;  %v346_v48 = vrot.slane %v345_v41, 4  ;;  %v359_v49 = vrot.slane %v358_v42, 4  ;;  %v371_v50 = vsel %vm344_vm0, %v279_v38, 0.0  ;;  %v384_v52 = vsel %vm344_vm0, %v281_v39, 0.0 }
  0x28   : > { %v287_v46 = vld [vmem:[%s3457_s13 + $0x68] sm:$0xff]  ;;  %v289_v47 = vld [vmem:[%s3457_s13 + $0x78] sm:$0xff]  ;;  %2922 = vmatpush1.bf16.msra.mxu0 %v2921_v24  ;;  %v372_v51 = vrot.slane %v371_v50, 4  ;;  %v397_v53 = vsel %vm344_vm0, %v283_v40, 0.0  ;;  %v410_v54 = vsel %vm344_vm0, %v285_v45, 0.0  ;;  %v385_v57 = vrot.slane %v384_v52, 4 }
  0x29   : > { %2923 = vmatprep.subr.bf16.mxu0 %v3259_v3  ;;  %v347_v55 = vadd.f32 %v346_v48, %v345_v41  ;;  %v360_v56 = vadd.f32 %v359_v49, %v358_v42  ;;  %v398_v58 = vrot.slane %v397_v53, 4  ;;  %v411_v60 = vrot.slane %v410_v54, 4  ;;  %v1429_v49 = vld [vmem:[%s4991_s2 + $0x8] sm:$0xff] }
  0x2a   : > { %v373_v59 = vadd.f32 %v372_v51, %v371_v50  ;;  %v423_v61 = vsel %vm344_vm0, %v287_v46, 0.0  ;;  %v436_v62 = vsel %vm344_vm0, %v289_v47, 0.0  ;;  %v386_v1 = vadd.f32 %v385_v57, %v384_v52  ;;  %v1433_v50 = vld [vmem:[%s4991_s2 + $0x28] sm:$0xff]  ;;  %v3507_v57 = vld [vmem:[%s3457_s13 + $0x10] sm:$0xff] }
  0x2b   : > { %v348_v63 = vrot.slane %v347_v55, 2  ;;  %v361_v0 = vrot.slane %v360_v56, 2  ;;  %v399_v2 = vadd.f32 %v398_v58, %v397_v53  ;;  %v412_v5 = vadd.f32 %v411_v60, %v410_v54  ;;  %v3510_v58 = vld [vmem:[%s3457_s13 + $0x20] sm:$0xff]  ;;  %v303_v22 = vld [vmem:[%s3457_s13 + $0xe8] sm:$0xff] }
  0x2c   : > { %2925 = vmatpush1.bf16.msra.mxu0 %v2924_v25  ;;  %v374_v4 = vrot.slane %v373_v59, 2  ;;  %v424_v6 = vrot.slane %v423_v61, 4  ;;  %v437_v7 = vrot.slane %v436_v62, 4  ;;  %v387_v11 = vrot.slane %v386_v1, 2  ;;  %v1437_v29 = vld [vmem:[%s4991_s2 + $0x48] sm:$0xff] }
  0x2d   : > { %2926 = vmatprep.subr.bf16.mxu0 %v3259_v3  ;;  %v349_v8 = vadd.f32 %v348_v63, %v347_v55  ;;  %v362_v9 = vadd.f32 %v361_v0, %v360_v56  ;;  %v400_v24 = vrot.slane %v399_v2, 2  ;;  %v413_v36 = vrot.slane %v412_v5, 2  ;;  %v3504_v56 = vld [vmem:[%s3457_s13] sm:$0xff]  ;;  %v3514_v63 = vld [vmem:[%s3457_s13 + $0x30] sm:$0xff]  ;;  %v1441_v30 = vld [vmem:[%s4991_s2 + $0x68] sm:$0xff] }
  0x2e   : > { %v375_v35 = vadd.f32 %v374_v4, %v373_v59  ;;  %v425_v38 = vadd.f32 %v424_v6, %v423_v61  ;;  %v438_v39 = vadd.f32 %v437_v7, %v436_v62  ;;  %v388_v25 = vadd.f32 %v387_v11, %v386_v1  ;;  %v3523_v6 = vld [vmem:[%s3457_s13 + $0x40] sm:$0xff]  ;;  %v3526_v7 = vld [vmem:[%s3457_s13 + $0x50] sm:$0xff] }
  0x2f   : > { %v350_v40 = vrot.slane %v349_v8, 1  ;;  %v363_v41 = vrot.slane %v362_v9, 1  ;;  %v401_v42 = vadd.f32 %v400_v24, %v399_v2  ;;  %v414_v46 = vadd.f32 %v413_v36, %v412_v5  ;;  %v3535_v36 = vld [vmem:[%s3457_s13 + $0x60] sm:$0xff] }
  0x30   : > { %2928 = vmatpush1.bf16.msra.mxu0 %v2927_v26  ;;  %v376_v45 = vrot.slane %v375_v35, 1  ;;  %v426_v47 = vrot.slane %v425_v38, 2  ;;  %v439_v48 = vrot.slane %v438_v39, 2  ;;  %v389_v26 = vrot.slane %v388_v25, 1 }
  0x31   : > { %2929 = vmatprep.subr.bf16.mxu0 %v3259_v3  ;;  %v351_v10 = vadd.f32 %v350_v40, %v349_v8  ;;  %v364_v12 = vadd.f32 %v363_v41, %v362_v9  ;;  %v402_v51 = vrot.slane %v401_v42, 1  ;;  %v415_v53 = vrot.slane %v414_v46, 1 }
  0x32   : > { %v377_v52 = vadd.f32 %v376_v45, %v375_v35  ;;  %v427_v54 = vadd.f32 %v426_v47, %v425_v38  ;;  %v440_v55 = vadd.f32 %v439_v48, %v438_v39  ;;  %v390_v59 = vadd.f32 %v389_v26, %v388_v25  ;;  %v3551_v25 = vld [vmem:[%s3457_s13 + $0x70] sm:$0xff] }
  0x33   : > { %v403_v60 = vadd.f32 %v402_v51, %v401_v42  ;;  %v1274_v61 = vsel %vm1260_vm1, %v364_v12, %v351_v10  ;;  %v2950_v62 = vpack.c.bf16 %v1433_v50, %v1429_v49  ;;  %v416_v0 = vadd.f32 %v415_v53, %v414_v46 }
  0x34   : > { %2931 = vmatpush1.bf16.msra.mxu0 %v2930_v27  ;;  %v428_v1 = vrot.slane %v427_v54, 1  ;;  %v441_v2 = vrot.slane %v440_v55, 1  ;;  %v1275_v4 = vsel %vm1262_vm2, %v377_v52, %v1274_v61  ;;  %v5013_v8 = vrot.slane %v3504_v56, 4 }
  0x35   : > { %2932 = vmatprep.subr.bf16.mxu0 %v3259_v3  ;;  %v1276_v5 = vsel %vm1264_vm3, %v390_v59, %v1275_v4  ;;  %2951 = vmatprep.subr.bf16.mxu1 %v2950_v62  ;;  %v5012_v13 = vrot.slane %v3507_v57, 4  ;;  %v5011_v14 = vrot.slane %v3510_v58, 4  ;;  %v5010_v24 = vrot.slane %v3514_v63, 4  ;;  %v1432_v4 = vld [vmem:[%s4991_s2 + $0x20] sm:$0xff] }
  0x36   : > { %v429_v27 = vadd.f32 %v428_v1, %v427_v54  ;;  %v442_v9 = vadd.f32 %v441_v2, %v440_v55  ;;  %v1277_v11 = vsel %vm1266_vm4, %v403_v60, %v1276_v5  ;;  %v339_v38 = vadd.f32 %v5013_v8, %v3504_v56  ;;  %v3588_v5 = vld [vmem:[%s4991_s2 + $0x18] sm:$0xff] }
  0x37   : > { %v1278_v35 = vsel %vm1268_vm5, %v416_v0, %v1277_v11  ;;  %v353_v39 = vadd.f32 %v5012_v13, %v3507_v57  ;;  %v366_v40 = vadd.f32 %v5011_v14, %v3510_v58  ;;  %v379_v42 = vadd.f32 %v5010_v24, %v3514_v63  ;;  %v3966_v24 = vld [vmem:[%s4991_s2 + $0x190] sm:$0xff] }
  0x38   : > { %2934 = vmatpush1.bf16.msra.mxu0 %v2933_v31  ;;  %v1279_v41 = vsel %vm1270_vm6, %v429_v27, %v1278_v35  ;;  %v5009_v45 = vrot.slane %v3523_v6, 4  ;;  %v5008_v46 = vrot.slane %v3526_v7, 4  ;;  %v340_v48 = vrot.slane %v339_v38, 2  ;;  %v3593_v27 = vld [vmem:[%s4991_s2 + $0x38] sm:$0xff]  ;;  %v3971_v14 = vld [vmem:[%s4991_s2 + $0x1b0] sm:$0xff] }
  0x39   : > { %2935 = vmatprep.subr.bf16.mxu0 %v3259_v3  ;;  %v1280_v47 = vsel %vm1272_vm7, %v442_v9, %v1279_v41  ;;  %v354_v49 = vrot.slane %v353_v39, 2  ;;  %v367_v15 = vrot.slane %v366_v40, 2  ;;  %v380_v16 = vrot.slane %v379_v42, 2 }
  0x3a   : > { %2885 = vmatprep.mubr.msk.f32.mxu0 %vm344_vm0, %v1280_v47  ;;  %v392_v31 = vadd.f32 %v5009_v45, %v3523_v6  ;;  %v405_v50 = vadd.f32 %v5008_v46, %v3526_v7  ;;  %v5007_v10 = vrot.slane %v3535_v36, 4  ;;  %v341_v12 = vadd.f32 %v340_v48, %v339_v38  ;;  %v3601_v47 = vld [vmem:[%s4991_s2 + $0x10] sm:$0xff]  ;;  %v3934_v46 = vld [vmem:[%s4991_s2 + $0x1a8] sm:$0xff] }
  0x3b   : > { %v355_v26 = vadd.f32 %v354_v49, %v353_v39  ;;  %v368_v51 = vadd.f32 %v367_v15, %v366_v40  ;;  %v5006_v52 = vrot.slane %v3551_v25, 4  ;;  %v381_v53 = vadd.f32 %v380_v16, %v379_v42  ;;  %v3606_v48 = vld [vmem:[%s4991_s2 + $0x30] sm:$0xff]  ;;  %v291_v49 = vld [vmem:[%s3457_s13 + $0x88] sm:$0xff]  ;;  %v293_v16 = vld [vmem:[%s3457_s13 + $0x98] sm:$0xff] }
  0x3c   : > { %2937 = vmatpush1.bf16.msra.mxu0 %v2936_v32  ;;  %v393_v54 = vrot.slane %v392_v31, 2  ;;  %v406_v55 = vrot.slane %v405_v50, 2  ;;  %v418_v59 = vadd.f32 %v5007_v10, %v3535_v36  ;;  %v342_v60 = vrot.slane %v341_v12, 1  ;;  %v3929_v10 = vld [vmem:[%s4991_s2 + $0x188] sm:$0xff] }
  0x3d   : > { %2938 = vmatprep.subr.bf16.mxu0 %v3259_v3  ;;  %v356_v61 = vrot.slane %v355_v26, 1  ;;  %v369_v62 = vrot.slane %v368_v51, 1  ;;  %v431_v0 = vadd.f32 %v5006_v52, %v3551_v25  ;;  %v382_v18 = vrot.slane %v381_v53, 1  ;;  %v3898_v52 = vld [vmem:[%s4991_s2 + $0x160] sm:$0xff] }
  0x3e   : > { %v394_v32 = vadd.f32 %v393_v54, %v392_v31  ;;  %v407_v1 = vadd.f32 %v406_v55, %v405_v50  ;;  %v419_v2 = vrot.slane %v418_v59, 2  ;;  %v343_v9 = vadd.f32 %v342_v60, %v341_v12 }
  0x3f   : > { %v357_v11 = vadd.f32 %v356_v61, %v355_v26  ;;  %v370_v35 = vadd.f32 %v369_v62, %v368_v51  ;;  %v432_v38 = vrot.slane %v431_v0, 2  ;;  %v383_v39 = vadd.f32 %v382_v18, %v381_v53  ;;  %v295_v51 = vld [vmem:[%s3457_s13 + $0xa8] sm:$0xff] }
  0x40   : > { %2940 = vmatpush1.bf16.msra.mxu0 %v2939_v33  ;;  %v395_v40 = vrot.slane %v394_v32, 1  ;;  %v408_v41 = vrot.slane %v407_v1, 1  ;;  %v420_v42 = vadd.f32 %v419_v2, %v418_v59  ;;  %v2952_v33 = vpack.c.bf16 %v1432_v4, %v1428_v17  ;;  %v297_v59 = vld [vmem:[%s3457_s13 + $0xb8] sm:$0xff] }
  0x41   : > { %2941 = vmatprep.subr.bf16.mxu0 %v3259_v3  ;;  %v433_v19 = vadd.f32 %v432_v38, %v431_v0  ;;  %v1261_v20 = vsel %vm1260_vm1, %v357_v11, %v343_v9  ;;  %v2998_v15 = vpack.c.bf16 %v3593_v27, %v3588_v5  ;;  %v3000_v55 = vpack.c.bf16 %v3606_v48, %v3601_v47  ;;  %v299_v0 = vld [vmem:[%s3457_s13 + $0xc8] sm:$0xff]  ;;  %v301_v2 = vld [vmem:[%s3457_s13 + $0xd8] sm:$0xff]  ;;  %v3676_v5 = vld [vmem:[%s3457_s13 + $0xb0] sm:$0xff] }
  0x42   : > { %v396_v31 = vadd.f32 %v395_v40, %v394_v32  ;;  %v409_v50 = vadd.f32 %v408_v41, %v407_v1  ;;  %v421_v12 = vrot.slane %v420_v42, 1  ;;  %v1263_v26 = vsel %vm1262_vm2, %v370_v35, %v1261_v20  ;;  %2953 = vmatpush1.bf16.msra.mxu1 %v2952_v33 }
  0x43   : > { %v434_v53 = vrot.slane %v433_v19, 1  ;;  %v1265_v54 = vsel %vm1264_vm3, %v383_v39, %v1263_v26  ;;  %v449_v60 = vsel %vm344_vm0, %v291_v49, 0.0  ;;  %v462_v18 = vsel %vm344_vm0, %v293_v16, 0.0 }
  0x44   : > { %2943 = vmatpush1.bf16.msra.mxu0 %v2942_v34  ;;  %v422_v61 = vadd.f32 %v421_v12, %v420_v42  ;;  %v1267_v62 = vsel %vm1266_vm4, %v396_v31, %v1265_v54  ;;  %v450_v17 = vrot.slane %v449_v60, 4  ;;  %v463_v4 = vrot.slane %v462_v18, 4  ;;  %v305_v42 = vld [vmem:[%s3457_s13 + $0xf8] sm:$0xff] }
  0x45   : > { %2944 = vmatprep.subr.bf16.mxu0 %v3259_v3  ;;  %v435_v32 = vadd.f32 %v434_v53, %v433_v19  ;;  %v1269_v1 = vsel %vm1268_vm5, %v409_v50, %v1267_v62  ;;  %v475_v9 = vsel %vm344_vm0, %v295_v51, 0.0  ;;  %v488_v35 = vsel %vm344_vm0, %v297_v59, 0.0 }
  0x46   : > { %v1271_v21 = vsel %vm1270_vm6, %v422_v61, %v1269_v1  ;;  %v451_v34 = vadd.f32 %v450_v17, %v449_v60  ;;  %v476_v11 = vrot.slane %v475_v9, 4  ;;  %v464_v39 = vadd.f32 %v463_v4, %v462_v18 }
  0x47   : > { %v1273_v38 = vsel %vm1272_vm7, %v435_v32, %v1271_v21  ;;  %v489_v40 = vrot.slane %v488_v35, 4  ;;  %v501_v41 = vsel %vm344_vm0, %v299_v0, 0.0  ;;  %v514_v33 = vsel %vm344_vm0, %v301_v2, 0.0 }
  0x48   : > { %2946 = vmatpush1.bf16.msra.mxu0 %v2945_v37  ;;  %v452_v49 = vrot.slane %v451_v34, 2  ;;  %v477_v19 = vadd.f32 %v476_v11, %v475_v9  ;;  %v502_v20 = vrot.slane %v501_v41, 4  ;;  %v465_v16 = vrot.slane %v464_v39, 2 }
  0x49   : > { %2947 = vmatprep.subr.bf16.mxu0 %v3259_v3  ;;  %v490_v31 = vadd.f32 %v489_v40, %v488_v35  ;;  %v515_v50 = vrot.slane %v514_v33, 4  ;;  %v527_v12 = vsel %vm344_vm0, %v303_v22, 0.0  ;;  %v540_v37 = vsel %vm344_vm0, %v305_v42, 0.0  ;;  %v1195_v3 = vld [vmem:[%s4990_s1 + $0xc0] sm:$0xf] }
  0x4a   : > { %v453_v26 = vadd.f32 %v452_v49, %v451_v34  ;;  %v478_v51 = vrot.slane %v477_v19, 2  ;;  %v503_v53 = vadd.f32 %v502_v20, %v501_v41  ;;  %v528_v54 = vrot.slane %v527_v12, 4 }
  0x4b   : > { %v466_v59 = vadd.f32 %v465_v16, %v464_v39  ;;  %v491_v23 = vrot.slane %v490_v31, 2  ;;  %v516_v28 = vadd.f32 %v515_v50, %v514_v33  ;;  %v4996_v17 = vmov 0.0   ;;  %v3658_v39 = vld [vmem:[%s3457_s13 + $0x80] sm:$0xff] }
  0x4c   : > { %2949 = vmatpush1.bf16.msra.mxu0 %v2948_v44  ;;  %v454_v60 = vrot.slane %v453_v26, 1  ;;  %v479_v61 = vadd.f32 %v478_v51, %v477_v19  ;;  %v504_v62 = vrot.slane %v503_v53, 2  ;;  %v529_v0 = vadd.f32 %v528_v54, %v527_v12  ;;  %v3662_v19 = vld [vmem:[%s3457_s13 + $0x90] sm:$0xff]  ;;  %v3669_v50 = vld [vmem:[%s3457_s13 + $0xa0] sm:$0xff] }
  0x4d   : > { %1387 = vmatprep.subr.mxu0 %v4996_v17  ;;  %v467_v18 = vrot.slane %v466_v59, 1  ;;  %v492_v32 = vadd.f32 %v491_v23, %v490_v31  ;;  %v517_v1 = vrot.slane %v516_v28, 2  ;;  %v541_v2 = vrot.slane %v540_v37, 4  ;;  %v3681_v54 = vld [vmem:[%s3457_s13 + $0xc0] sm:$0xff] }
  0x4e   : > { %v455_v44 = vadd.f32 %v454_v60, %v453_v26  ;;  %v480_v4 = vrot.slane %v479_v61, 1  ;;  %v505_v9 = vadd.f32 %v504_v62, %v503_v53  ;;  %v530_v21 = vrot.slane %v529_v0, 2  ;;  %v3694_v60 = vld [vmem:[%s3457_s13 + $0xe0] sm:$0xff] }
  0x4f   : > { %v468_v22 = vadd.f32 %v467_v18, %v466_v59  ;;  %v493_v34 = vrot.slane %v492_v32, 1  ;;  %v518_v11 = vadd.f32 %v517_v1, %v516_v28  ;;  %v542_v35 = vadd.f32 %v541_v2, %v540_v37  ;;  %5036 = vst [vmem:[#allocation5_spill] sm:$0xff] %v3694_v60 }
  0x50   : > { %2884 = vmatpush1.msk.msra.mxu0 %vm1335_vm8, %v1195_v3  ;;  %v481_v40 = vadd.f32 %v480_v4, %v479_v61  ;;  %v506_v41 = vrot.slane %v505_v9, 1  ;;  %v531_v42 = vadd.f32 %v530_v21, %v529_v0  ;;  %v2954_v49 = vpack.c.bf16 %v1441_v30, %v1437_v29  ;;  %v3710_v4 = vld [vmem:[%s3457_s13 + $0xf0] sm:$0xff] }
  0x51   : > { %1404 = vmatmul.mubr.f32.vlgmr.msra.gmra.mrb[0].mxu0 %v1273_v38  ;;  %2999 = vmatprep.subr.bf16.mxu0 %v2998_v15  ;;  %v494_v20 = vadd.f32 %v493_v34, %v492_v32  ;;  %v519_v33 = vrot.slane %v518_v11, 1  ;;  %v543_v16 = vrot.slane %v542_v35, 2  ;;  %v1288_v31 = vsel %vm1260_vm1, %v468_v22, %v455_v44  ;;  %5037 = vst [vmem:[#allocation6_spill] sm:$0xff] %v3710_v4 }
  0x52   : > { %3001 = vmatpush1.bf16.msra.mxu0 %v3000_v55  ;;  %v507_v12 = vadd.f32 %v506_v41, %v505_v9  ;;  %v532_v26 = vrot.slane %v531_v42, 1  ;;  %v1289_v38 = vsel %vm1262_vm2, %v481_v40, %v1288_v31  ;;  %2955 = vmatprep.subr.bf16.mxu1 %v2954_v49  ;;  %v5005_v27 = vrot.slane %v3658_v39, 4  ;;  %v3686_v55 = vld [vmem:[%s3457_s13 + $0xd0] sm:$0xff] }
  0x53   : > { %v520_v15 = vadd.f32 %v519_v33, %v518_v11  ;;  %v544_v51 = vadd.f32 %v543_v16, %v542_v35  ;;  %v1290_v53 = vsel %vm1264_vm3, %v494_v20, %v1289_v38  ;;  %v5004_v59 = vrot.slane %v3662_v19, 4  ;;  %v1436_v38 = vld [vmem:[%s4991_s2 + $0x40] sm:$0xff] }
  0x54   : > { %v533_v47 = vadd.f32 %v532_v26, %v531_v42  ;;  %v1291_v48 = vsel %vm1266_vm4, %v507_v12, %v1290_v53  ;;  %v444_v23 = vadd.f32 %v5005_v27, %v3658_v39  ;;  %v5003_v28 = vrot.slane %v3669_v50, 4  ;;  %v3893_v27 = vld [vmem:[%s4991_s2 + $0x140] sm:$0xff] }
  0x55   : > { %v545_v37 = vrot.slane %v544_v51, 1  ;;  %v1292_v3 = vsel %vm1268_vm5, %v520_v15, %v1291_v48  ;;  %v457_v61 = vadd.f32 %v5004_v59, %v3662_v19  ;;  %v5002_v62 = vrot.slane %v3676_v5, 4  ;;  %v1440_v15 = vld [vmem:[%s4991_s2 + $0x60] sm:$0xff] }
  0x56   : > { %v1293_v0 = vsel %vm1270_vm6, %v533_v47, %v1292_v3  ;;  %v445_v18 = vrot.slane %v444_v23, 2  ;;  %v470_v32 = vadd.f32 %v5003_v28, %v3669_v50  ;;  %v5001_v1 = vrot.slane %v3681_v54, 4  ;;  %v3740_v3 = vld [vmem:[%s4991_s2 + $0x50] sm:$0xff] }
  0x57   : > { %v546_v2 = vadd.f32 %v545_v37, %v544_v51  ;;  %v458_v29 = vrot.slane %v457_v61, 2  ;;  %v483_v30 = vadd.f32 %v5002_v62, %v3676_v5  ;;  %v5000_v44 = vrot.slane %v3686_v55, 4  ;;  %v1439_v51 = vld [vmem:[%s4991_s2 + $0x58] sm:$0xff]  ;;  %v3835_v62 = vld [vmem:[%s4991_s2 + $0x108] sm:$0xff] }
  0x58   : > { %v446_v9 = vadd.f32 %v445_v18, %v444_v23  ;;  %v471_v21 = vrot.slane %v470_v32, 2  ;;  %v496_v22 = vadd.f32 %v5001_v1, %v3681_v54  ;;  %v4999_v34 = vrot.slane %v3694_v60, 4  ;;  %v1443_v37 = vld [vmem:[%s4991_s2 + $0x78] sm:$0xff]  ;;  %v3830_v1 = vld [vmem:[%s4991_s2 + $0xf0] sm:$0xff] }
  0x59   : > { %v1294_v11 = vsel %vm1272_vm7, %v546_v2, %v1293_v0  ;;  %v459_v35 = vadd.f32 %v458_v29, %v457_v61  ;;  %v484_v40 = vrot.slane %v483_v30, 2  ;;  %v509_v41 = vadd.f32 %v5000_v44, %v3686_v55  ;;  %v3745_v61 = vld [vmem:[%s4991_s2 + $0x70] sm:$0xff]  ;;  %v3753_v29 = vld [vmem:[%s4991_s2 + $0x88] sm:$0xff] }
  0x5a   : > { %2886 = vmatprep.mubr.msk.f32.mxu0 %vm344_vm0, %v1294_v11  ;;  %v447_v42 = vrot.slane %v446_v9, 1  ;;  %v472_v49 = vadd.f32 %v471_v21, %v470_v32  ;;  %v497_v20 = vrot.slane %v496_v22, 2  ;;  %v522_v33 = vadd.f32 %v4999_v34, %v3694_v60  ;;  %v3768_v21 = vld [vmem:[%s4991_s2 + $0xa0] sm:$0xff]  ;;  %v3825_v44 = vld [vmem:[%s4991_s2 + $0xd0] sm:$0xff] }
  0x5b   : > { %v460_v16 = vrot.slane %v459_v35, 1  ;;  %v485_v31 = vadd.f32 %v484_v40, %v483_v30  ;;  %v510_v12 = vrot.slane %v509_v41, 2  ;;  %v4998_v26 = vrot.slane %v3710_v4, 4  ;;  %v3758_v30 = vld [vmem:[%s4991_s2 + $0xa8] sm:$0xff] }
  0x5c   : > { %v448_v53 = vadd.f32 %v447_v42, %v446_v9  ;;  %v473_v47 = vrot.slane %v472_v49, 1  ;;  %v498_v48 = vadd.f32 %v497_v20, %v496_v22  ;;  %v523_v23 = vrot.slane %v522_v33, 2  ;;  %v3763_v9 = vld [vmem:[%s4991_s2 + $0x80] sm:$0xff]  ;;  %v3778_v42 = vld [vmem:[%s4991_s2 + $0xb8] sm:$0xff]  ;;  %v3783_v20 = vld [vmem:[%s4991_s2 + $0x90] sm:$0xff] }
  0x5d   : > { %v461_v0 = vadd.f32 %v460_v16, %v459_v35  ;;  %v486_v18 = vrot.slane %v485_v31, 1  ;;  %v511_v32 = vadd.f32 %v510_v12, %v509_v41  ;;  %v535_v2 = vadd.f32 %v4998_v26, %v3710_v4  ;;  %v3773_v41 = vld [vmem:[%s4991_s2 + $0x98] sm:$0xff] }
  0x5e   : > { %v474_v22 = vadd.f32 %v473_v47, %v472_v49  ;;  %v499_v11 = vrot.slane %v498_v48, 1  ;;  %v524_v35 = vadd.f32 %v523_v23, %v522_v33  ;;  %v2956_v40 = vpack.c.bf16 %v1440_v15, %v1436_v38  ;;  %v3788_v49 = vld [vmem:[%s4991_s2 + $0xb0] sm:$0xff]  ;;  %v3794_v15 = vld [vmem:[%s4991_s2 + $0xc8] sm:$0xff]  ;;  %v3804_v23 = vld [vmem:[%s4991_s2 + $0xc0] sm:$0xff] }
  0x5f   : > { %v487_v33 = vadd.f32 %v486_v18, %v485_v31  ;;  %v512_v16 = vrot.slane %v511_v32, 1  ;;  %v536_v12 = vrot.slane %v535_v2, 2  ;;  %v1281_v38 = vsel %vm1260_vm1, %v461_v0, %v448_v53  ;;  %v3799_v47 = vld [vmem:[%s4991_s2 + $0xe8] sm:$0xff]  ;;  %v3809_v31 = vld [vmem:[%s4991_s2 + $0xe0] sm:$0xff]  ;;  %v3814_v53 = vld [vmem:[%s4991_s2 + $0xd8] sm:$0xff] }
  0x60   : > { %v3819_v0 = vld [vmem:[%s4991_s2 + $0xf8] sm:$0xff]  ;;  %v500_v18 = vadd.f32 %v499_v11, %v498_v48  ;;  %v525_v17 = vrot.slane %v524_v35, 1  ;;  %v1282_v26 = vsel %vm1262_vm2, %v474_v22, %v1281_v38  ;;  %2957 = vmatpush1.bf16.msra.mxu1 %v2956_v40  ;;  %v3002_v34 = vpack.c.bf16 %v1443_v37, %v1439_v51  ;;  %v3840_v48 = vld [vmem:[%s4991_s2 + $0x128] sm:$0xff]  ;;  %v3848_v40 = vld [vmem:[%s4991_s2 + $0x100] sm:$0xff] }
  0x61   : > { %v513_v51 = vadd.f32 %v512_v16, %v511_v32  ;;  %v537_v37 = vadd.f32 %v536_v12, %v535_v2  ;;  %v1283_v22 = vsel %vm1264_vm3, %v487_v33, %v1282_v26  ;;  %v3004_v11 = vpack.c.bf16 %v3745_v61, %v3740_v3  ;;  %v3853_v38 = vld [vmem:[%s4991_s2 + $0x120] sm:$0xff]  ;;  %v3858_v32 = vld [vmem:[%s4991_s2 + $0x118] sm:$0xff]  ;;  %v3868_v3 = vld [vmem:[%s4991_s2 + $0x110] sm:$0xff] }
  0x62   : > { %v3863_v26 = vld [vmem:[%s4991_s2 + $0x138] sm:$0xff]  ;;  %v3873_v61 = vld [vmem:[%s4991_s2 + $0x130] sm:$0xff]  ;;  %v3878_v2 = vld [vmem:[%s4991_s2 + $0x148] sm:$0xff]  ;;  %v526_v16 = vadd.f32 %v525_v17, %v524_v35  ;;  %v1284_v12 = vsel %vm1266_vm4, %v500_v18, %v1283_v22  ;;  %3003 = vmatprep.subr.bf16.mxu0 %v3002_v34  ;;  %v2958_v28 = vpack.c.bf16 %v3758_v30, %v3753_v29  ;;  %v2960_v59 = vpack.c.bf16 %v3768_v21, %v3763_v9 }
  0x63   : > { %v3883_v33 = vld [vmem:[%s4991_s2 + $0x168] sm:$0xff]  ;;  %v3903_v17 = vld [vmem:[%s4991_s2 + $0x158] sm:$0xff]  ;;  %v3913_v29 = vld [vmem:[%s4991_s2 + $0x150] sm:$0xff]  ;;  %v538_v21 = vrot.slane %v537_v37, 1  ;;  %v1285_v35 = vsel %vm1268_vm5, %v513_v51, %v1284_v12  ;;  %3005 = vmatpush1.bf16.msra.mxu0 %v3004_v11  ;;  %v3006_v18 = vpack.c.bf16 %v3778_v42, %v3773_v41  ;;  %v3008_v22 = vpack.c.bf16 %v3788_v49, %v3783_v20 }
  0x64   : > { %v3908_v34 = vld [vmem:[%s4991_s2 + $0x178] sm:$0xff]  ;;  %v3918_v30 = vld [vmem:[%s4991_s2 + $0x170] sm:$0xff]  ;;  %v307_v9 = vld [vmem:[%s3457_s13 + $0x108] sm:$0xff]  ;;  %v1286_v49 = vsel %vm1270_vm6, %v526_v16, %v1285_v35  ;;  %2959 = vmatprep.subr.bf16.mxu1 %v2958_v28  ;;  %v2962_v11 = vpack.c.bf16 %v3799_v47, %v3794_v15  ;;  %v2964_v12 = vpack.c.bf16 %v3809_v31, %v3804_v23  ;;  %v3010_v45 = vpack.c.bf16 %v3819_v0, %v3814_v53 }
  0x65   : > { %v3939_v51 = vld [vmem:[%s4991_s2 + $0x180] sm:$0xff]  ;;  %v3949_v42 = vld [vmem:[%s4991_s2 + $0x198] sm:$0xff]  ;;  %v3976_v28 = vld [vmem:[%s4991_s2 + $0x1c8] sm:$0xff]  ;;  %v539_v15 = vadd.f32 %v538_v21, %v537_v37  ;;  %2961 = vmatpush1.bf16.msra.mxu1 %v2960_v59  ;;  %3007 = vmatprep.subr.bf16.mxu0 %v3006_v18  ;;  %v3012_v47 = vpack.c.bf16 %v3830_v1, %v3825_v44  ;;  %v2966_v23 = vpack.c.bf16 %v3840_v48, %v3835_v62  ;;  %v553_v1 = vsel %vm344_vm0, %v307_v9, 0.0 }
  0x66   : > { %v3944_v41 = vld [vmem:[%s4991_s2 + $0x1a0] sm:$0xff]  ;;  %v3954_v20 = vld [vmem:[%s4991_s2 + $0x1b8] sm:$0xff]  ;;  %v3985_v31 = vld [vmem:[%s4991_s2 + $0x1e8] sm:$0xff]  ;;  %2963 = vmatprep.subr.bf16.mxu1 %v2962_v11  ;;  %v2968_v62 = vpack.c.bf16 %v3853_v38, %v3848_v40  ;;  %v3014_v44 = vpack.c.bf16 %v3863_v26, %v3858_v32  ;;  %v3016_v0 = vpack.c.bf16 %v3873_v61, %v3868_v3  ;;  %v2970_v48 = vpack.c.bf16 %v3883_v33, %v3878_v2 }
  0x67   : > { %v3990_v53 = vld [vmem:[%s4991_s2 + $0x1c0] sm:$0xff]  ;;  %v4009_v37 = vld [vmem:[%s4991_s2 + $0x1d8] sm:$0xff]  ;;  %v4019_v40 = vld [vmem:[%s4991_s2 + $0x1d0] sm:$0xff]  ;;  %v1287_v38 = vsel %vm1272_vm7, %v539_v15, %v1286_v49  ;;  %3009 = vmatpush1.bf16.msra.mxu0 %v3008_v22  ;;  %v2972_v32 = vpack.c.bf16 %v3898_v52, %v3893_v27  ;;  %v3018_v26 = vpack.c.bf16 %v3908_v34, %v3903_v17  ;;  %v2974_v52 = vpack.c.bf16 %v3934_v46, %v3929_v10 }
  0x68   : > { %v3995_v59 = vld [vmem:[%s4991_s2 + $0x1e0] sm:$0xff]  ;;  %v4014_v16 = vld [vmem:[%s4991_s2 + $0x1f8] sm:$0xff]  ;;  %v4031_v61 = vld [vmem:[%s4991_s2 + $0x1f0] sm:$0xff]  ;;  %1409 = vmatmul.mubr.f32.gmra.mrb[2].mxu0 %v1287_v38  ;;  %3011 = vmatprep.subr.bf16.mxu0 %v3010_v45  ;;  %v554_v21 = vrot.slane %v553_v1, 4 }
  0x69   : > { %v309_v2 = vld [vmem:[%s3457_s13 + $0x118] sm:$0xff]  ;;  %v311_v33 = vld [vmem:[%s3457_s13 + $0x128] sm:$0xff]  ;;  %2965 = vmatpush1.bf16.msra.mxu1 %v2964_v12 }
  0x6a   : > { %v313_v34 = vld [vmem:[%s3457_s13 + $0x138] sm:$0xff]  ;;  %v315_v9 = vld [vmem:[%s3457_s13 + $0x148] sm:$0xff]  ;;  %2967 = vmatprep.subr.bf16.mxu1 %v2966_v23  ;;  %v555_v11 = vadd.f32 %v554_v21, %v553_v1  ;;  %v566_v12 = vsel %vm344_vm0, %v309_v2, 0.0  ;;  %v579_v15 = vsel %vm344_vm0, %v311_v33, 0.0 }
  0x6b   : > { %v317_v10 = vld [vmem:[%s3457_s13 + $0x158] sm:$0xff]  ;;  %v319_v49 = vld [vmem:[%s3457_s13 + $0x168] sm:$0xff]  ;;  %3013 = vmatpush1.bf16.msra.mxu0 %v3012_v47  ;;  %v567_v38 = vrot.slane %v566_v12, 4  ;;  %v580_v13 = vrot.slane %v579_v15, 4  ;;  %v592_v8 = vsel %vm344_vm0, %v313_v34, 0.0  ;;  %v605_v45 = vsel %vm344_vm0, %v315_v9, 0.0 }
  0x6c   : > { %3015 = vmatprep.subr.bf16.mxu0 %v3014_v44  ;;  %v321_v46 = vld [vmem:[%s3457_s13 + $0x178] sm:$0xff]  ;;  %v556_v35 = vrot.slane %v555_v11, 2  ;;  %v593_v23 = vrot.slane %v592_v8, 4  ;;  %v606_v18 = vrot.slane %v605_v45, 4  ;;  %v618_v22 = vsel %vm344_vm0, %v317_v10, 0.0 }
  0x6d   : > { %2969 = vmatpush1.bf16.msra.mxu1 %v2968_v62  ;;  %v568_v1 = vadd.f32 %v567_v38, %v566_v12  ;;  %v581_v21 = vadd.f32 %v580_v13, %v579_v15  ;;  %v619_v2 = vrot.slane %v618_v22, 4  ;;  %v631_v33 = vsel %vm344_vm0, %v319_v49, 0.0 }
  0x6e   : > { %2971 = vmatprep.subr.bf16.mxu1 %v2970_v48  ;;  %v557_v47 = vadd.f32 %v556_v35, %v555_v11  ;;  %v594_v27 = vadd.f32 %v593_v23, %v592_v8  ;;  %v607_v17 = vadd.f32 %v606_v18, %v605_v45  ;;  %v632_v34 = vrot.slane %v631_v33, 4  ;;  %v1493_v8 = vld [vmem:[%s4991_s2 + $0x208] sm:$0xff]  ;;  %v4073_v23 = vld [vmem:[%s3457_s13 + $0x100] sm:$0xff] }
  0x6f   : > { %3017 = vmatpush1.bf16.msra.mxu0 %v3016_v0  ;;  %v569_v9 = vrot.slane %v568_v1, 2  ;;  %v582_v44 = vrot.slane %v581_v21, 2  ;;  %v620_v3 = vadd.f32 %v619_v2, %v618_v22  ;;  %v644_v4 = vsel %vm344_vm0, %v321_v46, 0.0  ;;  %v1497_v0 = vld [vmem:[%s4991_s2 + $0x228] sm:$0xff] }
  0x70   : > { %3019 = vmatprep.subr.bf16.mxu0 %v3018_v26  ;;  %v558_v60 = vrot.slane %v557_v47, 1  ;;  %v595_v10 = vrot.slane %v594_v27, 2  ;;  %v608_v62 = vrot.slane %v607_v17, 2  ;;  %v633_v12 = vadd.f32 %v632_v34, %v631_v33  ;;  %v4085_v33 = vld [vmem:[%s3457_s13 + $0x120] sm:$0xff] }
  0x71   : > { %2973 = vmatpush1.bf16.msra.mxu1 %v2972_v32  ;;  %v570_v13 = vadd.f32 %v569_v9, %v568_v1  ;;  %v583_v49 = vadd.f32 %v582_v44, %v581_v21  ;;  %v621_v48 = vrot.slane %v620_v3, 2  ;;  %v645_v35 = vrot.slane %v644_v4, 4  ;;  %v4079_v21 = vld [vmem:[%s3457_s13 + $0x110] sm:$0xff] }
  0x72   : > { %2975 = vmatprep.subr.bf16.mxu1 %v2974_v52  ;;  %v559_v26 = vadd.f32 %v558_v60, %v557_v47  ;;  %v596_v18 = vadd.f32 %v595_v10, %v594_v27  ;;  %v609_v45 = vadd.f32 %v608_v62, %v607_v17  ;;  %v634_v46 = vrot.slane %v633_v12, 2  ;;  %v4091_v9 = vld [vmem:[%s3457_s13 + $0x130] sm:$0xff] }
  0x73   : > { %v5038_v32 = vpack.c.bf16 %v3918_v30, %v3913_v29  ;;  %v571_v22 = vrot.slane %v570_v13, 1  ;;  %v584_v11 = vrot.slane %v583_v49, 1  ;;  %v622_v15 = vadd.f32 %v621_v48, %v620_v3 }
  0x74   : > { %v646_v38 = vadd.f32 %v645_v35, %v644_v4  ;;  %v5039_v1 = vpack.c.bf16 %v3954_v20, %v3949_v42  ;;  %v597_v60 = vrot.slane %v596_v18, 1  ;;  %v610_v52 = vrot.slane %v609_v45, 1 }
  0x75   : > { %3021 = vmatpush1.bf16.msra.mxu0 %v5038_v32  ;;  %v635_v27 = vadd.f32 %v634_v46, %v633_v12  ;;  %v2982_v17 = vpack.c.bf16 %v1497_v0, %v1493_v8  ;;  %v5040_v29 = vpack.c.bf16 %v3944_v41, %v3939_v51  ;;  %v572_v30 = vadd.f32 %v571_v22, %v570_v13  ;;  %v4099_v12 = vld [vmem:[%s3457_s13 + $0x140] sm:$0xff] }
  0x76   : > { %3023 = vmatprep.subr.bf16.mxu0 %v5039_v1  ;;  %v585_v4 = vadd.f32 %v584_v11, %v583_v49  ;;  %v623_v3 = vrot.slane %v622_v15, 1  ;;  %v647_v2 = vrot.slane %v646_v38, 2  ;;  %v5041_v42 = vpack.c.bf16 %v3985_v31, %v3976_v28  ;;  %v4131_v22 = vld [vmem:[%s3457_s13 + $0x160] sm:$0xff]  ;;  %v4138_v1 = vld [vmem:[%s3457_s13 + $0x170] sm:$0xff] }
  0x77   : > { %2977 = vmatpush1.bf16.msra.mxu1 %v5040_v29  ;;  %v598_v20 = vadd.f32 %v597_v60, %v596_v18  ;;  %v611_v47 = vadd.f32 %v610_v52, %v609_v45  ;;  %v636_v34 = vrot.slane %v635_v27, 1  ;;  %v5031_v44 = vrot.slane %v4073_v23, 4 }
  0x78   : > { %2979 = vmatprep.subr.bf16.mxu1 %v5041_v42  ;;  %v5042_v51 = vpack.c.bf16 %v3971_v14, %v3966_v24  ;;  %v624_v41 = vadd.f32 %v623_v3, %v622_v15  ;;  %v648_v10 = vadd.f32 %v647_v2, %v646_v38  ;;  %v1302_v62 = vsel %vm1260_vm1, %v572_v30, %v559_v26  ;;  %v4120_v26 = vld [vmem:[%s3457_s13 + $0x150] sm:$0xff] }
  0x79   : > { %v5030_v28 = vrot.slane %v4079_v21, 4  ;;  %v5043_v31 = vpack.c.bf16 %v4014_v16, %v4009_v37  ;;  %v637_v13 = vadd.f32 %v636_v34, %v635_v27  ;;  %v1303_v49 = vsel %vm1262_vm2, %v585_v4, %v1302_v62 }
  0x7a   : > { %3025 = vmatpush1.bf16.msra.mxu0 %v5042_v51  ;;  %v548_v14 = vadd.f32 %v5031_v44, %v4073_v23  ;;  %v5029_v24 = vrot.slane %v4085_v33, 4  ;;  %v5044_v48 = vpack.c.bf16 %v3995_v59, %v3990_v53  ;;  %v649_v35 = vrot.slane %v648_v10, 1  ;;  %v1492_v51 = vld [vmem:[%s4991_s2 + $0x200] sm:$0xff] }
  0x7b   : > { %3027 = vmatprep.subr.bf16.mxu0 %v5043_v31  ;;  %v1304_v8 = vsel %vm1264_vm3, %v598_v20, %v1303_v49  ;;  %v561_v37 = vadd.f32 %v5030_v28, %v4079_v21  ;;  %v5028_v16 = vrot.slane %v4091_v9, 4  ;;  %v5026_v59 = vrot.slane %v4099_v12, 4 }
  0x7c   : > { %2981 = vmatpush1.bf16.msra.mxu1 %v5044_v48  ;;  %v1305_v0 = vsel %vm1266_vm4, %v611_v47, %v1304_v8  ;;  %v549_v18 = vrot.slane %v548_v14, 2  ;;  %v574_v53 = vadd.f32 %v5029_v24, %v4085_v33  ;;  %v5045_v45 = vpack.c.bf16 %v4031_v61, %v4019_v40  ;;  %v1495_v8 = vld [vmem:[%s4991_s2 + $0x218] sm:$0xff] }
  0x7d   : > { %2983 = vmatprep.subr.bf16.mxu1 %v2982_v17  ;;  %v650_v46 = vadd.f32 %v649_v35, %v648_v10  ;;  %v1306_v32 = vsel %vm1268_vm5, %v624_v41, %v1305_v0  ;;  %v562_v11 = vrot.slane %v561_v37, 2  ;;  %v587_v15 = vadd.f32 %v5028_v16, %v4091_v9  ;;  %v1496_v41 = vld [vmem:[%s4991_s2 + $0x220] sm:$0xff] }
  0x7e   : > { %3029 = vmatpush1.bf16.msra.mxu0 %v5045_v45  ;;  %v1307_v38 = vsel %vm1270_vm6, %v637_v13, %v1306_v32  ;;  %v550_v60 = vadd.f32 %v549_v18, %v548_v14  ;;  %v575_v52 = vrot.slane %v574_v53, 2  ;;  %v600_v40 = vadd.f32 %v5026_v59, %v4099_v12  ;;  %v1498_v32 = vld [vmem:[%s4991_s2 + $0x230] sm:$0xff] }
  0x7f   : > { %v1308_v61 = vsel %vm1272_vm7, %v650_v46, %v1307_v38  ;;  %v563_v27 = vadd.f32 %v562_v11, %v561_v37  ;;  %v588_v17 = vrot.slane %v587_v15, 2  ;;  %v5025_v29 = vrot.slane %v4120_v26, 4  ;;  %v1499_v37 = vld [vmem:[%s4991_s2 + $0x238] sm:$0xff]  ;;  %v1494_v46 = vld [vmem:[%s4991_s2 + $0x210] sm:$0xff] }
  0x80   : > { %2887 = vmatprep.mubr.msk.f32.mxu0 %vm344_vm0, %v1308_v61  ;;  %v551_v30 = vrot.slane %v550_v60, 1  ;;  %v576_v4 = vadd.f32 %v575_v52, %v574_v53  ;;  %v601_v3 = vrot.slane %v600_v40, 2  ;;  %v5024_v2 = vrot.slane %v4131_v22, 4  ;;  %v323_v52 = vld [vmem:[%s3457_s13 + $0x188] sm:$0xff] }
  0x81   : > { %v564_v42 = vrot.slane %v563_v27, 1  ;;  %v589_v20 = vadd.f32 %v588_v17, %v587_v15  ;;  %v613_v47 = vadd.f32 %v5025_v29, %v4120_v26  ;;  %v5023_v34 = vrot.slane %v4138_v1, 4  ;;  %v1512_v29 = vld [vmem:[%s4991_s2 + $0x2a0] sm:$0xff] }
  0x82   : > { %v552_v10 = vadd.f32 %v551_v30, %v550_v60  ;;  %v577_v62 = vrot.slane %v576_v4, 1  ;;  %v602_v31 = vadd.f32 %v601_v3, %v600_v40  ;;  %v626_v13 = vadd.f32 %v5024_v2, %v4131_v22  ;;  %v325_v40 = vld [vmem:[%s3457_s13 + $0x198] sm:$0xff]  ;;  %v1508_v2 = vld [vmem:[%s4991_s2 + $0x280] sm:$0xff] }
  0x83   : > { %v565_v49 = vadd.f32 %v564_v42, %v563_v27  ;;  %v590_v14 = vrot.slane %v589_v20, 1  ;;  %v614_v48 = vrot.slane %v613_v47, 2  ;;  %v639_v35 = vadd.f32 %v5023_v34, %v4138_v1 }
  0x84   : > { %v578_v0 = vadd.f32 %v577_v62, %v576_v4  ;;  %v603_v18 = vrot.slane %v602_v31, 1  ;;  %v627_v53 = vrot.slane %v626_v13, 2  ;;  %v2984_v45 = vpack.c.bf16 %v1496_v41, %v1492_v51  ;;  %v327_v51 = vld [vmem:[%s3457_s13 + $0x1a8] sm:$0xff] }
  0x85   : > { %v591_v11 = vadd.f32 %v590_v14, %v589_v20  ;;  %v615_v15 = vadd.f32 %v614_v48, %v613_v47  ;;  %v640_v38 = vrot.slane %v639_v35, 2  ;;  %v1295_v60 = vsel %vm1260_vm1, %v565_v49, %v552_v10  ;;  %v329_v47 = vld [vmem:[%s3457_s13 + $0x1b8] sm:$0xff]  ;;  %v331_v41 = vld [vmem:[%s3457_s13 + $0x1c8] sm:$0xff] }
  0x86   : > { %v604_v61 = vadd.f32 %v603_v18, %v602_v31  ;;  %v628_v27 = vadd.f32 %v627_v53, %v626_v13  ;;  %v1296_v17 = vsel %vm1262_vm2, %v578_v0, %v1295_v60  ;;  %2985 = vmatpush1.bf16.msra.mxu1 %v2984_v45  ;;  %v3030_v30 = vpack.c.bf16 %v1499_v37, %v1495_v8  ;;  %v333_v37 = vld [vmem:[%s3457_s13 + $0x1d8] sm:$0xff] }
  0x87   : > { %v616_v4 = vrot.slane %v615_v15, 1  ;;  %v641_v3 = vadd.f32 %v640_v38, %v639_v35  ;;  %v1297_v42 = vsel %vm1264_vm3, %v591_v11, %v1296_v17  ;;  %v3032_v20 = vpack.c.bf16 %v1498_v32, %v1494_v46  ;;  %v335_v38 = vld [vmem:[%s3457_s13 + $0x1e8] sm:$0xff]  ;;  %v337_v60 = vld [vmem:[%s3457_s13 + $0x1f8] sm:$0xff] }
  0x88   : > { %v629_v62 = vrot.slane %v628_v27, 1  ;;  %v1298_v10 = vsel %vm1266_vm4, %v604_v61, %v1297_v42  ;;  %3031 = vmatprep.subr.bf16.mxu0 %v3030_v30  ;;  %v657_v31 = vsel %vm344_vm0, %v323_v52, 0.0  ;;  %v670_v13 = vsel %vm344_vm0, %v325_v40, 0.0 }
  0x89   : > { %v617_v49 = vadd.f32 %v616_v4, %v615_v15  ;;  %v642_v14 = vrot.slane %v641_v3, 1  ;;  %3033 = vmatpush1.bf16.msra.mxu0 %v3032_v20  ;;  %v658_v48 = vrot.slane %v657_v31, 4  ;;  %v671_v35 = vrot.slane %v670_v13, 4 }
  0x8a   : > { %v630_v8 = vadd.f32 %v629_v62, %v628_v27  ;;  %v683_v0 = vsel %vm344_vm0, %v327_v51, 0.0  ;;  %v696_v18 = vsel %vm344_vm0, %v329_v47, 0.0  ;;  %v709_v53 = vsel %vm344_vm0, %v331_v41, 0.0 }
  0x8b   : > { %v643_v45 = vadd.f32 %v642_v14, %v641_v3  ;;  %v1299_v46 = vsel %vm1268_vm5, %v617_v49, %v1298_v10  ;;  %v659_v32 = vadd.f32 %v658_v48, %v657_v31  ;;  %v672_v11 = vadd.f32 %v671_v35, %v670_v13 }
  0x8c   : > { %v1300_v15 = vsel %vm1270_vm6, %v630_v8, %v1299_v46  ;;  %v684_v52 = vrot.slane %v683_v0, 4  ;;  %v697_v40 = vrot.slane %v696_v18, 4  ;;  %v710_v61 = vrot.slane %v709_v53, 4  ;;  %v1501_v46 = vld [vmem:[%s4991_s2 + $0x248] sm:$0xff] }
  0x8d   : > { %v1301_v27 = vsel %vm1272_vm7, %v643_v45, %v1300_v15  ;;  %v660_v17 = vrot.slane %v659_v32, 2  ;;  %v673_v30 = vrot.slane %v672_v11, 2  ;;  %v722_v4 = vsel %vm344_vm0, %v333_v37, 0.0 }
  0x8e   : > { %1414 = vmatmul.mubr.f32.gmra.mrb[4].mxu0 %v1301_v27  ;;  %v685_v42 = vadd.f32 %v684_v52, %v683_v0  ;;  %v698_v3 = vadd.f32 %v697_v40, %v696_v18  ;;  %v711_v20 = vadd.f32 %v710_v61, %v709_v53  ;;  %v723_v51 = vrot.slane %v722_v4, 4 }
  0x8f   : > { %v661_v47 = vadd.f32 %v660_v17, %v659_v32  ;;  %v674_v41 = vadd.f32 %v673_v30, %v672_v11  ;;  %v735_v62 = vsel %vm344_vm0, %v335_v38, 0.0  ;;  %v748_v10 = vsel %vm344_vm0, %v337_v60, 0.0  ;;  %v1505_v32 = vld [vmem:[%s4991_s2 + $0x268] sm:$0xff]  ;;  %v4205_v17 = vld [vmem:[%s3457_s13 + $0x180] sm:$0xff]  ;;  %v4208_v30 = vld [vmem:[%s3457_s13 + $0x190] sm:$0xff] }
  0x90   : > { %v686_v31 = vrot.slane %v685_v42, 2  ;;  %v699_v13 = vrot.slane %v698_v3, 2  ;;  %v712_v49 = vrot.slane %v711_v20, 2  ;;  %v724_v14 = vadd.f32 %v723_v51, %v722_v4  ;;  %v4212_v51 = vld [vmem:[%s3457_s13 + $0x1a0] sm:$0xff] }
  0x91   : > { %v662_v48 = vrot.slane %v661_v47, 1  ;;  %v675_v35 = vrot.slane %v674_v41, 1  ;;  %v736_v8 = vrot.slane %v735_v62, 4  ;;  %v749_v37 = vrot.slane %v748_v10, 4 }
  0x92   : > { %v687_v0 = vadd.f32 %v686_v31, %v685_v42  ;;  %v700_v18 = vadd.f32 %v699_v13, %v698_v3  ;;  %v713_v53 = vadd.f32 %v712_v49, %v711_v20  ;;  %v725_v45 = vrot.slane %v724_v14, 2  ;;  %v4215_v31 = vld [vmem:[%s3457_s13 + $0x1b0] sm:$0xff] }
  0x93   : > { %v663_v11 = vadd.f32 %v662_v48, %v661_v47  ;;  %v676_v15 = vadd.f32 %v675_v35, %v674_v41  ;;  %v737_v38 = vadd.f32 %v736_v8, %v735_v62  ;;  %v750_v60 = vadd.f32 %v749_v37, %v748_v10 }
  0x94   : > { %v688_v52 = vrot.slane %v687_v0, 1  ;;  %v701_v40 = vrot.slane %v700_v18, 1  ;;  %v714_v61 = vrot.slane %v713_v53, 1  ;;  %v726_v27 = vadd.f32 %v725_v45, %v724_v14 }
  0x95   : > { %v738_v4 = vrot.slane %v737_v38, 2  ;;  %v751_v42 = vrot.slane %v750_v60, 2  ;;  %v1316_v3 = vsel %vm1260_vm1, %v676_v15, %v663_v11  ;;  %v2986_v20 = vpack.c.bf16 %v1505_v32, %v1501_v46  ;;  %v4224_v46 = vld [vmem:[%s3457_s13 + $0x1c0] sm:$0xff]  ;;  %v4231_v15 = vld [vmem:[%s3457_s13 + $0x1d0] sm:$0xff] }
  0x96   : > { %v689_v47 = vadd.f32 %v688_v52, %v687_v0  ;;  %v702_v41 = vadd.f32 %v701_v40, %v700_v18  ;;  %v715_v62 = vadd.f32 %v714_v61, %v713_v53  ;;  %v727_v10 = vrot.slane %v726_v27, 1 }
  0x97   : > { %v739_v13 = vadd.f32 %v738_v4, %v737_v38  ;;  %v752_v49 = vadd.f32 %v751_v42, %v750_v60  ;;  %2987 = vmatprep.subr.bf16.mxu1 %v2986_v20  ;;  %v5022_v14 = vrot.slane %v4205_v17, 4  ;;  %v5021_v48 = vrot.slane %v4208_v30, 4  ;;  %v4234_v38 = vld [vmem:[%s3457_s13 + $0x1e0] sm:$0xff] }
  0x98   : > { %v728_v35 = vadd.f32 %v727_v10, %v726_v27  ;;  %v1317_v8 = vsel %vm1262_vm2, %v689_v47, %v1316_v3  ;;  %v5016_v37 = vrot.slane %v4212_v51, 4  ;;  %v5020_v0 = vrot.slane %v4215_v31, 4  ;;  %5046 = vst [vmem:[#allocation7_spill] sm:$0xff] %v4234_v38  ;;  %v4249_v10 = vld [vmem:[%s3457_s13 + $0x1f0] sm:$0xff] }
  0x99   : > { %v740_v45 = vrot.slane %v739_v13, 1  ;;  %v753_v18 = vrot.slane %v752_v49, 1  ;;  %v1318_v53 = vsel %vm1264_vm3, %v702_v41, %v1317_v8  ;;  %v652_v32 = vadd.f32 %v5022_v14, %v4205_v17  ;;  %5047 = vst [vmem:[#allocation8_spill] sm:$0xff] %v4249_v10 }
  0x9a   : > { %v1319_v11 = vsel %vm1266_vm4, %v715_v62, %v1318_v53  ;;  %v665_v60 = vadd.f32 %v5021_v48, %v4208_v30  ;;  %v678_v52 = vadd.f32 %v5016_v37, %v4212_v51  ;;  %v691_v40 = vadd.f32 %v5020_v0, %v4215_v31  ;;  %v1509_v0 = vld [vmem:[%s4991_s2 + $0x288] sm:$0xff] }
  0x9b   : > { %v741_v61 = vadd.f32 %v740_v45, %v739_v13  ;;  %v754_v27 = vadd.f32 %v753_v18, %v752_v49  ;;  %v1320_v4 = vsel %vm1268_vm5, %v728_v35, %v1319_v11  ;;  %v653_v42 = vrot.slane %v652_v32, 2 }
  0x9c   : > { %v666_v3 = vrot.slane %v665_v60, 2  ;;  %v679_v20 = vrot.slane %v678_v52, 2  ;;  %v692_v47 = vrot.slane %v691_v40, 2  ;;  %v5019_v41 = vrot.slane %v4224_v46, 4 }
  0x9d   : > { %v1321_v62 = vsel %vm1270_vm6, %v741_v61, %v1320_v4  ;;  %v654_v8 = vadd.f32 %v653_v42, %v652_v32  ;;  %v5018_v53 = vrot.slane %v4231_v15, 4  ;;  %v5017_v37 = vrot.slane %v4234_v38, 4 }
  0x9e   : > { %v1322_v13 = vsel %vm1272_vm7, %v754_v27, %v1321_v62  ;;  %v667_v49 = vadd.f32 %v666_v3, %v665_v60  ;;  %v680_v45 = vadd.f32 %v679_v20, %v678_v52  ;;  %v693_v35 = vadd.f32 %v692_v47, %v691_v40  ;;  %v1500_v60 = vld [vmem:[%s4991_s2 + $0x240] sm:$0xff]  ;;  %v1503_v3 = vld [vmem:[%s4991_s2 + $0x258] sm:$0xff] }
  0x9f   : > { %2888 = vmatprep.mubr.msk.f32.mxu0 %vm344_vm0, %v1322_v13  ;;  %v655_v18 = vrot.slane %v654_v8, 1  ;;  %v704_v11 = vadd.f32 %v5019_v41, %v4224_v46  ;;  %v717_v32 = vadd.f32 %v5018_v53, %v4231_v15  ;;  %v730_v61 = vadd.f32 %v5017_v37, %v4234_v38  ;;  %v1504_v52 = vld [vmem:[%s4991_s2 + $0x260] sm:$0xff]  ;;  %v1507_v20 = vld [vmem:[%s4991_s2 + $0x278] sm:$0xff]  ;;  %v1502_v53 = vld [vmem:[%s4991_s2 + $0x250] sm:$0xff] }
  0xa0   : > { %v668_v40 = vrot.slane %v667_v49, 1  ;;  %v681_v27 = vrot.slane %v680_v45, 1  ;;  %v694_v4 = vrot.slane %v693_v35, 1  ;;  %v5027_v42 = vrot.slane %v4249_v10, 4  ;;  %v1506_v41 = vld [vmem:[%s4991_s2 + $0x270] sm:$0xff] }
  0xa1   : > { %v656_v47 = vadd.f32 %v655_v18, %v654_v8  ;;  %v705_v62 = vrot.slane %v704_v11, 2  ;;  %v718_v13 = vrot.slane %v717_v32, 2  ;;  %v731_v37 = vrot.slane %v730_v61, 2  ;;  %v1513_v18 = vld [vmem:[%s4991_s2 + $0x2a8] sm:$0xff] }
  0xa2   : > { %v669_v48 = vadd.f32 %v668_v40, %v667_v49  ;;  %v682_v14 = vadd.f32 %v681_v27, %v680_v45  ;;  %v695_v34 = vadd.f32 %v694_v4, %v693_v35  ;;  %v743_v8 = vadd.f32 %v5027_v42, %v4249_v10  ;;  %v1511_v40 = vld [vmem:[%s4991_s2 + $0x298] sm:$0xff]  ;;  %v1510_v4 = vld [vmem:[%s4991_s2 + $0x290] sm:$0xff] }
  0xa3   : > { %v706_v59 = vadd.f32 %v705_v62, %v704_v11  ;;  %v719_v49 = vadd.f32 %v718_v13, %v717_v32  ;;  %v732_v45 = vadd.f32 %v731_v37, %v730_v61  ;;  %v2988_v35 = vpack.c.bf16 %v1504_v52, %v1500_v60  ;;  %v1515_v27 = vld [vmem:[%s4991_s2 + $0x2b8] sm:$0xff]  ;;  %v1514_v37 = vld [vmem:[%s4991_s2 + $0x2b0] sm:$0xff]  ;;  %v1517_v32 = vld [vmem:[%s4991_s2 + $0x2c8] sm:$0xff] }
  0xa4   : > { %v744_v42 = vrot.slane %v743_v8, 2  ;;  %v1309_v16 = vsel %vm1260_vm1, %v669_v48, %v656_v47  ;;  %v3034_v24 = vpack.c.bf16 %v1507_v20, %v1503_v3  ;;  %v3036_v11 = vpack.c.bf16 %v1506_v41, %v1502_v53  ;;  %v1521_v61 = vld [vmem:[%s4991_s2 + $0x2e8] sm:$0xff]  ;;  %v1516_v48 = vld [vmem:[%s4991_s2 + $0x2c0] sm:$0xff]  ;;  %v1519_v53 = vld [vmem:[%s4991_s2 + $0x2d8] sm:$0xff] }
  0xa5   : > { %v707_v60 = vrot.slane %v706_v59, 1  ;;  %v720_v52 = vrot.slane %v719_v49, 1  ;;  %v733_v62 = vrot.slane %v732_v45, 1  ;;  %v1310_v13 = vsel %vm1262_vm2, %v682_v14, %v1309_v16  ;;  %2989 = vmatpush1.bf16.msra.mxu1 %v2988_v35  ;;  %v1520_v41 = vld [vmem:[%s4991_s2 + $0x2e0] sm:$0xff]  ;;  %v1523_v16 = vld [vmem:[%s4991_s2 + $0x2f8] sm:$0xff]  ;;  %v1518_v14 = vld [vmem:[%s4991_s2 + $0x2d0] sm:$0xff] }
  0xa6   : > { %v745_v3 = vadd.f32 %v744_v42, %v743_v8  ;;  %v1311_v20 = vsel %vm1264_vm3, %v695_v34, %v1310_v13  ;;  %3035 = vmatprep.subr.bf16.mxu0 %v3034_v24  ;;  %v2990_v47 = vpack.c.bf16 %v1513_v18, %v1509_v0  ;;  %v2992_v28 = vpack.c.bf16 %v1512_v29, %v1508_v2  ;;  %v1522_v35 = vld [vmem:[%s4991_s2 + $0x2f0] sm:$0xff] }
  0xa7   : > { %v708_v44 = vadd.f32 %v707_v60, %v706_v59  ;;  %v721_v10 = vadd.f32 %v720_v52, %v719_v49  ;;  %v734_v42 = vadd.f32 %v733_v62, %v732_v45  ;;  %3037 = vmatpush1.bf16.msra.mxu0 %v3036_v11  ;;  %v3038_v24 = vpack.c.bf16 %v1515_v27, %v1511_v40  ;;  %v3104_v45 = vld [vmem:[%s3457_s13 + $0x18] sm:$0xff]  ;;  %v3105_v27 = vld [vmem:[%s3457_s13 + $0x28] sm:$0xff] }
  0xa8   : > { %v746_v34 = vrot.slane %v745_v3, 1  ;;  %2991 = vmatprep.subr.bf16.mxu1 %v2990_v47  ;;  %v3040_v29 = vpack.c.bf16 %v1514_v37, %v1510_v4  ;;  %v2994_v2 = vpack.c.bf16 %v1521_v61, %v1517_v32  ;;  %v2996_v0 = vpack.c.bf16 %v1520_v41, %v1516_v48  ;;  %v3106_v61 = vld [vmem:[%s3457_s13 + $0x38] sm:$0xff]  ;;  %v3107_v52 = vld [vmem:[%s3457_s13 + $0x48] sm:$0xff]  ;;  %v1524_v47 = vld [vmem:[%s4991_s2 + $0x300] sm:$0xf] }
  0xa9   : > { %v1312_v8 = vsel %vm1266_vm4, %v708_v44, %v1311_v20  ;;  %2993 = vmatpush1.bf16.msra.mxu1 %v2992_v28  ;;  %3039 = vmatprep.subr.bf16.mxu0 %v3038_v24  ;;  %v3042_v18 = vpack.c.bf16 %v1523_v16, %v1519_v53  ;;  %v3044_v13 = vpack.c.bf16 %v1522_v35, %v1518_v14  ;;  %v762_v38 = vrot.slane %v3478_v43, 4  ;;  %v1525_v28 = vld [vmem:[%s4991_s2 + $0x308] sm:$0xf]  ;;  %v3108_v48 = vld [vmem:[%s3457_s13 + $0x58] sm:$0xff] }
  0xaa   : > { %v747_v59 = vadd.f32 %v746_v34, %v745_v3  ;;  %v1313_v49 = vsel %vm1268_vm5, %v721_v10, %v1312_v8  ;;  %2995 = vmatprep.subr.bf16.mxu1 %v2994_v2  ;;  %v774_v40 = vsel %vm344_vm0, %v3104_v45, -inf  ;;  %v787_v4 = vsel %vm344_vm0, %v3105_v27, -inf  ;;  %v1527_v20 = vld [vmem:[%s4991_s2 + $0x318] sm:$0xf]  ;;  %v3109_v35 = vld [vmem:[%s3457_s13 + $0x68] sm:$0xff] }
  0xab   : > { %v1314_v44 = vsel %vm1270_vm6, %v734_v42, %v1313_v49  ;;  %3041 = vmatpush1.bf16.msra.mxu0 %v3040_v29  ;;  %v763_v11 = vmax.f32 %v3478_v43, %v762_v38  ;;  %v775_v37 = vrot.slane %v774_v40, 4  ;;  %v788_v10 = vrot.slane %v787_v4, 4  ;;  %v3110_v24 = vld [vmem:[%s3457_s13 + $0x78] sm:$0xff] }
  0xac   : > { %v1315_v32 = vsel %vm1272_vm7, %v747_v59, %v1314_v44  ;;  %3043 = vmatprep.subr.bf16.mxu0 %v3042_v18  ;;  %v800_v60 = vsel %vm344_vm0, %v3106_v61, -inf  ;;  %v813_v62 = vsel %vm344_vm0, %v3107_v52, -inf  ;;  %v826_v41 = vsel %vm344_vm0, %v3108_v48, -inf }
  0xad   : > { %1419 = vmatmul.mubr.f32.gmra.mrb[6].mxu0 %v1315_v32  ;;  %2997 = vmatpush1.bf16.msra.mxu1 %v2996_v0  ;;  %v764_v53 = vrot.slane %v763_v11, 2  ;;  %v776_v43 = vmax.f32 %v774_v40, %v775_v37  ;;  %v789_v38 = vmax.f32 %v787_v4, %v788_v10  ;;  %v801_v3 = vrot.slane %v800_v60, 4  ;;  %v1526_v40 = vld [vmem:[%s4991_s2 + $0x310] sm:$0xf] }
  0xae   : > { %2889 = vmatprep.subr.msk.mxu1 %vm1335_vm8, %v1525_v28  ;;  %v814_v16 = vrot.slane %v813_v62, 4  ;;  %v827_v14 = vrot.slane %v826_v41, 4  ;;  %v839_v42 = vsel %vm344_vm0, %v3109_v35, -inf  ;;  %v852_v34 = vsel %vm344_vm0, %v3110_v24, -inf }
  0xaf   : > { %3045 = vmatpush1.bf16.msra.mxu0 %v3044_v13  ;;  %v765_v29 = vmax.f32 %v763_v11, %v764_v53  ;;  %v777_v2 = vrot.slane %v776_v43, 2  ;;  %v790_v0 = vrot.slane %v789_v38, 2  ;;  %v802_v8 = vmax.f32 %v800_v60, %v801_v3 }
  0xb0   : > { %v815_v18 = vmax.f32 %v813_v62, %v814_v16  ;;  %v828_v59 = vmax.f32 %v826_v41, %v827_v14  ;;  %v840_v49 = vrot.slane %v839_v42, 4  ;;  %v853_v45 = vrot.slane %v852_v34, 4  ;;  %2895 = vmatprep.subr.msk.mxu0 %vm1335_vm8, %v1527_v20  ;;  %v3111_v20 = vld [vmem:[%s3457_s13] sm:$0xff] }
  0xb1   : > { %2890 = vmatpush1.msk.msra.mxu1 %vm1335_vm8, %v1524_v47  ;;  %v766_v27 = vrot.slane %v765_v29, 1  ;;  %v778_v4 = vmax.f32 %v776_v43, %v777_v2  ;;  %v791_v44 = vmax.f32 %v789_v38, %v790_v0  ;;  %v803_v13 = vrot.slane %v802_v8, 2  ;;  %v3112_v0 = vld [vmem:[%s3457_s13 + $0x10] sm:$0xff] }
  0xb2   : > { %v816_v28 = vrot.slane %v815_v18, 2  ;;  %v829_v11 = vrot.slane %v828_v59, 2  ;;  %v841_v37 = vmax.f32 %v839_v42, %v840_v49  ;;  %v854_v10 = vmax.f32 %v852_v34, %v853_v45 }
  0xb3   : > { %v767_v32 = vmax.f32 %v765_v29, %v766_v27  ;;  %v779_v61 = vrot.slane %v778_v4, 1  ;;  %v792_v60 = vrot.slane %v791_v44, 1  ;;  %v804_v52 = vmax.f32 %v802_v8, %v803_v13  ;;  %2896 = vmatpush1.msk.msra.mxu0 %vm1335_vm8, %v1526_v40 }
  0xb4   : > { %v817_v62 = vmax.f32 %v815_v18, %v816_v28  ;;  %v830_v48 = vmax.f32 %v828_v59, %v829_v11  ;;  %v842_v41 = vrot.slane %v841_v37, 2  ;;  %v855_v53 = vrot.slane %v854_v10, 2 }
  0xb5   : > { %v780_v3 = vmax.f32 %v778_v4, %v779_v61  ;;  %v793_v43 = vmax.f32 %v791_v44, %v792_v60  ;;  %v805_v38 = vrot.slane %v804_v52, 1  ;;  %v5048_v47 = vrot.slane %v3504_v56, 4  ;;  %v3113_v44 = vld [vmem:[%s3457_s13 + $0x20] sm:$0xff] }
  0xb6   : > { %v818_v14 = vrot.slane %v817_v62, 1  ;;  %v831_v35 = vrot.slane %v830_v48, 1  ;;  %v843_v42 = vmax.f32 %v841_v37, %v842_v41  ;;  %v856_v24 = vmax.f32 %v854_v10, %v855_v53 }
  0xb7   : > { %v756_v16 = vmax.f32 %v3111_v20, %v5048_v47  ;;  %v806_v34 = vmax.f32 %v804_v52, %v805_v38  ;;  %v1599_v29 = vsel %vm1260_vm1, %v780_v3, %v767_v32  ;;  %v5049_v8 = vrot.slane %v3507_v57, 4  ;;  %v3114_v57 = vld [vmem:[%s3457_s13 + $0x30] sm:$0xff]  ;;  %v3115_v3 = vld [vmem:[%s3457_s13 + $0x40] sm:$0xff] }
  0xb8   : > { %v819_v59 = vmax.f32 %v817_v62, %v818_v14  ;;  %v832_v49 = vmax.f32 %v830_v48, %v831_v35  ;;  %v844_v45 = vrot.slane %v843_v42, 1  ;;  %v857_v40 = vrot.slane %v856_v24, 1  ;;  %v3116_v38 = vld [vmem:[%s3457_s13 + $0x50] sm:$0xff] }
  0xb9   : > { %v757_v2 = vrot.slane %v756_v16, 2  ;;  %v769_v18 = vmax.f32 %v3112_v0, %v5049_v8  ;;  %v1600_v56 = vsel %vm1262_vm2, %v793_v43, %v1599_v29  ;;  %v5050_v13 = vrot.slane %v3510_v58, 4  ;;  %v3117_v0 = vld [vmem:[%s3457_s13 + $0x60] sm:$0xff] }
  0xba   : > { %v845_v11 = vmax.f32 %v843_v42, %v844_v45  ;;  %v858_v37 = vmax.f32 %v856_v24, %v857_v40  ;;  %v1601_v10 = vsel %vm1264_vm3, %v806_v34, %v1600_v56  ;;  %v5051_v32 = vrot.slane %v3514_v63, 4 }
  0xbb   : > { %v758_v27 = vmax.f32 %v756_v16, %v757_v2  ;;  %v770_v4 = vrot.slane %v769_v18, 2  ;;  %v782_v28 = vmax.f32 %v3113_v44, %v5050_v13  ;;  %v1602_v60 = vsel %vm1266_vm4, %v819_v59, %v1601_v10 }
  0xbc   : > { %v795_v61 = vmax.f32 %v3114_v57, %v5051_v32  ;;  %v1603_v41 = vsel %vm1268_vm5, %v832_v49, %v1602_v60  ;;  %v5052_v58 = vrot.slane %v3523_v6, 4  ;;  %v5053_v20 = vrot.slane %v3526_v7, 4  ;;  %v3120_v60 = vld [vmem:[%s3457_s13 + $0x98] sm:$0xff] }
  0xbd   : > { %v759_v52 = vrot.slane %v758_v27, 1  ;;  %v771_v62 = vmax.f32 %v769_v18, %v770_v4  ;;  %v783_v48 = vrot.slane %v782_v28, 2  ;;  %v1604_v63 = vsel %vm1270_vm6, %v845_v11, %v1603_v41  ;;  %v3118_v18 = vld [vmem:[%s3457_s13 + $0x70] sm:$0xff] }
  0xbe   : > { %v796_v53 = vrot.slane %v795_v61, 2  ;;  %v808_v43 = vmax.f32 %v3115_v3, %v5052_v58  ;;  %v821_v47 = vmax.f32 %v3116_v38, %v5053_v20  ;;  %v1605_v42 = vsel %vm1272_vm7, %v858_v37, %v1604_v63  ;;  %v3121_v38 = vld [vmem:[%s3457_s13 + $0xa8] sm:$0xff] }
  0xbf   : > { %v760_v16 = vmax.f32 %v758_v27, %v759_v52  ;;  %v772_v14 = vrot.slane %v771_v62, 1  ;;  %v784_v35 = vmax.f32 %v782_v28, %v783_v48  ;;  %2891 = vmatprep.mubr.msk.f32.mxu1 %vm344_vm0, %v1605_v42  ;;  %v5054_v8 = vrot.slane %v3535_v36, 4  ;;  %2897 = vmatprep.mubr.msk.f32.mxu0 %vm344_vm0, %v1605_v42  ;;  %v3119_v27 = vld [vmem:[%s3457_s13 + $0x88] sm:$0xff] }
  0xc0   : > { %v797_v24 = vmax.f32 %v795_v61, %v796_v53  ;;  %v809_v34 = vrot.slane %v808_v43, 2  ;;  %v822_v29 = vrot.slane %v821_v47, 2  ;;  %v5055_v59 = vrot.slane %v3551_v25, 4 }
  0xc1   : > { %v773_v6 = vmax.f32 %v771_v62, %v772_v14  ;;  %v785_v2 = vrot.slane %v784_v35, 1  ;;  %v834_v7 = vmax.f32 %v3117_v0, %v5054_v8  ;;  %v865_v4 = vsel %vm344_vm0, %v3119_v27, -inf  ;;  %v3122_v14 = vld [vmem:[%s3457_s13 + $0xb8] sm:$0xff]  ;;  %v3123_v8 = vld [vmem:[%s3457_s13 + $0xc8] sm:$0xff] }
  0xc2   : > { %v847_v49 = vmax.f32 %v3118_v18, %v5055_v59  ;;  %v798_v45 = vrot.slane %v797_v24, 1  ;;  %v810_v40 = vmax.f32 %v808_v43, %v809_v34  ;;  %v823_v56 = vmax.f32 %v821_v47, %v822_v29 }
  0xc3   : > { %v786_v44 = vmax.f32 %v784_v35, %v785_v2  ;;  %v835_v13 = vrot.slane %v834_v7, 2  ;;  %v1592_v11 = vsel %vm1260_vm1, %v773_v6, %v760_v16  ;;  %v866_v25 = vrot.slane %v865_v4, 4 }
  0xc4   : > { %v848_v28 = vrot.slane %v847_v49, 2  ;;  %v799_v36 = vmax.f32 %v797_v24, %v798_v45  ;;  %v811_v37 = vrot.slane %v810_v40, 1  ;;  %v824_v10 = vrot.slane %v823_v56, 1  ;;  %v3124_v45 = vld [vmem:[%s3457_s13 + $0xd8] sm:$0xff] }
  0xc5   : > { %v836_v57 = vmax.f32 %v834_v7, %v835_v13  ;;  %v1593_v61 = vsel %vm1262_vm2, %v786_v44, %v1592_v11  ;;  %v878_v52 = vsel %vm344_vm0, %v3120_v60, -inf  ;;  %v867_v53 = vmax.f32 %v865_v4, %v866_v25 }
  0xc6   : > { %v849_v32 = vmax.f32 %v847_v49, %v848_v28  ;;  %v812_v62 = vmax.f32 %v810_v40, %v811_v37  ;;  %v825_v48 = vmax.f32 %v823_v56, %v824_v10  ;;  %v1594_v41 = vsel %vm1264_vm3, %v799_v36, %v1593_v61  ;;  %v3125_v36 = vld [vmem:[%s3457_s13 + $0xe8] sm:$0xff] }
  0xc7   : > { %v837_v3 = vrot.slane %v836_v57, 1  ;;  %v879_v43 = vrot.slane %v878_v52, 4  ;;  %v891_v20 = vsel %vm344_vm0, %v3121_v38, -inf  ;;  %v868_v63 = vrot.slane %v867_v53, 2 }
  0xc8   : > { %v850_v58 = vrot.slane %v849_v32, 1  ;;  %v1595_v47 = vsel %vm1266_vm4, %v812_v62, %v1594_v41  ;;  %v892_v16 = vrot.slane %v891_v20, 4  ;;  %v904_v35 = vsel %vm344_vm0, %v3122_v14, -inf  ;;  %v3126_v62 = vld [vmem:[%s3457_s13 + $0xf8] sm:$0xff] }
  0xc9   : > { %v838_v42 = vmax.f32 %v836_v57, %v837_v3  ;;  %v1596_v34 = vsel %vm1268_vm5, %v825_v48, %v1595_v47  ;;  %v880_v29 = vmax.f32 %v878_v52, %v879_v43  ;;  %v869_v6 = vmax.f32 %v867_v53, %v868_v63  ;;  %v3127_v47 = vld [vmem:[%s3457_s13 + $0x80] sm:$0xff] }
  0xca   : > { %v851_v24 = vmax.f32 %v849_v32, %v850_v58  ;;  %v893_v2 = vmax.f32 %v891_v20, %v892_v16  ;;  %v905_v0 = vrot.slane %v904_v35, 4  ;;  %v917_v7 = vsel %vm344_vm0, %v3123_v8, -inf }
  0xcb   : > { %v1597_v18 = vsel %vm1270_vm6, %v838_v42, %v1596_v34  ;;  %v881_v59 = vrot.slane %v880_v29, 2  ;;  %v918_v49 = vrot.slane %v917_v7, 4  ;;  %v930_v40 = vsel %vm344_vm0, %v3124_v45, -inf  ;;  %v3128_v45 = vld [vmem:[%s3457_s13 + $0x90] sm:$0xff] }
  0xcc   : > { %v1598_v56 = vsel %vm1272_vm7, %v851_v24, %v1597_v18  ;;  %v870_v27 = vrot.slane %v869_v6, 1  ;;  %v894_v4 = vrot.slane %v893_v2, 2  ;;  %v906_v44 = vmax.f32 %v904_v35, %v905_v0 }
  0xcd   : > { %1737 = vmatmul.mubr.f32.vlgmr.msra.gmra.mrb[0].mxu1 %v1598_v56  ;;  %1826 = vmatmul.mubr.f32.vlgmr.msra.gmra.mrb[8].mxu0 %v1598_v56  ;;  %v882_v13 = vmax.f32 %v880_v29, %v881_v59  ;;  %v919_v28 = vmax.f32 %v917_v7, %v918_v49  ;;  %v931_v11 = vrot.slane %v930_v40, 4  ;;  %v943_v37 = vsel %vm344_vm0, %v3125_v36, -inf }
  0xce   : > { %v871_v10 = vmax.f32 %v869_v6, %v870_v27  ;;  %v895_v25 = vmax.f32 %v893_v2, %v894_v4  ;;  %v907_v57 = vrot.slane %v906_v44, 2  ;;  %v944_v32 = vrot.slane %v943_v37, 4 }
  0xcf   : > { %v883_v61 = vrot.slane %v882_v13, 1  ;;  %v920_v60 = vrot.slane %v919_v28, 2  ;;  %v932_v52 = vmax.f32 %v930_v40, %v931_v11  ;;  %v956_v48 = vsel %vm344_vm0, %v3126_v62, -inf }
  0xd0   : > { %v896_v41 = vrot.slane %v895_v25, 1  ;;  %v908_v53 = vmax.f32 %v906_v44, %v907_v57  ;;  %v945_v3 = vmax.f32 %v943_v37, %v944_v32  ;;  %v957_v58 = vrot.slane %v956_v48, 4 }
  0xd1   : > { %v884_v43 = vmax.f32 %v882_v13, %v883_v61  ;;  %v921_v38 = vmax.f32 %v919_v28, %v920_v60  ;;  %v933_v20 = vrot.slane %v932_v52, 2  ;;  %v5056_v63 = vrot.slane %v3658_v39, 4  ;;  %v3129_v13 = vld [vmem:[%s3457_s13 + $0xa0] sm:$0xff] }
  0xd2   : > { %v897_v14 = vmax.f32 %v895_v25, %v896_v41  ;;  %v909_v35 = vrot.slane %v908_v53, 1  ;;  %v946_v42 = vrot.slane %v945_v3, 2  ;;  %v958_v24 = vmax.f32 %v956_v48, %v957_v58 }
  0xd3   : > { %v860_v16 = vmax.f32 %v3127_v47, %v5056_v63  ;;  %v922_v34 = vrot.slane %v921_v38, 1  ;;  %v934_v29 = vmax.f32 %v932_v52, %v933_v20  ;;  %v1613_v6 = vsel %vm1260_vm1, %v884_v43, %v871_v10 }
  0xd4   : > { %v910_v0 = vmax.f32 %v908_v53, %v909_v35  ;;  %v947_v8 = vmax.f32 %v945_v3, %v946_v42  ;;  %v959_v7 = vrot.slane %v958_v24, 2  ;;  %v1614_v18 = vsel %vm1262_vm2, %v897_v14, %v1613_v6  ;;  %v3133_v35 = vld [vmem:[%s3457_s13 + $0xe0] sm:$0xff] }
  0xd5   : > { %v861_v2 = vrot.slane %v860_v16, 2  ;;  %v923_v59 = vmax.f32 %v921_v38, %v922_v34  ;;  %v935_v49 = vrot.slane %v934_v29, 1  ;;  %v5057_v40 = vrot.slane %v3662_v19, 4  ;;  %v3130_v19 = vld [vmem:[%s3457_s13 + $0xb0] sm:$0xff]  ;;  %v5062_v42 = vld [vmem:[#allocation5_spill] sm:$0xff] }
  0xd6   : > { %v948_v27 = vrot.slane %v947_v8, 1  ;;  %v960_v4 = vmax.f32 %v958_v24, %v959_v7  ;;  %v1615_v44 = vsel %vm1264_vm3, %v910_v0, %v1614_v18  ;;  %v5058_v28 = vrot.slane %v3669_v50, 4  ;;  %v3131_v50 = vld [vmem:[%s3457_s13 + $0xc0] sm:$0xff]  ;;  %v5064_v0 = vld [vmem:[#allocation6_spill] sm:$0xff] }
  0xd7   : > { %v862_v39 = vmax.f32 %v860_v16, %v861_v2  ;;  %v873_v56 = vmax.f32 %v3128_v45, %v5057_v40  ;;  %v936_v36 = vmax.f32 %v934_v29, %v935_v49  ;;  %v1616_v37 = vsel %vm1266_vm4, %v923_v59, %v1615_v44  ;;  %v3132_v16 = vld [vmem:[%s3457_s13 + $0xd0] sm:$0xff] }
  0xd8   : > { %v886_v11 = vmax.f32 %v3129_v13, %v5058_v28  ;;  %v949_v57 = vmax.f32 %v947_v8, %v948_v27  ;;  %v961_v32 = vrot.slane %v960_v4, 1  ;;  %v5059_v60 = vrot.slane %v3676_v5, 4  ;;  %v3134_v2 = vld [vmem:[%s3457_s13 + $0xf0] sm:$0xff] }
  0xd9   : > { %v863_v10 = vrot.slane %v862_v39, 1  ;;  %v874_v25 = vrot.slane %v873_v56, 2  ;;  %v1617_v62 = vsel %vm1268_vm5, %v936_v36, %v1616_v37  ;;  %v5060_v53 = vrot.slane %v3681_v54, 4 }
  0xda   : > { %v887_v61 = vrot.slane %v886_v11, 2  ;;  %v899_v52 = vmax.f32 %v3130_v19, %v5059_v60  ;;  %v962_v58 = vmax.f32 %v960_v4, %v961_v32  ;;  %v1618_v43 = vsel %vm1270_vm6, %v949_v57, %v1617_v62 }
  0xdb   : > { %v864_v48 = vmax.f32 %v862_v39, %v863_v10  ;;  %v875_v41 = vmax.f32 %v873_v56, %v874_v25  ;;  %v912_v3 = vmax.f32 %v3131_v50, %v5060_v53  ;;  %v5061_v5 = vrot.slane %v3686_v55, 4  ;;  %v3135_v56 = vld [vmem:[%s3457_s13 + $0x108] sm:$0xff] }
  0xdc   : > { %v888_v38 = vmax.f32 %v886_v11, %v887_v61  ;;  %v900_v20 = vrot.slane %v899_v52, 2  ;;  %v5063_v24 = vrot.slane %v5062_v42, 4  ;;  %v1619_v29 = vsel %vm1272_vm7, %v962_v58, %v1618_v43  ;;  %v3136_v61 = vld [vmem:[%s3457_s13 + $0x118] sm:$0xff] }
  0xdd   : > { %v876_v47 = vrot.slane %v875_v41, 1  ;;  %v913_v63 = vrot.slane %v912_v3, 2  ;;  %v925_v14 = vmax.f32 %v3132_v16, %v5061_v5  ;;  %v5065_v8 = vrot.slane %v5064_v0, 4  ;;  %2892 = vmatprep.mubr.msk.f32.mxu1 %vm344_vm0, %v1619_v29  ;;  %2898 = vmatprep.mubr.msk.f32.mxu0 %vm344_vm0, %v1619_v29  ;;  %v3138_v16 = vld [vmem:[%s3457_s13 + $0x138] sm:$0xff] }
  0xde   : > { %v938_v34 = vmax.f32 %v3133_v35, %v5063_v24  ;;  %v889_v54 = vrot.slane %v888_v38, 1  ;;  %v901_v6 = vmax.f32 %v899_v52, %v900_v20  ;;  %v969_v27 = vsel %vm344_vm0, %v3135_v56, -inf  ;;  %v3140_v42 = vld [vmem:[%s3457_s13 + $0x158] sm:$0xff] }
  0xdf   : > { %v951_v7 = vmax.f32 %v3134_v2, %v5065_v8  ;;  %v877_v18 = vmax.f32 %v875_v41, %v876_v47  ;;  %v914_v59 = vmax.f32 %v912_v3, %v913_v63  ;;  %v926_v49 = vrot.slane %v925_v14, 2  ;;  %v3137_v3 = vld [vmem:[%s3457_s13 + $0x128] sm:$0xff] }
  0xe0   : > { %v939_v55 = vrot.slane %v938_v34, 2  ;;  %v890_v39 = vmax.f32 %v888_v38, %v889_v54  ;;  %v902_v45 = vrot.slane %v901_v6, 1  ;;  %v970_v10 = vrot.slane %v969_v27, 4 }
  0xe1   : > { %v952_v40 = vrot.slane %v951_v7, 2  ;;  %v915_v4 = vrot.slane %v914_v59, 1  ;;  %v927_v44 = vmax.f32 %v925_v14, %v926_v49  ;;  %v1606_v28 = vsel %vm1260_vm1, %v877_v18, %v864_v48  ;;  %v3139_v14 = vld [vmem:[%s3457_s13 + $0x148] sm:$0xff] }
  0xe2   : > { %v940_v13 = vmax.f32 %v938_v34, %v939_v55  ;;  %v903_v11 = vmax.f32 %v901_v6, %v902_v45  ;;  %v1607_v37 = vsel %vm1262_vm2, %v890_v39, %v1606_v28  ;;  %v982_v19 = vsel %vm344_vm0, %v3136_v61, -inf  ;;  %v3141_v55 = vld [vmem:[%s3457_s13 + $0x168] sm:$0xff]  ;;  %v3142_v28 = vld [vmem:[%s3457_s13 + $0x178] sm:$0xff] }
  0xe3   : > { %v953_v36 = vmax.f32 %v951_v7, %v952_v40  ;;  %v916_v25 = vmax.f32 %v914_v59, %v915_v4  ;;  %v928_v57 = vrot.slane %v927_v44, 1  ;;  %v971_v62 = vmax.f32 %v969_v27, %v970_v10 }
  0xe4   : > { %v941_v32 = vrot.slane %v940_v13, 1  ;;  %v1608_v52 = vsel %vm1264_vm3, %v903_v11, %v1607_v37  ;;  %v983_v48 = vrot.slane %v982_v19, 4  ;;  %v995_v58 = vsel %vm344_vm0, %v3137_v3, -inf }
  0xe5   : > { %v954_v60 = vrot.slane %v953_v36, 1  ;;  %v929_v41 = vmax.f32 %v927_v44, %v928_v57  ;;  %v1609_v53 = vsel %vm1266_vm4, %v916_v25, %v1608_v52  ;;  %v972_v38 = vrot.slane %v971_v62, 2 }
  0xe6   : > { %v942_v50 = vmax.f32 %v940_v13, %v941_v32  ;;  %v984_v20 = vmax.f32 %v982_v19, %v983_v48  ;;  %v996_v47 = vrot.slane %v995_v58, 4  ;;  %v1008_v5 = vsel %vm344_vm0, %v3138_v16, -inf  ;;  %v3143_v19 = vld [vmem:[%s3457_s13 + $0x100] sm:$0xff] }
  0xe7   : > { %v955_v43 = vmax.f32 %v953_v36, %v954_v60  ;;  %v1610_v63 = vsel %vm1268_vm5, %v929_v41, %v1609_v53  ;;  %v1021_v35 = vsel %vm344_vm0, %v3139_v14, -inf  ;;  %v1034_v24 = vsel %vm344_vm0, %v3140_v42, -inf  ;;  %v3144_v14 = vld [vmem:[%s3457_s13 + $0x110] sm:$0xff] }
  0xe8   : > { %v1611_v34 = vsel %vm1270_vm6, %v942_v50, %v1610_v63  ;;  %v973_v29 = vmax.f32 %v971_v62, %v972_v38  ;;  %v985_v54 = vrot.slane %v984_v20, 2  ;;  %v997_v6 = vmax.f32 %v995_v58, %v996_v47 }
  0xe9   : > { %v1612_v2 = vsel %vm1272_vm7, %v955_v43, %v1611_v34  ;;  %v1009_v0 = vrot.slane %v1008_v5, 4  ;;  %v1022_v8 = vrot.slane %v1021_v35, 4  ;;  %v1035_v7 = vrot.slane %v1034_v24, 4 }
  0xea   : > { %1743 = vmatmul.mubr.f32.gmra.mrb[2].mxu1 %v1612_v2  ;;  %1832 = vmatmul.mubr.f32.gmra.mrb[10].mxu0 %v1612_v2  ;;  %v974_v18 = vrot.slane %v973_v29, 1  ;;  %v986_v59 = vmax.f32 %v984_v20, %v985_v54  ;;  %v998_v49 = vrot.slane %v997_v6, 2  ;;  %v1047_v39 = vsel %vm344_vm0, %v3141_v55, -inf  ;;  %v3146_v55 = vld [vmem:[%s3457_s13 + $0x130] sm:$0xff] }
  0xeb   : > { %v1010_v45 = vmax.f32 %v1008_v5, %v1009_v0  ;;  %v1023_v40 = vmax.f32 %v1021_v35, %v1022_v8  ;;  %v1036_v56 = vmax.f32 %v1034_v24, %v1035_v7  ;;  %v1048_v27 = vrot.slane %v1047_v39, 4  ;;  %v3145_v8 = vld [vmem:[%s3457_s13 + $0x120] sm:$0xff] }
  0xec   : > { %v975_v4 = vmax.f32 %v973_v29, %v974_v18  ;;  %v987_v44 = vrot.slane %v986_v59, 1  ;;  %v999_v13 = vmax.f32 %v997_v6, %v998_v49  ;;  %v1060_v11 = vsel %vm344_vm0, %v3142_v28, -inf }
  0xed   : > { %v1011_v36 = vrot.slane %v1010_v45, 2  ;;  %v1024_v37 = vrot.slane %v1023_v40, 2  ;;  %v1037_v10 = vrot.slane %v1036_v56, 2  ;;  %v1049_v25 = vmax.f32 %v1047_v39, %v1048_v27 }
  0xee   : > { %v988_v57 = vmax.f32 %v986_v59, %v987_v44  ;;  %v1000_v32 = vrot.slane %v999_v13, 1  ;;  %v1061_v61 = vrot.slane %v1060_v11, 4  ;;  %v5066_v60 = vrot.slane %v4073_v23, 4 }
  0xef   : > { %v1012_v62 = vmax.f32 %v1010_v45, %v1011_v36  ;;  %v1025_v48 = vmax.f32 %v1023_v40, %v1024_v37  ;;  %v1038_v41 = vmax.f32 %v1036_v56, %v1037_v10  ;;  %v1050_v50 = vrot.slane %v1049_v25, 2  ;;  %v3147_v45 = vld [vmem:[%s3457_s13 + $0x140] sm:$0xff] }
  0xf0   : > { %v964_v52 = vmax.f32 %v3143_v19, %v5066_v60  ;;  %v1001_v53 = vmax.f32 %v999_v13, %v1000_v32  ;;  %v1062_v3 = vmax.f32 %v1060_v11, %v1061_v61  ;;  %v1627_v58 = vsel %vm1260_vm1, %v988_v57, %v975_v4  ;;  %v3149_v60 = vld [vmem:[%s3457_s13 + $0x160] sm:$0xff] }
  0xf1   : > { %v1013_v38 = vrot.slane %v1012_v62, 1  ;;  %v1026_v20 = vrot.slane %v1025_v48, 1  ;;  %v1039_v47 = vrot.slane %v1038_v41, 1  ;;  %v1051_v63 = vmax.f32 %v1049_v25, %v1050_v50  ;;  %v3148_v25 = vld [vmem:[%s3457_s13 + $0x150] sm:$0xff] }
  0xf2   : > { %v965_v43 = vrot.slane %v964_v52, 2  ;;  %v1063_v16 = vrot.slane %v1062_v3, 2  ;;  %v1628_v23 = vsel %vm1262_vm2, %v1001_v53, %v1627_v58  ;;  %v5067_v35 = vrot.slane %v4079_v21, 4  ;;  %v3150_v53 = vld [vmem:[%s3457_s13 + $0x170] sm:$0xff] }
  0xf3   : > { %v1014_v24 = vmax.f32 %v1012_v62, %v1013_v38  ;;  %v1027_v34 = vmax.f32 %v1025_v48, %v1026_v20  ;;  %v1040_v29 = vmax.f32 %v1038_v41, %v1039_v47  ;;  %v1052_v54 = vrot.slane %v1051_v63, 1 }
  0xf4   : > { %v966_v5 = vmax.f32 %v964_v52, %v965_v43  ;;  %v977_v42 = vmax.f32 %v3144_v14, %v5067_v35  ;;  %v1064_v6 = vmax.f32 %v1062_v3, %v1063_v16  ;;  %v5068_v7 = vrot.slane %v4085_v33, 4  ;;  %v3151_v16 = vld [vmem:[%s3457_s13 + $0x188] sm:$0xff] }
  0xf5   : > { %v1053_v59 = vmax.f32 %v1051_v63, %v1052_v54  ;;  %v1629_v49 = vsel %vm1264_vm3, %v1014_v24, %v1628_v23  ;;  %v5069_v39 = vrot.slane %v4091_v9, 4  ;;  %v5070_v40 = vrot.slane %v4099_v12, 4 }
  0xf6   : > { %v967_v2 = vrot.slane %v966_v5, 1  ;;  %v978_v0 = vrot.slane %v977_v42, 2  ;;  %v990_v18 = vmax.f32 %v3145_v8, %v5068_v7  ;;  %v1065_v27 = vrot.slane %v1064_v6, 1  ;;  %v3153_v8 = vld [vmem:[%s3457_s13 + $0x1a8] sm:$0xff] }
  0xf7   : > { %v1003_v21 = vmax.f32 %v3146_v55, %v5069_v39  ;;  %v1016_v56 = vmax.f32 %v3147_v45, %v5070_v40  ;;  %v1630_v4 = vsel %vm1266_vm4, %v1027_v34, %v1629_v49  ;;  %v5071_v12 = vrot.slane %v4120_v26, 4 }
  0xf8   : > { %v968_v44 = vmax.f32 %v966_v5, %v967_v2  ;;  %v979_v13 = vmax.f32 %v977_v42, %v978_v0  ;;  %v1631_v33 = vsel %vm1268_vm5, %v1040_v29, %v1630_v4  ;;  %v991_v28 = vrot.slane %v990_v18, 2  ;;  %v3152_v29 = vld [vmem:[%s3457_s13 + $0x198] sm:$0xff] }
  0xf9   : > { %v1004_v11 = vrot.slane %v1003_v21, 2  ;;  %v1017_v36 = vrot.slane %v1016_v56, 2  ;;  %v1066_v37 = vmax.f32 %v1064_v6, %v1065_v27  ;;  %v1632_v9 = vsel %vm1270_vm6, %v1053_v59, %v1631_v33 }
  0xfa   : > { %v980_v10 = vrot.slane %v979_v13, 1  ;;  %v1029_v57 = vmax.f32 %v3148_v25, %v5071_v12  ;;  %v992_v32 = vmax.f32 %v990_v18, %v991_v28  ;;  %v5072_v52 = vrot.slane %v4131_v22, 4  ;;  %v3156_v12 = vld [vmem:[%s3457_s13 + $0x1d8] sm:$0xff] }
  0xfb   : > { %v1005_v61 = vmax.f32 %v1003_v21, %v1004_v11  ;;  %v1018_v19 = vmax.f32 %v1016_v56, %v1017_v36  ;;  %v1633_v48 = vsel %vm1272_vm7, %v1066_v37, %v1632_v9  ;;  %v5073_v3 = vrot.slane %v4138_v1, 4 }
  0xfc   : > { %v1042_v62 = vmax.f32 %v3149_v60, %v5072_v52  ;;  %v981_v41 = vmax.f32 %v979_v13, %v980_v10  ;;  %v1030_v50 = vrot.slane %v1029_v57, 2  ;;  %2893 = vmatprep.mubr.msk.f32.mxu1 %vm344_vm0, %v1633_v48  ;;  %v993_v26 = vrot.slane %v992_v32, 1  ;;  %2899 = vmatprep.mubr.msk.f32.mxu0 %vm344_vm0, %v1633_v48  ;;  %v3155_v10 = vld [vmem:[%s3457_s13 + $0x1c8] sm:$0xff] }
  0xfd   : > { %v1055_v58 = vmax.f32 %v3150_v53, %v5073_v3  ;;  %v1006_v43 = vrot.slane %v1005_v61, 1  ;;  %v1019_v38 = vrot.slane %v1018_v19, 1  ;;  %v1073_v23 = vsel %vm344_vm0, %v3151_v16, -inf  ;;  %v3157_v48 = vld [vmem:[%s3457_s13 + $0x1e8] sm:$0xff] }
  0xfe   : > { %v1043_v20 = vrot.slane %v1042_v62, 2  ;;  %v1031_v22 = vmax.f32 %v1029_v57, %v1030_v50  ;;  %v1620_v63 = vsel %vm1260_vm1, %v981_v41, %v968_v44  ;;  %v994_v5 = vmax.f32 %v992_v32, %v993_v26  ;;  %v3154_v44 = vld [vmem:[%s3457_s13 + $0x1b8] sm:$0xff] }
  0xff   : > { %v1056_v47 = vrot.slane %v1055_v58, 2  ;;  %v1007_v1 = vmax.f32 %v1005_v61, %v1006_v43  ;;  %v1020_v14 = vmax.f32 %v1018_v19, %v1019_v38  ;;  %v1074_v34 = vrot.slane %v1073_v23, 4  ;;  %v3158_v50 = vld [vmem:[%s3457_s13 + $0x1f8] sm:$0xff] }
 0x100   : > { %v1044_v35 = vmax.f32 %v1042_v62, %v1043_v20  ;;  %v1032_v42 = vrot.slane %v1031_v22, 1  ;;  %v1086_v54 = vsel %vm344_vm0, %v3152_v29, -inf  ;;  %v1621_v2 = vsel %vm1262_vm2, %v994_v5, %v1620_v63 }
 0x101   : > { %v1057_v24 = vmax.f32 %v1055_v58, %v1056_v47  ;;  %v1087_v0 = vrot.slane %v1086_v54, 4  ;;  %v1099_v7 = vsel %vm344_vm0, %v3153_v8, -inf  ;;  %v1622_v49 = vsel %vm1264_vm3, %v1007_v1, %v1621_v2 }
 0x102   : > { %v1045_v6 = vrot.slane %v1044_v35, 1  ;;  %v1033_v18 = vmax.f32 %v1031_v22, %v1032_v42  ;;  %v1075_v55 = vmax.f32 %v1073_v23, %v1074_v34  ;;  %v1623_v21 = vsel %vm1266_vm4, %v1020_v14, %v1622_v49  ;;  %v3159_v42 = vld [vmem:[%s3457_s13 + $0x180] sm:$0xff] }
 0x103   : > { %v1058_v59 = vrot.slane %v1057_v24, 1  ;;  %v1088_v45 = vmax.f32 %v1086_v54, %v1087_v0  ;;  %v1100_v40 = vrot.slane %v1099_v7, 4  ;;  %v1112_v13 = vsel %vm344_vm0, %v3154_v44, -inf }
 0x104   : > { %v1046_v39 = vmax.f32 %v1044_v35, %v1045_v6  ;;  %v1624_v27 = vsel %vm1268_vm5, %v1033_v18, %v1623_v21  ;;  %v1076_v4 = vrot.slane %v1075_v55, 2  ;;  %v1113_v36 = vrot.slane %v1112_v13, 4 }
 0x105   : > { %v1059_v56 = vmax.f32 %v1057_v24, %v1058_v59  ;;  %v1089_v28 = vrot.slane %v1088_v45, 2  ;;  %v1101_v11 = vmax.f32 %v1099_v7, %v1100_v40  ;;  %v1125_v25 = vsel %vm344_vm0, %v3155_v10, -inf }
 0x106   : > { %v1625_v33 = vsel %vm1270_vm6, %v1046_v39, %v1624_v27  ;;  %v1077_v9 = vmax.f32 %v1075_v55, %v1076_v4  ;;  %v1138_v57 = vsel %vm344_vm0, %v3156_v12, -inf  ;;  %v1114_v19 = vmax.f32 %v1112_v13, %v1113_v36  ;;  %v3160_v39 = vld [vmem:[%s3457_s13 + $0x190] sm:$0xff] }
 0x107   : > { %v1626_v37 = vsel %vm1272_vm7, %v1059_v56, %v1625_v33  ;;  %v1090_v32 = vmax.f32 %v1088_v45, %v1089_v28  ;;  %v1102_v61 = vrot.slane %v1101_v11, 2  ;;  %v1126_v60 = vrot.slane %v1125_v25, 4  ;;  %v3161_v33 = vld [vmem:[%s3457_s13 + $0x1a0] sm:$0xff] }
 0x108   : > { %1749 = vmatmul.mubr.f32.gmra.mrb[4].mxu1 %v1626_v37  ;;  %1838 = vmatmul.mubr.f32.gmra.mrb[12].mxu0 %v1626_v37  ;;  %v1078_v52 = vrot.slane %v1077_v9, 1  ;;  %v1139_v62 = vrot.slane %v1138_v57, 4  ;;  %v1151_v41 = vsel %vm344_vm0, %v3157_v48, -inf  ;;  %v1164_v53 = vsel %vm344_vm0, %v3158_v50, -inf  ;;  %v3163_v50 = vld [vmem:[%s3457_s13 + $0x1c0] sm:$0xff] }
 0x109   : > { %v1091_v3 = vrot.slane %v1090_v32, 1  ;;  %v1103_v58 = vmax.f32 %v1101_v11, %v1102_v61  ;;  %v1115_v26 = vrot.slane %v1114_v19, 2  ;;  %v1127_v43 = vmax.f32 %v1125_v25, %v1126_v60 }
 0x10a   : > { %v1079_v38 = vmax.f32 %v1077_v9, %v1078_v52  ;;  %v1140_v20 = vmax.f32 %v1138_v57, %v1139_v62  ;;  %v1152_v22 = vrot.slane %v1151_v41, 4  ;;  %v1165_v47 = vrot.slane %v1164_v53, 4  ;;  %v3162_v57 = vld [vmem:[%s3457_s13 + $0x1b0] sm:$0xff] }
 0x10b   : > { %v1092_v63 = vmax.f32 %v1090_v32, %v1091_v3  ;;  %v1104_v16 = vrot.slane %v1103_v58, 1  ;;  %v1116_v23 = vmax.f32 %v1114_v19, %v1115_v26  ;;  %v1128_v5 = vrot.slane %v1127_v43, 2  ;;  %v3164_v26 = vld [vmem:[%s3457_s13 + $0x1d0] sm:$0xff] }
 0x10c   : > { %v1141_v1 = vrot.slane %v1140_v20, 2  ;;  %v1153_v14 = vmax.f32 %v1151_v41, %v1152_v22  ;;  %v1166_v35 = vmax.f32 %v1164_v53, %v1165_v47  ;;  %v5074_v24 = vrot.slane %v4205_v17, 4 }
 0x10d   : > { %v1105_v29 = vmax.f32 %v1103_v58, %v1104_v16  ;;  %v1117_v54 = vrot.slane %v1116_v23, 1  ;;  %v1129_v6 = vmax.f32 %v1127_v43, %v1128_v5  ;;  %v1641_v2 = vsel %vm1260_vm1, %v1092_v63, %v1079_v38  ;;  %v3165_v38 = vld [vmem:[%s3457_s13 + $0x1e0] sm:$0xff]  ;;  %v3166_v63 = vld [vmem:[%s3457_s13 + $0x1f0] sm:$0xff]  ;;  %v5082_v16 = vld [vmem:[#allocation8_spill] sm:$0xff] }
 0x10e   : > { %v1068_v34 = vmax.f32 %v3159_v42, %v5074_v24  ;;  %v1142_v0 = vmax.f32 %v1140_v20, %v1141_v1  ;;  %v1154_v8 = vrot.slane %v1153_v14, 2  ;;  %v1167_v7 = vrot.slane %v1166_v35, 2  ;;  %v5080_v20 = vld [vmem:[#allocation7_spill] sm:$0xff] }
 0x10f   : > { %v1118_v59 = vmax.f32 %v1116_v23, %v1117_v54  ;;  %v1130_v49 = vrot.slane %v1129_v6, 1  ;;  %v1642_v55 = vsel %vm1262_vm2, %v1105_v29, %v1641_v2  ;;  %v5075_v21 = vrot.slane %v4208_v30, 4  ;;  %v1862_v29 = vld [vmem:[%s4993_s4] sm:$0xff] }
 0x110   : > { %v1069_v18 = vrot.slane %v1068_v34, 2  ;;  %v1143_v17 = vrot.slane %v1142_v0, 1  ;;  %v1155_v40 = vmax.f32 %v1153_v14, %v1154_v8  ;;  %v1168_v56 = vmax.f32 %v1166_v35, %v1167_v7 }
 0x111   : > { %v1081_v45 = vmax.f32 %v3160_v39, %v5075_v21  ;;  %v1131_v4 = vmax.f32 %v1129_v6, %v1130_v49  ;;  %v1643_v44 = vsel %vm1264_vm3, %v1118_v59, %v1642_v55  ;;  %v5076_v28 = vrot.slane %v4212_v51, 4 }
 0x112   : > { %v1070_v27 = vmax.f32 %v1068_v34, %v1069_v18  ;;  %v1144_v36 = vmax.f32 %v1142_v0, %v1143_v17  ;;  %v1156_v37 = vrot.slane %v1155_v40, 1  ;;  %v1169_v9 = vrot.slane %v1168_v56, 1 }
 0x113   : > { %v1082_v13 = vrot.slane %v1081_v45, 2  ;;  %v1094_v11 = vmax.f32 %v3161_v33, %v5076_v28  ;;  %v1644_v30 = vsel %vm1266_vm4, %v1131_v4, %v1643_v44  ;;  %v5077_v32 = vrot.slane %v4215_v31, 4 }
 0x114   : > { %v1071_v10 = vrot.slane %v1070_v27, 1  ;;  %v1157_v19 = vmax.f32 %v1155_v40, %v1156_v37  ;;  %v1170_v60 = vmax.f32 %v1168_v56, %v1169_v9  ;;  %v1645_v51 = vsel %vm1268_vm5, %v1144_v36, %v1644_v30  ;;  %v1863_v40 = vld [vmem:[%s4993_s4 + $0x8] sm:$0xff] }
 0x115   : > { %v1083_v25 = vmax.f32 %v1081_v45, %v1082_v13  ;;  %v1095_v12 = vrot.slane %v1094_v11, 2  ;;  %v1107_v61 = vmax.f32 %v3162_v57, %v5077_v32  ;;  %v5078_v53 = vrot.slane %v4224_v46, 4 }
 0x116   : > { %v1072_v52 = vmax.f32 %v1070_v27, %v1071_v10  ;;  %v1646_v58 = vsel %vm1270_vm6, %v1157_v19, %v1645_v51  ;;  %v5079_v43 = vrot.slane %v4231_v15, 4  ;;  %v5081_v22 = vrot.slane %v5080_v20, 4  ;;  %v1984_v19 = vld [vmem:[%s4992_s3 + $0x8] sm:$0xff]  ;;  %v1994_v20 = vld [vmem:[%s4992_s3 + $0x58] sm:$0xff] }
 0x117   : > { %v1084_v62 = vrot.slane %v1083_v25, 1  ;;  %v1096_v48 = vmax.f32 %v1094_v11, %v1095_v12  ;;  %v1108_v41 = vrot.slane %v1107_v61, 2  ;;  %v1120_v3 = vmax.f32 %v3163_v50, %v5078_v53  ;;  %v1988_v53 = vld [vmem:[%s4992_s3 + $0x28] sm:$0xff] }
 0x118   : > { %v1133_v31 = vmax.f32 %v3164_v26, %v5079_v43  ;;  %v1146_v47 = vmax.f32 %v3165_v38, %v5081_v22  ;;  %v5083_v23 = vrot.slane %v5082_v16, 4  ;;  %v1647_v1 = vsel %vm1272_vm7, %v1170_v60, %v1646_v58  ;;  %v1986_v60 = vld [vmem:[%s4992_s3 + $0x18] sm:$0xff]  ;;  %v1987_v26 = vld [vmem:[%s4992_s3 + $0x20] sm:$0xff]  ;;  %v1989_v43 = vld [vmem:[%s4992_s3 + $0x30] sm:$0xff] }
 0x119   : > { %v1085_v14 = vmax.f32 %v1083_v25, %v1084_v62  ;;  %v1097_v35 = vrot.slane %v1096_v48, 1  ;;  %v1109_v46 = vmax.f32 %v1107_v61, %v1108_v41  ;;  %2894 = vmatprep.mubr.msk.f32.mxu1 %vm344_vm0, %v1647_v1  ;;  %v1121_v42 = vrot.slane %v1120_v3, 2  ;;  %2900 = vmatprep.mubr.msk.f32.mxu0 %vm344_vm0, %v1647_v1  ;;  %v1985_v62 = vld [vmem:[%s4992_s3 + $0x10] sm:$0xff]  ;;  %v1992_v38 = vld [vmem:[%s4992_s3 + $0x48] sm:$0xff] }
 0x11a   : > { %v1159_v5 = vmax.f32 %v3166_v63, %v5083_v23  ;;  %v1134_v24 = vrot.slane %v1133_v31, 2  ;;  %v1147_v34 = vrot.slane %v1146_v47, 2  ;;  %v3261_v59 = vmov 0   ;;  %v1993_v63 = vld [vmem:[%s4992_s3 + $0x50] sm:$0xff]  ;;  %v1996_v23 = vld [vmem:[%s4992_s3 + $0x68] sm:$0x1] }
 0x11b   : > { %v1098_v54 = vmax.f32 %v1096_v48, %v1097_v35  ;;  %v1110_v6 = vrot.slane %v1109_v46, 1  ;;  %v1634_v2 = vsel %vm1260_vm1, %v1085_v14, %v1072_v52  ;;  %v1122_v0 = vmax.f32 %v1120_v3, %v1121_v42  ;;  %3083 = vset.pattern.permute.xlu0 %v3261_v59  ;;  %v1983_v52 = vld [vmem:[%s4992_s3] sm:$0xff]  ;;  %v1990_v3 = vld [vmem:[%s4992_s3 + $0x38] sm:$0xff] }
 0x11c   : > { %v1160_v15 = vrot.slane %v1159_v5, 2  ;;  %v1135_v8 = vmax.f32 %v1133_v31, %v1134_v24  ;;  %v1148_v7 = vmax.f32 %v1146_v47, %v1147_v34  ;;  %1870 = vperm.xlu0 %3083, %v1862_v29   ;;  %v3262_v56 = vmov 1   ;;  %v1991_v47 = vld [vmem:[%s4992_s3 + $0x40] sm:$0xff] }
 0x11d   : > { %v1111_v49 = vmax.f32 %v1109_v46, %v1110_v6  ;;  %v1635_v55 = vsel %vm1262_vm2, %v1098_v54, %v1634_v2  ;;  %v1123_v39 = vrot.slane %v1122_v0, 1  ;;  %3084 = vset.pattern.permute.xlu1 %v3262_v56  ;;  %v3263_v36 = vmov 2  }
 0x11e   : > { %v1161_v18 = vmax.f32 %v1159_v5, %v1160_v15  ;;  %v1136_v21 = vrot.slane %v1135_v8, 1  ;;  %v1149_v45 = vrot.slane %v1148_v7, 1  ;;  %1907 = vperm.xlu1 %3084, %v1862_v29   ;;  %v5084_v10 = vmov 0.0   ;;  %v1995_v5 = vld [vmem:[%s4992_s3 + $0x60] sm:$0x1] }
 0x11f   : > { %v1636_v27 = vsel %vm1264_vm3, %v1111_v49, %v1635_v55  ;;  %v1124_v4 = vmax.f32 %v1122_v0, %v1123_v39  ;;  %v3046_v51 = vpack.c.bf16 %v1986_v60, %v1984_v19  ;;  %v3048_v41 = vpack.c.bf16 %v1985_v62, %v1983_v52 }
 0x120   : > { %v1162_v17 = vrot.slane %v1161_v18, 1  ;;  %v1137_v44 = vmax.f32 %v1135_v8, %v1136_v21  ;;  %v1150_v13 = vmax.f32 %v1148_v7, %v1149_v45  ;;  %1875 = vperm.xlu0 %3083, %v1863_v40   ;;  %v3050_v58 = vpack.c.bf16 %v1990_v3, %v1988_v53 }
 0x121   : > { %v1637_v28 = vsel %vm1266_vm4, %v1124_v4, %v1636_v27  ;;  %3047 = vmatprep.subr.bf16.mxu1 %v3046_v51  ;;  %v3052_v31 = vpack.c.bf16 %v1989_v43, %v1987_v26  ;;  %v3054_v22 = vpack.c.bf16 %v1994_v20, %v1992_v38  ;;  %v3056_v16 = vpack.c.bf16 %v1993_v63, %v1991_v47 }
 0x122   : > { %v1163_v33 = vmax.f32 %v1161_v18, %v1162_v17  ;;  %v1638_v11 = vsel %vm1268_vm5, %v1137_v44, %v1637_v28  ;;  %3085 = vset.pattern.permute.xlu1 %v3263_v36  ;;  %3049 = vmatpush1.bf16.msra.mxu1 %v3048_v41  ;;  %v4648_v19 = vstv %s1864_s7  ;;  %v4663_v63 = vstv %s2901_s8 }
 0x123   : > { %v1639_v37 = vsel %vm1270_vm6, %v1150_v13, %v1638_v11  ;;  %1919 = vperm.xlu1 %3085, %v1862_v29   ;;  %3051 = vmatprep.subr.bf16.mxu1 %v3050_v58 }
 0x124   : > { %v1640_v9 = vsel %vm1272_vm7, %v1163_v33, %v1639_v37  ;;  %3086 = vset.pattern.permute.xlu0 %v3262_v56  ;;  %v1405_v30 = vpop.f32.mrb[0].mxu0 }
 0x125   : > { %1755 = vmatmul.mubr.f32.gmra.mrb[6].mxu1 %v1640_v9  ;;  %1844 = vmatmul.mubr.f32.gmra.mrb[14].mxu0 %v1640_v9  ;;  %v1407_v25 = vpop.f32.mrb[1].mxu0  ;;  %v1424_v14 = vmul.f32 0.03125, %v1405_v30 }
 0x126   : > { %1911 = vperm.xlu0 %3086, %v1863_v40   ;;  %2080 = vmatprep.mubr.f32.mxu1 %v5084_v10 }
 0x127   : > { %1923 = vperm.xlu1 %3085, %v1863_v40   ;;  %3053 = vmatpush1.bf16.msra.mxu1 %v3052_v31 }
 0x128   : > { %3055 = vmatprep.subr.bf16.mxu1 %v3054_v22 }
 0x12a   : > { %3087 = vset.pattern.permute.xlu0 %v3263_v36 }
 0x12b   : > { %3057 = vmatpush1.bf16.msra.mxu1 %v3056_v16 }
 0x12c   : > { %2904 = vmatprep.subr.msk.mxu1 %vm2009_vm9, %v1996_v23 }
 0x12f   : > { %2905 = vmatpush1.msk.msra.mxu1 %vm2009_vm9, %v1995_v5 }
 0x13b   : > { %v1410_v12 = vpop.f32.mrb[2].mxu0 }
 0x13c   : > { %v1412_v57 = vpop.f32.mrb[3].mxu0  ;;  %v1425_v46 = vmul.f32 0.03125, %v1410_v12 }
 0x161   : > { %v1415_v32 = vpop.f32.mrb[4].mxu0 }
 0x162   : > { %v1417_v61 = vpop.f32.mrb[5].mxu0  ;;  %v1426_v1 = vmul.f32 0.03125, %v1415_v32 }
 0x180   : > { %v1420_v48 = vpop.f32.mrb[6].mxu0 }
 0x181   : > { %v1422_v50 = vpop.f32.mrb[7].mxu0  ;;  %v1427_v24 = vmul.f32 0.03125, %v1420_v48 }
 0x19b   : > { %v4630_v35 = vpop.permute.xlu0 %1870 }
 0x19c   : > { %v1880_v42 = vmul.f32 %v4630_v35, %v1426_v1  ;;  %v1878_v34 = vmul.f32 %v4630_v35, %v1424_v14 }
 0x19d   : > { %v4650_v51 = vpop.permute.xlu1 %1907 }
 0x19e   : > { %v1892_v54 = vsel %vm1882_vm10, %v1880_v42, 0.0  ;;  %v1883_v2 = vsel %vm1882_vm10, %v1878_v34, 0.0 }
 0x19f   : > { %v4634_v15 = vpop.permute.xlu0 %1875 }
 0x1a0   : > { %v1879_v29 = vmul.f32 %v4634_v15, %v1425_v46  ;;  %v1881_v6 = vmul.f32 %v4634_v15, %v1427_v24  ;;  %v1738_v59 = vpop.f32.mrb[0].mxu1  ;;  %v1827_v39 = vpop.f32.mrb[8].mxu0  ;;  %v1969_v24 = vstv %s2902_s9 }
 0x1a1   : > { %v1740_v49 = vpop.f32.mrb[1].mxu1  ;;  %v1829_v21 = vpop.f32.mrb[9].mxu0 }
 0x1a2   : > { %v1884_v0 = vsel %vm1882_vm10, %v1879_v29, 0.0  ;;  %v1893_v8 = vsel %vm1882_vm10, %v1881_v6, 0.0  ;;  %v1850_v55 = vmax.f32 %v1738_v59, %v1740_v49  ;;  %v1854_v45 = vmax.f32 %v1827_v39, %v1829_v21  ;;  %v4653_v50 = vpop.permute.xlu1 %1919 }
 0x1a3   : > { %v1885_v7 = vadd.f32 %v1884_v0, %v1883_v2  ;;  %v4642_v18 = vadd.f32 %v1893_v8, %v1892_v54  ;;  %v1978_v49 = vstv %s2903_s10 }
 0x1a4   : > { %v1858_v17 = vmax.f32 %v1850_v55, %v1854_v45 }
 0x1a5   : > { %v1886_v40 = vrot.slane %v1885_v7, 4  ;;  %v4655_v58 = vpop.permute.xlu0 %1911 }
 0x1a6   : > { %v1935_v37 = vmul.f32 %v4630_v35, %v1858_v17  ;;  %v4660_v20 = vpop.permute.xlu1 %1923  ;;  %v1895_v17 = vrot.slane %v4642_v18, 4 }
 0x1a7   : > { %v1887_v56 = vadd.f32 %v1886_v40, %v1885_v7 }
 0x1a8   : > { %v1939_v12 = vsel %vm1882_vm10, %v1935_v37, 0.0  ;;  %v1896_v40 = vadd.f32 %v1895_v17, %v4642_v18 }
 0x1a9   : > { %v1888_v27 = vrot.slane %v1887_v56, 2 }
 0x1ab   : > { %v1889_v28 = vadd.f32 %v1888_v27, %v1887_v56  ;;  %v1897_v56 = vrot.slane %v1896_v40, 2 }
 0x1ad   : > { %v1890_v30 = vrot.slane %v1889_v28, 1 }
 0x1af   : > { %v1891_v61 = vadd.f32 %v1890_v30, %v1889_v28 }
 0x1b1   : > { %v1902_v62 = vadd.f32 %v4648_v19, %v1891_v61 }
 0x1b3   : > { %v1904_v53 = vmax.f32 %v1902_v62, 0.0 }
 0x1b5   : > { %v1914_v43 = vmul.f32 %v4650_v51, %v1904_v53  ;;  %v1915_v31 = vmul.f32 %v4655_v58, %v1904_v53 }
 0x1b7   : > { %v1926_v47 = vadd.f32 %v4653_v50, %v1914_v43  ;;  %v1927_v16 = vadd.f32 %v4660_v20, %v1915_v31 }
 0x1b9   : > { %v1931_v2 = vmul.f32 %v4663_v63, %v1926_v47  ;;  %v1932_v0 = vmul.f32 %v4663_v63, %v1927_v16 }
 0x1bd   : > { %v1744_v4 = vpop.f32.mrb[2].mxu1  ;;  %v1833_v44 = vpop.f32.mrb[10].mxu0 }
 0x1be   : > { %v1746_v13 = vpop.f32.mrb[3].mxu1  ;;  %v1835_v33 = vpop.f32.mrb[11].mxu0 }
 0x1bf   : > { %v1851_v11 = vmax.f32 %v1744_v4, %v1746_v13  ;;  %v1855_v36 = vmax.f32 %v1833_v44, %v1835_v33 }
 0x1c1   : > { %v1859_v9 = vmax.f32 %v1851_v11, %v1855_v36  ;;  %v1898_v11 = vadd.f32 %v1897_v56, %v1896_v40 }
 0x1c3   : > { %v1936_v25 = vmul.f32 %v4634_v15, %v1859_v9  ;;  %v1899_v30 = vrot.slane %v1898_v11, 1 }
 0x1c5   : > { %v1940_v57 = vsel %vm1882_vm10, %v1936_v25, 0.0  ;;  %v1900_v18 = vadd.f32 %v1899_v30, %v1898_v11 }
 0x1c6   : > { %v1941_v32 = vadd.f32 %v1940_v57, %v1939_v12 }
 0x1c8   : > { %v1942_v60 = vrot.slane %v1941_v32, 4 }
 0x1ca   : > { %v1943_v52 = vadd.f32 %v1942_v60, %v1941_v32  ;;  %v1903_v60 = vadd.f32 %v4648_v19, %v1900_v18 }
 0x1cc   : > { %v1944_v48 = vrot.slane %v1943_v52, 2 }
 0x1ce   : > { %v1945_v41 = vadd.f32 %v1944_v48, %v1943_v52  ;;  %v1905_v48 = vmax.f32 %v1903_v60, 0.0 }
 0x1d0   : > { %v1946_v3 = vrot.slane %v1945_v41, 1 }
 0x1d2   : > { %v1947_v26 = vadd.f32 %v1946_v3, %v1945_v41  ;;  %v1917_v3 = vmul.f32 %v4655_v58, %v1905_v48 }
 0x1d4   : > { %v1957_v38 = vadd.f32 %v1947_v26, %v4648_v19 }
 0x1d6   : > { %v1959_v22 = vmax.f32 %v1957_v38, 0.0  ;;  %v1929_v38 = vadd.f32 %v4660_v20, %v1917_v3 }
 0x1d8   : > { %v1961_v23 = vmul.f32 %v1959_v22, %v4650_v51  ;;  %v1962_v14 = vmul.f32 %v1959_v22, %v4655_v58 }
 0x1da   : > { %v1965_v34 = vadd.f32 %v1961_v23, %v4653_v50  ;;  %v1966_v6 = vadd.f32 %v1962_v14, %v4660_v20 }
 0x1db   : > { %v1750_v5 = vpop.f32.mrb[4].mxu1  ;;  %v1839_v1 = vpop.f32.mrb[12].mxu0 }
 0x1dc   : > { %v1752_v46 = vpop.f32.mrb[5].mxu1  ;;  %v1841_v42 = vpop.f32.mrb[13].mxu0  ;;  %v1970_v7 = vmul.f32 %v1969_v24, %v1965_v34  ;;  %v1971_v59 = vmul.f32 %v1969_v24, %v1966_v6  ;;  %v3264_v6 = vmov 1966171168  }
 0x1dd   : > { %v1852_v29 = vmax.f32 %v1750_v5, %v1752_v46  ;;  %v1856_v54 = vmax.f32 %v1839_v1, %v1841_v42  ;;  %v1934_v5 = vmul.f32 %v4663_v63, %v1929_v38 }
 0x1de   : > { %v1974_v55 = vadd.f32 %v1970_v7, %v1931_v2  ;;  %v1975_v39 = vadd.f32 %v1971_v59, %v1932_v0  ;;  %v2156_v2 = vunpack.c.l.s4 %v3264_v6  ;;  %v2158_v0 = vlaneseq  ;;  %v3171_v6 = vld [vmem:[%s3457_s13 + $0x20] sm:$0xff] }
 0x1df   : > { %v1860_v8 = vmax.f32 %v1852_v29, %v1856_v54 }
 0x1e0   : > { %v1979_v21 = vadd.f32 %v1978_v49, %v1974_v55  ;;  %v1980_v45 = vadd.f32 %v1978_v49, %v1975_v39  ;;  %v2159_v55 = vshrl.u32 %v2158_v0, 7  ;;  %v3172_v0 = vld [vmem:[%s3457_s13 + $0x28] sm:$0xff] }
 0x1e1   : > { %v1937_v36 = vmul.f32 %v4630_v35, %v1860_v8 }
 0x1e2   : > { %2906 = vmatmul.mubr.msk.f32.vlgmr.msra.gmra.mrb[8].mxu1 %vm1882_vm10, %v1979_v21 }
 0x1e3   : > { %2086 = vmatprep.mubr.f32.mxu1 %v5084_v10  ;;  %v1948_v25 = vsel %vm1882_vm10, %v1937_v36, 0.0 }
 0x1e6   : > { %2907 = vmatmul.mubr.msk.f32.gmra.mrb[10].mxu1 %vm1882_vm10, %v1980_v45 }
 0x1e7   : > { %2092 = vmatprep.mubr.f32.mxu1 %v5084_v10 }
 0x1f8   : > { %v1756_v27 = vpop.f32.mrb[6].mxu1  ;;  %v1845_v4 = vpop.f32.mrb[14].mxu0 }
 0x1f9   : > { %v1758_v44 = vpop.f32.mrb[7].mxu1  ;;  %v1847_v13 = vpop.f32.mrb[15].mxu0 }
 0x1fa   : > { %v1853_v33 = vmax.f32 %v1756_v27, %v1758_v44  ;;  %v1857_v28 = vmax.f32 %v1845_v4, %v1847_v13 }
 0x1fc   : > { %v1861_v37 = vmax.f32 %v1853_v33, %v1857_v28 }
 0x1fe   : > { %v1938_v9 = vmul.f32 %v4634_v15, %v1861_v37  ;;  %v1916_v15 = vmul.f32 %v4650_v51, %v1905_v48 }
 0x200   : > { %v1949_v12 = vsel %vm1882_vm10, %v1938_v9, 0.0  ;;  %v1928_v43 = vadd.f32 %v4653_v50, %v1916_v15 }
 0x201   : > { %v1950_v57 = vadd.f32 %v1949_v12, %v1948_v25  ;;  %v4705_v25 = vsub.s32 0, %v2159_v55  ;;  %v4707_v12 = vsub.s32 1, %v2159_v55 }
 0x202   : > { %v1933_v23 = vmul.f32 %v4663_v63, %v1928_v43 }
 0x203   : > { %v1951_v32 = vrot.slane %v1950_v57, 4 }
 0x205   : > { %v1952_v61 = vadd.f32 %v1951_v32, %v1950_v57 }
 0x207   : > { %v1953_v52 = vrot.slane %v1952_v61, 2 }
 0x209   : > { %v1954_v62 = vadd.f32 %v1953_v52, %v1952_v61 }
 0x20b   : > { %v1955_v41 = vrot.slane %v1954_v62, 1 }
 0x20d   : > { %v1956_v53 = vadd.f32 %v1955_v41, %v1954_v62 }
 0x20f   : > { %v1958_v35 = vadd.f32 %v1956_v53, %v4648_v19 }
 0x211   : > { %v1960_v26 = vmax.f32 %v1958_v35, 0.0 }
 0x213   : > { %v1963_v31 = vmul.f32 %v1960_v26, %v4650_v51  ;;  %v1964_v22 = vmul.f32 %v1960_v26, %v4655_v58 }
 0x215   : > { %v1967_v47 = vadd.f32 %v1963_v31, %v4653_v50  ;;  %v1968_v16 = vadd.f32 %v1964_v22, %v4660_v20 }
 0x217   : > { %v1972_v19 = vmul.f32 %v1969_v24, %v1967_v47  ;;  %v1973_v1 = vmul.f32 %v1969_v24, %v1968_v16 }
 0x219   : > { %v1976_v14 = vadd.f32 %v1972_v19, %v1933_v23  ;;  %v1977_v46 = vadd.f32 %v1973_v1, %v1934_v5 }
 0x21b   : > { %v1981_v42 = vadd.f32 %v1978_v49, %v1976_v14  ;;  %v1982_v51 = vadd.f32 %v1978_v49, %v1977_v46  ;;  %v2157_v49 = vunpack.c.0.s8 %v2156_v2 }
 0x21d   : > { %2908 = vmatmul.mubr.msk.f32.gmra.mrb[12].mxu1 %vm1882_vm10, %v1981_v42  ;;  %v4697_v4 = vsub.s32 %v2157_v49, %v2159_v55  ;;  %v3175_v55 = vld [vmem:[%s3457_s13 + $0x40] sm:$0xff] }
 0x21e   : > { %2098 = vmatprep.mubr.f32.mxu1 %v5084_v10 }
 0x221   : > { %2909 = vmatmul.mubr.msk.f32.gmra.mrb[14].mxu1 %vm1882_vm10, %v1982_v51 }
 0x2b5   : > { %v2082_v58 = vpop.f32.mrb[8].mxu1 }
 0x2b6   : > { %v2105_v50 = vmul.f32 0.5, %v2082_v58  ;;  %v2084_v34 = vpop.f32.mrb[9].mxu1  ;;  %v3167_v58 = vld [vmem:[%s3457_s13] sm:$0xff] }
 0x2b7   : > { %v2106_v20 = vmul.f32 0.5, %v2084_v34  ;;  %v3168_v34 = vld [vmem:[%s3457_s13 + $0x8] sm:$0xff] }
 0x2b8   : > { %3088 = vtanh.f32 %v2105_v50 }
 0x2b9   : > { %3090 = vtanh.f32 %v2106_v20  ;;  %v2088_v29 = vpop.f32.mrb[10].mxu1 }
 0x2ba   : > { %v2107_v54 = vmul.f32 0.5, %v2088_v29  ;;  %v2090_v63 = vpop.f32.mrb[11].mxu1  ;;  %v3169_v29 = vld [vmem:[%s3457_s13 + $0x10] sm:$0xff] }
 0x2bb   : > { %v2108_v24 = vmul.f32 0.5, %v2090_v63  ;;  %v3170_v63 = vld [vmem:[%s3457_s13 + $0x18] sm:$0xff] }
 0x2bc   : > { %3092 = vtanh.f32 %v2107_v54 }
 0x2bd   : > { %3094 = vtanh.f32 %v2108_v24 }
 0x2c2   : > { %v3089_v8 = vpop.eup %3088 }
 0x2c3   : > { %v3091_v10 = vpop.eup %3090  ;;  %v2121_v7 = vadd.f32 1.0, %v3089_v8 }
 0x2c4   : > { %v2122_v59 = vadd.f32 1.0, %v3091_v10  ;;  %v3173_v10 = vld [vmem:[%s3457_s13 + $0x30] sm:$0xff] }
 0x2c5   : > { %v2129_v39 = vmul.f32 0.5, %v2121_v7 }
 0x2c6   : > { %v3093_v21 = vpop.eup %3092  ;;  %v2130_v45 = vmul.f32 0.5, %v2122_v59  ;;  %v3174_v59 = vld [vmem:[%s3457_s13 + $0x38] sm:$0xff] }
 0x2c7   : > { %v3095_v17 = vpop.eup %3094  ;;  %v2137_v40 = vadd.f32 1.0, %v2129_v39  ;;  %v2123_v56 = vadd.f32 1.0, %v3093_v21  ;;  %v3176_v21 = vld [vmem:[%s3457_s13 + $0x48] sm:$0xff] }
 0x2c8   : > { %v2138_v27 = vadd.f32 1.0, %v2130_v45  ;;  %v2124_v44 = vadd.f32 1.0, %v3095_v17  ;;  %v3177_v17 = vld [vmem:[%s3457_s13 + $0x50] sm:$0xff] }
 0x2c9   : > { %v2131_v13 = vmul.f32 0.5, %v2123_v56  ;;  %v3178_v56 = vld [vmem:[%s3457_s13 + $0x58] sm:$0xff] }
 0x2ca   : > { %v2153_v33 = vcombine.low %v2137_v40, %v2138_v27  ;;  %v2154_v28 = vcombine.high %v2137_v40, %v2138_v27  ;;  %v2132_v11 = vmul.f32 0.5, %v2124_v44  ;;  %v3179_v44 = vld [vmem:[%s3457_s13 + $0x60] sm:$0xff] }
 0x2cb   : > { %v4699_v36 = vadd.f32 1.0, %v2131_v13 }
 0x2cc   : > { %v2161_v37 = vrot.slane %v2153_v33, %v4697_v4  ;;  %v2168_v9 = vrot.slane %v2154_v28, %v4697_v4  ;;  %v4703_v30 = vadd.f32 1.0, %v2132_v11  ;;  %v3180_v33 = vld [vmem:[%s3457_s13 + $0x68] sm:$0xff]  ;;  %v3181_v11 = vld [vmem:[%s3457_s13 + $0x70] sm:$0xff] }
 0x2ce   : > { %v2169_v57 = vcombine.high %v2161_v37, %v2161_v37  ;;  %v2170_v18 = vcombine.high %v2168_v9, %v2168_v9  ;;  %v2177_v32 = vrot.slane %v2161_v37, %v4697_v4  ;;  %v2184_v61 = vrot.slane %v2168_v9, %v4697_v4  ;;  %v3182_v9 = vld [vmem:[%s3457_s13 + $0x78] sm:$0xff] }
 0x2cf   : > { %v2203_v60 = vcombine.low %v4699_v36, %v4703_v30  ;;  %v2204_v52 = vcombine.high %v4699_v36, %v4703_v30 }
 0x2d0   : > { %v2191_v62 = vrot.slane %v2169_v57, %v4697_v4  ;;  %v2198_v48 = vrot.slane %v2170_v18, %v4697_v4  ;;  %v2199_v41 = vcombine.high %v2177_v32, %v2177_v32  ;;  %v2200_v53 = vcombine.high %v2184_v61, %v2184_v61 }
 0x2d1   : > { %v2356_v35 = vrot.slane %v2177_v32, %v4705_v25  ;;  %v2360_v15 = vrot.slane %v2177_v32, %v4707_v12  ;;  %v2388_v3 = vrot.slane %v2184_v61, %v4705_v25  ;;  %v2392_v26 = vrot.slane %v2184_v61, %v4707_v12 }
 0x2d2   : > { %v2201_v43 = vcombine.high %v2191_v62, %v2191_v62  ;;  %v2202_v31 = vcombine.high %v2198_v48, %v2198_v48  ;;  %v2364_v38 = vrot.slane %v2191_v62, %v4705_v25  ;;  %v2368_v22 = vrot.slane %v2191_v62, %v4707_v12 }
 0x2d3   : > { %v2372_v47 = vrot.slane %v2199_v41, %v4705_v25  ;;  %v2376_v16 = vrot.slane %v2199_v41, %v4707_v12  ;;  %v2396_v23 = vrot.slane %v2198_v48, %v4705_v25  ;;  %v2400_v19 = vrot.slane %v2198_v48, %v4707_v12 }
 0x2d4   : > { %v2380_v5 = vrot.slane %v2201_v43, %v4705_v25  ;;  %v2384_v1 = vrot.slane %v2201_v43, %v4707_v12  ;;  %v2404_v14 = vrot.slane %v2200_v53, %v4705_v25  ;;  %v2408_v46 = vrot.slane %v2200_v53, %v4707_v12 }
 0x2d5   : > { %v2412_v42 = vrot.slane %v2202_v31, %v4705_v25  ;;  %v2416_v51 = vrot.slane %v2202_v31, %v4707_v12  ;;  %v2673_v50 = vmul.f32 %v3167_v58, %v2356_v35  ;;  %v2674_v20 = vmul.f32 %v3168_v34, %v2360_v15 }
 0x2d6   : > { %v2675_v54 = vmul.f32 %v3169_v29, %v2364_v38  ;;  %v2676_v24 = vmul.f32 %v3170_v63, %v2368_v22  ;;  %v2677_v2 = vmul.f32 %v3171_v6, %v2372_v47  ;;  %v2678_v8 = vmul.f32 %v3172_v0, %v2376_v16 }
 0x2d7   : > { %v2679_v7 = vmul.f32 %v3173_v10, %v2380_v5  ;;  %v2680_v49 = vmul.f32 %v3174_v59, %v2384_v1  ;;  %v2681_v39 = vmul.f32 %v3175_v55, %v2388_v3  ;;  %v2682_v45 = vmul.f32 %v3176_v21, %v2392_v26  ;;  %2737 = vst [vmem:[%s4732_s15] sm:$0xff] %v2673_v50  ;;  %v3184_v50 = vld [vmem:[%s3457_s13 + $0x88] sm:$0xff] }
 0x2d8   : > { %2738 = vst.msk [vmem:[%s4732_s15 + $0x8] sm:$0xff] %vm344_vm0, %v2674_v20  ;;  %v2683_v40 = vmul.f32 %v3177_v17, %v2396_v23  ;;  %v2684_v27 = vmul.f32 %v3178_v56, %v2400_v19  ;;  %v2685_v13 = vmul.f32 %v3179_v44, %v2404_v14  ;;  %v2686_v28 = vmul.f32 %v3180_v33, %v2408_v46  ;;  %v3185_v20 = vld [vmem:[%s3457_s13 + $0x90] sm:$0xff] }
 0x2d9   : > { %2739 = vst [vmem:[%s4732_s15 + $0x10] sm:$0xff] %v2675_v54  ;;  %2740 = vst.msk [vmem:[%s4732_s15 + $0x18] sm:$0xff] %vm344_vm0, %v2676_v24  ;;  %v2687_v37 = vmul.f32 %v3181_v11, %v2412_v42  ;;  %v2688_v57 = vmul.f32 %v3182_v9, %v2416_v51  ;;  %v2211_v18 = vrot.slane %v2203_v60, %v4697_v4  ;;  %v3183_v51 = vld [vmem:[%s3457_s13 + $0x80] sm:$0xff]  ;;  %v3186_v54 = vld [vmem:[%s3457_s13 + $0x98] sm:$0xff] }
 0x2da   : > { %2741 = vst [vmem:[%s4732_s15 + $0x20] sm:$0xff] %v2677_v2  ;;  %2742 = vst.msk [vmem:[%s4732_s15 + $0x28] sm:$0xff] %vm344_vm0, %v2678_v8  ;;  %v2218_v32 = vrot.slane %v2204_v52, %v4697_v4  ;;  %v3187_v24 = vld [vmem:[%s3457_s13 + $0xa0] sm:$0xff]  ;;  %v3188_v2 = vld [vmem:[%s3457_s13 + $0xa8] sm:$0xff] }
 0x2db   : > { %2743 = vst [vmem:[%s4732_s15 + $0x30] sm:$0xff] %v2679_v7  ;;  %2744 = vst.msk [vmem:[%s4732_s15 + $0x38] sm:$0xff] %vm344_vm0, %v2680_v49  ;;  %v2219_v61 = vcombine.high %v2211_v18, %v2211_v18  ;;  %v2227_v48 = vrot.slane %v2211_v18, %v4697_v4  ;;  %v3189_v8 = vld [vmem:[%s3457_s13 + $0xb0] sm:$0xff]  ;;  %v3190_v7 = vld [vmem:[%s3457_s13 + $0xb8] sm:$0xff] }
 0x2dc   : > { %2745 = vst [vmem:[%s4732_s15 + $0x40] sm:$0xff] %v2681_v39  ;;  %2746 = vst.msk [vmem:[%s4732_s15 + $0x48] sm:$0xff] %vm344_vm0, %v2682_v45  ;;  %v2220_v62 = vcombine.high %v2218_v32, %v2218_v32  ;;  %v2234_v60 = vrot.slane %v2218_v32, %v4697_v4  ;;  %v3191_v49 = vld [vmem:[%s3457_s13 + $0xc0] sm:$0xff]  ;;  %v3192_v39 = vld [vmem:[%s3457_s13 + $0xc8] sm:$0xff] }
 0x2dd   : > { %2747 = vst [vmem:[%s4732_s15 + $0x50] sm:$0xff] %v2683_v40  ;;  %2748 = vst.msk [vmem:[%s4732_s15 + $0x58] sm:$0xff] %vm344_vm0, %v2684_v27  ;;  %v2241_v41 = vrot.slane %v2219_v61, %v4697_v4  ;;  %v2249_v30 = vcombine.high %v2227_v48, %v2227_v48  ;;  %v2420_v53 = vrot.slane %v2227_v48, %v4705_v25  ;;  %v3193_v45 = vld [vmem:[%s3457_s13 + $0xd0] sm:$0xff]  ;;  %v3194_v40 = vld [vmem:[%s3457_s13 + $0xd8] sm:$0xff] }
 0x2de   : > { %2749 = vst [vmem:[%s4732_s15 + $0x60] sm:$0xff] %v2685_v13  ;;  %2750 = vst.msk [vmem:[%s4732_s15 + $0x68] sm:$0xff] %vm344_vm0, %v2686_v28  ;;  %v2248_v36 = vrot.slane %v2220_v62, %v4697_v4  ;;  %v2250_v52 = vcombine.high %v2234_v60, %v2234_v60  ;;  %v2424_v35 = vrot.slane %v2227_v48, %v4707_v12  ;;  %v3195_v27 = vld [vmem:[%s3457_s13 + $0xe0] sm:$0xff]  ;;  %v3196_v13 = vld [vmem:[%s3457_s13 + $0xe8] sm:$0xff] }
 0x2df   : > { %2751 = vst [vmem:[%s4732_s15 + $0x70] sm:$0xff] %v2687_v37  ;;  %2752 = vst.msk [vmem:[%s4732_s15 + $0x78] sm:$0xff] %vm344_vm0, %v2688_v57  ;;  %v2452_v15 = vrot.slane %v2234_v60, %v4705_v25  ;;  %v2456_v3 = vrot.slane %v2234_v60, %v4707_v12  ;;  %v2251_v26 = vcombine.high %v2241_v41, %v2241_v41  ;;  %v3197_v28 = vld [vmem:[%s3457_s13 + $0xf0] sm:$0xff]  ;;  %v3198_v37 = vld [vmem:[%s3457_s13 + $0xf8] sm:$0xff] }
 0x2e0   : > { %v2252_v43 = vcombine.high %v2248_v36, %v2248_v36  ;;  %v2428_v31 = vrot.slane %v2241_v41, %v4705_v25  ;;  %v2432_v38 = vrot.slane %v2241_v41, %v4707_v12  ;;  %v2436_v22 = vrot.slane %v2249_v30, %v4705_v25 }
 0x2e1   : > { %v2440_v47 = vrot.slane %v2249_v30, %v4707_v12  ;;  %v2460_v16 = vrot.slane %v2248_v36, %v4705_v25  ;;  %v2464_v23 = vrot.slane %v2248_v36, %v4707_v12  ;;  %v2444_v19 = vrot.slane %v2251_v26, %v4705_v25 }
 0x2e2   : > { %v2448_v5 = vrot.slane %v2251_v26, %v4707_v12  ;;  %v2468_v1 = vrot.slane %v2250_v52, %v4705_v25  ;;  %v2472_v14 = vrot.slane %v2250_v52, %v4707_v12  ;;  %v2476_v46 = vrot.slane %v2252_v43, %v4705_v25 }
 0x2e3   : > { %v2480_v42 = vrot.slane %v2252_v43, %v4707_v12  ;;  %v2689_v58 = vmul.f32 %v3183_v51, %v2420_v53  ;;  %v2690_v34 = vmul.f32 %v3184_v50, %v2424_v35  ;;  %v2691_v29 = vmul.f32 %v3185_v20, %v2428_v31 }
 0x2e4   : > { %v2692_v63 = vmul.f32 %v3186_v54, %v2432_v38  ;;  %v2693_v6 = vmul.f32 %v3187_v24, %v2436_v22  ;;  %v2694_v0 = vmul.f32 %v3188_v2, %v2440_v47  ;;  %v2695_v10 = vmul.f32 %v3189_v8, %v2444_v19 }
 0x2e5   : > { %v2696_v59 = vmul.f32 %v3190_v7, %v2448_v5  ;;  %v2697_v55 = vmul.f32 %v3191_v49, %v2452_v15  ;;  %v2698_v21 = vmul.f32 %v3192_v39, %v2456_v3  ;;  %2753 = vst [vmem:[%s4732_s15 + $0x80] sm:$0xff] %v2689_v58  ;;  %2754 = vst.msk [vmem:[%s4732_s15 + $0x88] sm:$0xff] %vm344_vm0, %v2690_v34 }
 0x2e6   : > { %v2699_v17 = vmul.f32 %v3193_v45, %v2460_v16  ;;  %v2700_v56 = vmul.f32 %v3194_v40, %v2464_v23  ;;  %v2701_v44 = vmul.f32 %v3195_v27, %v2468_v1  ;;  %v2702_v33 = vmul.f32 %v3196_v13, %v2472_v14  ;;  %2755 = vst [vmem:[%s4732_s15 + $0x90] sm:$0xff] %v2691_v29 }
 0x2e7   : > { %2756 = vst.msk [vmem:[%s4732_s15 + $0x98] sm:$0xff] %vm344_vm0, %v2692_v63  ;;  %2757 = vst [vmem:[%s4732_s15 + $0xa0] sm:$0xff] %v2693_v6  ;;  %v2703_v11 = vmul.f32 %v3197_v28, %v2476_v46  ;;  %v2704_v9 = vmul.f32 %v3198_v37, %v2480_v42 }
 0x2e8   : > { %2758 = vst.msk [vmem:[%s4732_s15 + $0xa8] sm:$0xff] %vm344_vm0, %v2694_v0  ;;  %2759 = vst [vmem:[%s4732_s15 + $0xb0] sm:$0xff] %v2695_v10 }
 0x2e9   : > { %2760 = vst.msk [vmem:[%s4732_s15 + $0xb8] sm:$0xff] %vm344_vm0, %v2696_v59  ;;  %2761 = vst [vmem:[%s4732_s15 + $0xc0] sm:$0xff] %v2697_v55 }
 0x2ea   : > { %2762 = vst.msk [vmem:[%s4732_s15 + $0xc8] sm:$0xff] %vm344_vm0, %v2698_v21  ;;  %2763 = vst [vmem:[%s4732_s15 + $0xd0] sm:$0xff] %v2699_v17 }
 0x2eb   : > { %2764 = vst.msk [vmem:[%s4732_s15 + $0xd8] sm:$0xff] %vm344_vm0, %v2700_v56  ;;  %2765 = vst [vmem:[%s4732_s15 + $0xe0] sm:$0xff] %v2701_v44 }
 0x2ec   : > { %2766 = vst.msk [vmem:[%s4732_s15 + $0xe8] sm:$0xff] %vm344_vm0, %v2702_v33  ;;  %2767 = vst [vmem:[%s4732_s15 + $0xf0] sm:$0xff] %v2703_v11  ;;  %v3199_v33 = vld [vmem:[%s3457_s13 + $0x100] sm:$0xff]  ;;  %v3200_v11 = vld [vmem:[%s3457_s13 + $0x108] sm:$0xff] }
 0x2ed   : > { %2768 = vst.msk [vmem:[%s4732_s15 + $0xf8] sm:$0xff] %vm344_vm0, %v2704_v9  ;;  %v3201_v9 = vld [vmem:[%s3457_s13 + $0x110] sm:$0xff] }
 0x2f0   : > { %v2094_v57 = vpop.f32.mrb[12].mxu1 }
 0x2f1   : > { %v2109_v18 = vmul.f32 0.5, %v2094_v57  ;;  %v2096_v32 = vpop.f32.mrb[13].mxu1 }
 0x2f2   : > { %v2110_v61 = vmul.f32 0.5, %v2096_v32 }
 0x2f3   : > { %3096 = vtanh.f32 %v2109_v18  ;;  %v3202_v18 = vld [vmem:[%s3457_s13 + $0x118] sm:$0xff] }
 0x2f4   : > { %3098 = vtanh.f32 %v2110_v61  ;;  %v2100_v62 = vpop.f32.mrb[14].mxu1  ;;  %v3203_v61 = vld [vmem:[%s3457_s13 + $0x120] sm:$0xff] }
 0x2f5   : > { %v2111_v48 = vmul.f32 0.5, %v2100_v62  ;;  %v2102_v60 = vpop.f32.mrb[15].mxu1 }
 0x2f6   : > { %v2112_v41 = vmul.f32 0.5, %v2102_v60 }
 0x2f7   : > { %3100 = vtanh.f32 %v2111_v48  ;;  %v3204_v48 = vld [vmem:[%s3457_s13 + $0x128] sm:$0xff] }
 0x2f8   : > { %3102 = vtanh.f32 %v2112_v41  ;;  %v3205_v41 = vld [vmem:[%s3457_s13 + $0x130] sm:$0xff] }
 0x2fd   : > { %v3097_v36 = vpop.eup %3096 }
 0x2fe   : > { %v3099_v30 = vpop.eup %3098  ;;  %v2125_v52 = vadd.f32 1.0, %v3097_v36 }
 0x2ff   : > { %v2126_v53 = vadd.f32 1.0, %v3099_v30  ;;  %v3206_v30 = vld [vmem:[%s3457_s13 + $0x138] sm:$0xff] }
 0x300   : > { %v2133_v35 = vmul.f32 0.5, %v2125_v52 }
 0x301   : > { %v3101_v15 = vpop.eup %3100  ;;  %v2134_v3 = vmul.f32 0.5, %v2126_v53  ;;  %v3207_v53 = vld [vmem:[%s3457_s13 + $0x140] sm:$0xff] }
 0x302   : > { %v3103_v26 = vpop.eup %3102  ;;  %v2141_v43 = vadd.f32 1.0, %v2133_v35  ;;  %v2127_v31 = vadd.f32 1.0, %v3101_v15  ;;  %v3208_v15 = vld [vmem:[%s3457_s13 + $0x148] sm:$0xff] }
 0x303   : > { %v2142_v38 = vadd.f32 1.0, %v2134_v3  ;;  %v2128_v22 = vadd.f32 1.0, %v3103_v26  ;;  %v3209_v26 = vld [vmem:[%s3457_s13 + $0x150] sm:$0xff] }
 0x304   : > { %v2135_v47 = vmul.f32 0.5, %v2127_v31  ;;  %v3210_v31 = vld [vmem:[%s3457_s13 + $0x158] sm:$0xff] }
 0x305   : > { %v2253_v16 = vcombine.low %v2141_v43, %v2142_v38  ;;  %v2254_v23 = vcombine.high %v2141_v43, %v2142_v38  ;;  %v2136_v19 = vmul.f32 0.5, %v2128_v22  ;;  %v3211_v22 = vld [vmem:[%s3457_s13 + $0x160] sm:$0xff] }
 0x306   : > { %v4848_v5 = vadd.f32 1.0, %v2135_v47 }
 0x307   : > { %v2261_v1 = vrot.slane %v2253_v16, %v4697_v4  ;;  %v2268_v14 = vrot.slane %v2254_v23, %v4697_v4  ;;  %v4852_v46 = vadd.f32 1.0, %v2136_v19  ;;  %v3212_v16 = vld [vmem:[%s3457_s13 + $0x168] sm:$0xff]  ;;  %v3213_v19 = vld [vmem:[%s3457_s13 + $0x170] sm:$0xff] }
 0x309   : > { %v2269_v42 = vcombine.high %v2261_v1, %v2261_v1  ;;  %v2270_v51 = vcombine.high %v2268_v14, %v2268_v14  ;;  %v2277_v58 = vrot.slane %v2261_v1, %v4697_v4  ;;  %v2284_v50 = vrot.slane %v2268_v14, %v4697_v4  ;;  %v3214_v14 = vld [vmem:[%s3457_s13 + $0x178] sm:$0xff] }
 0x30a   : > { %v2303_v34 = vcombine.low %v4848_v5, %v4852_v46  ;;  %v2304_v20 = vcombine.high %v4848_v5, %v4852_v46 }
 0x30b   : > { %v2291_v29 = vrot.slane %v2269_v42, %v4697_v4  ;;  %v2298_v54 = vrot.slane %v2270_v51, %v4697_v4  ;;  %v2299_v63 = vcombine.high %v2277_v58, %v2277_v58  ;;  %v2300_v24 = vcombine.high %v2284_v50, %v2284_v50 }
 0x30c   : > { %v2484_v6 = vrot.slane %v2277_v58, %v4705_v25  ;;  %v2488_v2 = vrot.slane %v2277_v58, %v4707_v12  ;;  %v2516_v0 = vrot.slane %v2284_v50, %v4705_v25  ;;  %v2520_v8 = vrot.slane %v2284_v50, %v4707_v12 }
 0x30d   : > { %v2301_v10 = vcombine.high %v2291_v29, %v2291_v29  ;;  %v2302_v7 = vcombine.high %v2298_v54, %v2298_v54  ;;  %v2492_v59 = vrot.slane %v2291_v29, %v4705_v25  ;;  %v2496_v49 = vrot.slane %v2291_v29, %v4707_v12 }
 0x30e   : > { %v2500_v55 = vrot.slane %v2299_v63, %v4705_v25  ;;  %v2504_v39 = vrot.slane %v2299_v63, %v4707_v12  ;;  %v2524_v21 = vrot.slane %v2298_v54, %v4705_v25  ;;  %v2528_v45 = vrot.slane %v2298_v54, %v4707_v12 }
 0x30f   : > { %v2508_v17 = vrot.slane %v2301_v10, %v4705_v25  ;;  %v2512_v40 = vrot.slane %v2301_v10, %v4707_v12  ;;  %v2532_v56 = vrot.slane %v2300_v24, %v4705_v25  ;;  %v2536_v27 = vrot.slane %v2300_v24, %v4707_v12 }
 0x310   : > { %v2540_v44 = vrot.slane %v2302_v7, %v4705_v25  ;;  %v2544_v13 = vrot.slane %v2302_v7, %v4707_v12  ;;  %v2705_v28 = vmul.f32 %v3199_v33, %v2484_v6  ;;  %v2706_v37 = vmul.f32 %v3200_v11, %v2488_v2  ;;  %v3216_v33 = vld [vmem:[%s3457_s13 + $0x188] sm:$0xff]  ;;  %v3217_v11 = vld [vmem:[%s3457_s13 + $0x190] sm:$0xff] }
 0x311   : > { %v2707_v57 = vmul.f32 %v3201_v9, %v2492_v59  ;;  %v2708_v32 = vmul.f32 %v3202_v18, %v2496_v49  ;;  %v2709_v62 = vmul.f32 %v3203_v61, %v2500_v55  ;;  %v2710_v60 = vmul.f32 %v3204_v48, %v2504_v39  ;;  %v3218_v9 = vld [vmem:[%s3457_s13 + $0x198] sm:$0xff]  ;;  %v3219_v18 = vld [vmem:[%s3457_s13 + $0x1a0] sm:$0xff] }
 0x312   : > { %v2711_v36 = vmul.f32 %v3205_v41, %v2508_v17  ;;  %v2712_v52 = vmul.f32 %v3206_v30, %v2512_v40  ;;  %v2713_v35 = vmul.f32 %v3207_v53, %v2516_v0  ;;  %v2714_v3 = vmul.f32 %v3208_v15, %v2520_v8  ;;  %2769 = vst [vmem:[%s4732_s15 + $0x100] sm:$0xff] %v2705_v28  ;;  %v3222_v48 = vld [vmem:[%s3457_s13 + $0x1b8] sm:$0xff]  ;;  %v3223_v41 = vld [vmem:[%s3457_s13 + $0x1c0] sm:$0xff]  ;;  %v3224_v30 = vld [vmem:[%s3457_s13 + $0x1c8] sm:$0xff] }
 0x313   : > { %2770 = vst.msk [vmem:[%s4732_s15 + $0x108] sm:$0xff] %vm344_vm0, %v2706_v37  ;;  %v2715_v43 = vmul.f32 %v3209_v26, %v2524_v21  ;;  %v2716_v38 = vmul.f32 %v3210_v31, %v2528_v45  ;;  %v2717_v47 = vmul.f32 %v3211_v22, %v2532_v56  ;;  %v2718_v23 = vmul.f32 %v3212_v16, %v2536_v27  ;;  %v3225_v53 = vld [vmem:[%s3457_s13 + $0x1d0] sm:$0xff]  ;;  %v3226_v15 = vld [vmem:[%s3457_s13 + $0x1d8] sm:$0xff]  ;;  %v3227_v26 = vld [vmem:[%s3457_s13 + $0x1e0] sm:$0xff] }
 0x314   : > { %2771 = vst [vmem:[%s4732_s15 + $0x110] sm:$0xff] %v2707_v57  ;;  %2772 = vst.msk [vmem:[%s4732_s15 + $0x118] sm:$0xff] %vm344_vm0, %v2708_v32  ;;  %v2719_v1 = vmul.f32 %v3213_v19, %v2540_v44  ;;  %v2720_v42 = vmul.f32 %v3214_v14, %v2544_v13  ;;  %v2311_v51 = vrot.slane %v2303_v34, %v4697_v4  ;;  %v3215_v44 = vld [vmem:[%s3457_s13 + $0x180] sm:$0xff]  ;;  %v3228_v31 = vld [vmem:[%s3457_s13 + $0x1e8] sm:$0xff] }
 0x315   : > { %2773 = vst [vmem:[%s4732_s15 + $0x120] sm:$0xff] %v2709_v62  ;;  %2774 = vst.msk [vmem:[%s4732_s15 + $0x128] sm:$0xff] %vm344_vm0, %v2710_v60  ;;  %v2318_v58 = vrot.slane %v2304_v20, %v4697_v4  ;;  %v3229_v22 = vld [vmem:[%s3457_s13 + $0x1f0] sm:$0xff]  ;;  %v3230_v16 = vld [vmem:[%s3457_s13 + $0x1f8] sm:$0xff] }
 0x316   : > { %2775 = vst [vmem:[%s4732_s15 + $0x130] sm:$0xff] %v2711_v36  ;;  %2776 = vst.msk [vmem:[%s4732_s15 + $0x138] sm:$0xff] %vm344_vm0, %v2712_v52  ;;  %v2319_v50 = vcombine.high %v2311_v51, %v2311_v51  ;;  %v2327_v54 = vrot.slane %v2311_v51, %v4697_v4 }
 0x317   : > { %2777 = vst [vmem:[%s4732_s15 + $0x140] sm:$0xff] %v2713_v35  ;;  %2778 = vst.msk [vmem:[%s4732_s15 + $0x148] sm:$0xff] %vm344_vm0, %v2714_v3  ;;  %v2320_v29 = vcombine.high %v2318_v58, %v2318_v58  ;;  %v2334_v34 = vrot.slane %v2318_v58, %v4697_v4 }
 0x318   : > { %2779 = vst [vmem:[%s4732_s15 + $0x150] sm:$0xff] %v2715_v43  ;;  %2780 = vst.msk [vmem:[%s4732_s15 + $0x158] sm:$0xff] %vm344_vm0, %v2716_v38  ;;  %v2341_v63 = vrot.slane %v2319_v50, %v4697_v4  ;;  %v2349_v46 = vcombine.high %v2327_v54, %v2327_v54  ;;  %v2548_v24 = vrot.slane %v2327_v54, %v4705_v25 }
 0x319   : > { %2781 = vst [vmem:[%s4732_s15 + $0x160] sm:$0xff] %v2717_v47  ;;  %2782 = vst.msk [vmem:[%s4732_s15 + $0x168] sm:$0xff] %vm344_vm0, %v2718_v23  ;;  %v2348_v5 = vrot.slane %v2320_v29, %v4697_v4  ;;  %v2350_v20 = vcombine.high %v2334_v34, %v2334_v34  ;;  %v2552_v6 = vrot.slane %v2327_v54, %v4707_v12 }
 0x31a   : > { %2783 = vst [vmem:[%s4732_s15 + $0x170] sm:$0xff] %v2719_v1  ;;  %2784 = vst.msk [vmem:[%s4732_s15 + $0x178] sm:$0xff] %vm344_vm0, %v2720_v42  ;;  %v2580_v2 = vrot.slane %v2334_v34, %v4705_v25  ;;  %v2584_v0 = vrot.slane %v2334_v34, %v4707_v12  ;;  %v2351_v8 = vcombine.high %v2341_v63, %v2341_v63 }
 0x31b   : > { %v2352_v10 = vcombine.high %v2348_v5, %v2348_v5  ;;  %v2556_v7 = vrot.slane %v2341_v63, %v4705_v25  ;;  %v2560_v59 = vrot.slane %v2341_v63, %v4707_v12  ;;  %v2564_v4 = vrot.slane %v2349_v46, %v4705_v25 }
 0x31c   : > { %v2568_v49 = vrot.slane %v2349_v46, %v4707_v12  ;;  %v2588_v55 = vrot.slane %v2348_v5, %v4705_v25  ;;  %v2592_v39 = vrot.slane %v2348_v5, %v4707_v12  ;;  %v2572_v21 = vrot.slane %v2351_v8, %v4705_v25 }
 0x31d   : > { %v2576_v45 = vrot.slane %v2351_v8, %v4707_v12  ;;  %v2596_v17 = vrot.slane %v2350_v20, %v4705_v25  ;;  %v2600_v40 = vrot.slane %v2350_v20, %v4707_v12  ;;  %v2604_v56 = vrot.slane %v2352_v10, %v4705_v25  ;;  %v3220_v25 = vld [vmem:[%s3457_s13 + $0x1a8] sm:$0xff] }
 0x31e   : > { %v2608_v27 = vrot.slane %v2352_v10, %v4707_v12  ;;  %v2721_v13 = vmul.f32 %v3215_v44, %v2548_v24  ;;  %v2722_v28 = vmul.f32 %v3216_v33, %v2552_v6  ;;  %v2723_v37 = vmul.f32 %v3217_v11, %v2556_v7  ;;  %v3221_v12 = vld [vmem:[%s3457_s13 + $0x1b0] sm:$0xff] }
 0x31f   : > { %v2724_v57 = vmul.f32 %v3218_v9, %v2560_v59  ;;  %v2725_v32 = vmul.f32 %v3219_v18, %v2564_v4  ;;  %v2726_v61 = vmul.f32 %v3220_v25, %v2568_v49  ;;  %v2727_v62 = vmul.f32 %v3221_v12, %v2572_v21 }
 0x320   : > { %v2728_v60 = vmul.f32 %v3222_v48, %v2576_v45  ;;  %v2729_v36 = vmul.f32 %v3223_v41, %v2580_v2  ;;  %v2730_v52 = vmul.f32 %v3224_v30, %v2584_v0  ;;  %2785 = vst [vmem:[%s4732_s15 + $0x180] sm:$0xff] %v2721_v13  ;;  %2786 = vst.msk [vmem:[%s4732_s15 + $0x188] sm:$0xff] %vm344_vm0, %v2722_v28 }
 0x321   : > { %v2731_v35 = vmul.f32 %v3225_v53, %v2588_v55  ;;  %v2732_v3 = vmul.f32 %v3226_v15, %v2592_v39  ;;  %v2733_v43 = vmul.f32 %v3227_v26, %v2596_v17  ;;  %v2734_v38 = vmul.f32 %v3228_v31, %v2600_v40  ;;  %2787 = vst [vmem:[%s4732_s15 + $0x190] sm:$0xff] %v2723_v37 }
 0x322   : > { %2788 = vst.msk [vmem:[%s4732_s15 + $0x198] sm:$0xff] %vm344_vm0, %v2724_v57  ;;  %2789 = vst [vmem:[%s4732_s15 + $0x1a0] sm:$0xff] %v2725_v32  ;;  %v2735_v47 = vmul.f32 %v3229_v22, %v2604_v56  ;;  %v2736_v23 = vmul.f32 %v3230_v16, %v2608_v27 }
 0x323   : > { %2790 = vst.msk [vmem:[%s4732_s15 + $0x1a8] sm:$0xff] %vm344_vm0, %v2726_v61  ;;  %2791 = vst [vmem:[%s4732_s15 + $0x1b0] sm:$0xff] %v2727_v62 }
 0x324   : > { %2792 = vst.msk [vmem:[%s4732_s15 + $0x1b8] sm:$0xff] %vm344_vm0, %v2728_v60  ;;  %2793 = vst [vmem:[%s4732_s15 + $0x1c0] sm:$0xff] %v2729_v36 }
 0x325   : > { %2794 = vst.msk [vmem:[%s4732_s15 + $0x1c8] sm:$0xff] %vm344_vm0, %v2730_v52  ;;  %2795 = vst [vmem:[%s4732_s15 + $0x1d0] sm:$0xff] %v2731_v35 }
 0x326   : > { %2796 = vst.msk [vmem:[%s4732_s15 + $0x1d8] sm:$0xff] %vm344_vm0, %v2732_v3  ;;  %2797 = vst [vmem:[%s4732_s15 + $0x1e0] sm:$0xff] %v2733_v43 }
 0x327   : > { %2798 = vst.msk [vmem:[%s4732_s15 + $0x1e8] sm:$0xff] %vm344_vm0, %v2734_v38  ;;  %2799 = vst [vmem:[%s4732_s15 + $0x1f0] sm:$0xff] %v2735_v47 }
 0x328   : > { %2800 = vst.msk [vmem:[%s4732_s15 + $0x1f8] sm:$0xff] %vm344_vm0, %v2736_v23 }
 0x329 PF: > { %s17_s21 = sadd.s32 1, %s3256_s21  }
 0x32a   : > { %p14_p1 = scmp.ge.s32.totalorder %s17_s21, 6  }
 0x32c   :  { %16 = sbr.rel (!%p14_p1) target bundleno = 1 (0x1), region = 79 }
 0x333   :  { %2825 = vsyncpa [#allocation3], 1 }
 0x334   :  { %2827 = vsyncpa [#allocation3 + $0x1], 1 }

</bundles_post_ra>
